<compile_context>
chip_gen: v5e
topology: v5e:2x2
jax: 0.10.0
libtpu: 0.0.40
codegen_flags: <defaults>
</compile_context>

<pallas_src>
import functools

import jax
import jax.numpy as jnp
from jax import lax
from jax.experimental import pallas as pl
from jax.experimental.pallas import tpu as pltpu

DOMAIN_SIZE = 20.0        # domain_size in the reference script
PARTICLE_MASS = 1.0       # particle_mass
EPLIS = 1e-4              # eplis = ones * 0.0001
_ROUND_MAGIC = 12582912.0  # 1.5 * 2**23: (x + M) - M == round-half-even(x), |x| < 2**22


def _round_to_int(x):
    # Exact round-half-to-even (same tie behaviour as torch.round) via the fp32
    # magic-constant trick; guaranteed to lower (two VALU adds + fptosi).
    return ((x + _ROUND_MAGIC) - _ROUND_MAGIC).astype(jnp.int32)


def _dem_kernel(x_ref, y_ref, vx_ref, vy_ref, m_ref,
                x_out, y_out, vx_out, vy_out, cxo_out, cyo_out,
                *, Hp, Wp, d, kn, dt, filter_size):
    xg = x_ref[...]
    yg = y_ref[...]
    vx = vx_ref[...]
    vy = vy_ref[...]
    m = m_ref[...]

    half = filter_size // 2
    two_d = 2.0 * d
    eps2 = EPLIS * EPLIS
    inv_d = 1.0 / d

    # Old cell indices from the pre-step positions.  Emitting them here lets the
    # wrapper alias x/y onto x_out/y_out (no post-kernel use of pre-step x/y).
    cxo_out[...] = _round_to_int(xg * inv_d)
    cyo_out[...] = _round_to_int(yg * inv_d)

    fx = jnp.zeros((Hp, Wp), jnp.float32)
    fy = jnp.zeros((Hp, Wp), jnp.float32)

    # 5x5 neighbour loop == grid - roll(grid, shifts=(j-2, i-2)).  Fully
    # unrolled; the lane (column) shift is hoisted out of the row loop.  All
    # shifts are pltpu.roll (XLU), overlapping the VALU-bound tap arithmetic.
    for i in range(filter_size):
        sc = (i - half) % Wp
        if sc == 0:
            x_col, y_col = xg, yg
        else:
            x_col = pltpu.roll(xg, shift=sc, axis=1)
            y_col = pltpu.roll(yg, shift=sc, axis=1)
        for j in range(filter_size):
            if i == half and j == half:
                continue  # self tap: diff == 0 -> contributes exactly zero
            sr = (j - half) % Hp
            if sr == 0:
                rx, ry = x_col, y_col
            else:
                rx = pltpu.roll(x_col, shift=sr, axis=0)
                ry = pltpu.roll(y_col, shift=sr, axis=0)
            dx = xg - rx
            dy = yg - ry
            d2 = dx * dx + dy * dy
            # kn*(dist-2d)/max(eps,dist) with a single EUP rsqrt; the min()
            # replaces the dist<2d select (expression is negative exactly when
            # dist < 2d, zero-or-positive otherwise).
            inv = lax.rsqrt(jnp.maximum(eps2, d2))
            coef = jnp.minimum(kn - two_d * kn * inv, 0.0)
            fx = fx + coef * dx
            fy = fy + coef * dy

    # Boundary (wall) overlap forces -- one select per wall.
    fy_bottom = jnp.where((yg > 0.01) & (yg < d), kn * m * (d - yg), 0.0)
    fy_top = jnp.where((yg > (DOMAIN_SIZE - d)) & (yg < DOMAIN_SIZE),
                       -kn * m * (yg + d - DOMAIN_SIZE), 0.0)
    fx_left = jnp.where((xg > 0.01) & (xg < d), kn * m * (d - xg), 0.0)
    fx_right = jnp.where((xg > (DOMAIN_SIZE - d)) & (xg < DOMAIN_SIZE),
                         -kn * m * (xg + d - DOMAIN_SIZE), 0.0)

    dt_over_pm = dt / PARTICLE_MASS
    vx_new = vx - dt_over_pm * (fx_left + fx_right + fx * m)
    # NOTE: the reference's "- dt/pm*(0*pm)*mask" gravity term is exactly 0.
    vy_new = vy + dt_over_pm * (fy_top + fy_bottom - fy * m)

    x_out[...] = xg + dt * vx_new
    y_out[...] = yg + dt * vy_new
    vx_out[...] = vx_new
    vy_out[...] = vy_new


def _vmem_limit_bytes(n_live_arrays, Hp, Wp):
    per_array = Hp * Wp * 4
    working = n_live_arrays * per_array
    try:  # per-generation budget instead of a hard-coded 60 MiB
        phys = int(getattr(pltpu.get_tpu_info(), "vmem_capacity_bytes",
                           64 * 1024 * 1024))
    except Exception:
        phys = 64 * 1024 * 1024
    cap = (3 * phys) // 4   # ~48 MiB on v7x (64 MiB phys), ~96 MiB on v5e/v6e
    return int(min(cap, max(16 * 1024 * 1024, 4 * working)))


def ai4dem_forward(x_grid, y_grid, vx_grid, vy_grid, fx_grid, fy_grid, mask,
                   d, kn, diffx, diffy, dt, input_shape, filter_size,
                   max_particles=None):
    """Mirrors AI4DEM.forward; returns (x_grid, y_grid, vx_grid, vy_grid, mask)."""
    del fx_grid, fy_grid, diffx, diffy   # re-initialized / overwritten in forward
    _, _, H, W = input_shape

    # Pad to (8, 128)-aligned so pltpu.roll + full-lane stores always apply.
    # Padded cells carry x=y=vx=vy=mask=0; see header note on wrap semantics.
    Hp = max(8, -(-H // 8) * 8)
    Wp = max(128, -(-W // 128) * 128)

    def pad2(a):
        a2 = a.reshape(H, W).astype(jnp.float32)
        return jnp.pad(a2, ((0, Hp - H), (0, Wp - W)))

    x2, y2, vx2, vy2, m2 = [pad2(a) for a in (x_grid, y_grid, vx_grid, vy_grid, mask)]

    kernel = functools.partial(
        _dem_kernel, Hp=Hp, Wp=Wp, d=float(d), kn=float(kn), dt=float(dt),
        filter_size=int(filter_size))

    vmem = pl.BlockSpec(memory_space=pltpu.MemorySpace.VMEM)
    f32 = jax.ShapeDtypeStruct((Hp, Wp), jnp.float32)
    i32 = jax.ShapeDtypeStruct((Hp, Wp), jnp.int32)

    x_new, y_new, vx_new, vy_new, cxo, cyo = pl.pallas_call(
        kernel,
        out_shape=(f32, f32, f32, f32, i32, i32),
        in_specs=[vmem] * 5,
        out_specs=(vmem, vmem, vmem, vmem, vmem, vmem),
        input_output_aliases={0: 0, 1: 1, 2: 2, 3: 3},  # x,y,vx,vy update in place
        compiler_params=pltpu.CompilerParams(
            vmem_limit_bytes=_vmem_limit_bytes(16, Hp, Wp)),
    )(x2, y2, vx2, vy2, m2)

    # Back to the unpadded domain for the cell re-indexing epilogue.
    x_new, y_new = x_new[:H, :W], y_new[:H, :W]
    vx_new, vy_new = vx_new[:H, :W], vy_new[:H, :W]
    cxo, cyo = cxo[:H, :W], cyo[:H, :W]
    m_hw = mask.reshape(H, W).astype(jnp.float32)

    cx = jnp.round(x_new / d).astype(jnp.int32)
    cy = jnp.round(y_new / d).astype(jnp.int32)

    # ---- cell re-indexing (data-dependent scatter), compacted to particles ----
    # TODO(synk): the PyTorch code boolean-filters dynamically sized index lists
    # (cell_x[cell_x != 0]); here occupied cells are compacted to a fixed
    # max_particles-long list (sentinel + mode='drop' scatters), making the
    # epilogue O(n_particles) instead of two O(H*W) scatters.
    P = int(max_particles) if max_particles is not None else H * W
    old_valid = (cxo != 0) & (cyo != 0)
    pr, pc = jnp.nonzero(old_valid, size=P, fill_value=0)
    slot_valid = jnp.arange(P, dtype=jnp.int32) < jnp.sum(old_valid)

    cxo_p, cyo_p = cxo[pr, pc], cyo[pr, pc]
    cx_p, cy_p = cx[pr, pc], cy[pr, pc]
    new_valid = slot_valid & (cx_p != 0) & (cy_p != 0)

    merged = jnp.stack([x_new, y_new, vx_new, vy_new])    # post-step, pre-zero
    gathered = merged[:, cyo_p, cxo_p]                    # (4, P)

    oob = jnp.int32(max(H, W))                            # OOB index => dropped
    zy_old = jnp.where(slot_valid, cyo_p, oob)
    zx_old = jnp.where(slot_valid, cxo_p, oob)
    zy_new = jnp.where(new_valid, cy_p, oob)
    zx_new = jnp.where(new_valid, cx_p, oob)

    state = jnp.stack([x_new, y_new, vx_new, vy_new, m_hw])         # (5, H, W)
    state = state.at[:, zy_old, zx_old].set(0.0, mode='drop')       # zero old cells
    new_vals = jnp.concatenate(
        [gathered, jnp.ones((1, P), jnp.float32)], axis=0)          # mask channel -> 1
    state = state.at[:, zy_new, zx_new].set(new_vals, mode='drop')  # write new cells

    x_out, y_out, vx_out, vy_out, m_out = state
    shape = tuple(input_shape)
    return (x_out.reshape(shape), y_out.reshape(shape),
            vx_out.reshape(shape), vy_out.reshape(shape),
            m_out.reshape(shape))


if __name__ == "__main__":
    H = W = 20                      # domain_size / cell_size
    input_shape = (1, 1, H, W)
    d = 1.0                         # cell_size
    kn = 500.0
    dt = 0.001
    filter_size = 5

    key = jax.random.PRNGKey(0)
    kvx, kvy = jax.random.split(key)

    # Two-particle collision setup: particles in cells (10, 8) and (10, 10),
    # positions 1.6 apart (< 2*d), so they exert repulsive contact forces.
    mask = jnp.zeros(input_shape, jnp.float32)
    x_grid = jnp.zeros(input_shape, jnp.float32)
    y_grid = jnp.zeros(input_shape, jnp.float32)
    mask = mask.at[0, 0, 10, 8].set(1.0).at[0, 0, 10, 10].set(1.0)
    x_grid = x_grid.at[0, 0, 10, 8].set(8.0).at[0, 0, 10, 10].set(9.6)
    y_grid = y_grid.at[0, 0, 10, 8].set(10.0).at[0, 0, 10, 10].set(10.0)

    vx_grid = jax.random.normal(kvx, input_shape, jnp.float32) * 0.01 * mask
    vy_grid = jax.random.normal(kvy, input_shape, jnp.float32) * 0.01 * mask

    fx_grid = jnp.zeros(input_shape, jnp.float32)
    fy_grid = jnp.zeros(input_shape, jnp.float32)
    diffx = jnp.zeros(input_shape, jnp.float32)
    diffy = jnp.zeros(input_shape, jnp.float32)

    forward = jax.jit(functools.partial(ai4dem_forward, max_particles=16),
                      static_argnums=(7, 8, 11, 12, 13))
    outs = forward(x_grid, y_grid, vx_grid, vy_grid, fx_grid, fy_grid,
                   mask, d, kn, diffx, diffy, dt, input_shape, filter_size)
    jax.block_until_ready(outs)
    print("KERNEL_OK")
</pallas_src>

<mosaic_0001>
module attributes {stable_mosaic.version = 11 : i64} {
  func.func @_dem_kernel(%arg0: memref<24x128xf32, #tpu.memory_space<vmem>>, %arg1: memref<24x128xf32, #tpu.memory_space<vmem>>, %arg2: memref<24x128xf32, #tpu.memory_space<vmem>>, %arg3: memref<24x128xf32, #tpu.memory_space<vmem>>, %arg4: memref<24x128xf32, #tpu.memory_space<vmem>>, %arg5: memref<24x128xf32, #tpu.memory_space<vmem>>, %arg6: memref<24x128xf32, #tpu.memory_space<vmem>>, %arg7: memref<24x128xf32, #tpu.memory_space<vmem>>, %arg8: memref<24x128xf32, #tpu.memory_space<vmem>>, %arg9: memref<24x128xi32, #tpu.memory_space<vmem>>, %arg10: memref<24x128xi32, #tpu.memory_space<vmem>>) attributes {dimension_semantics = [], scalar_prefetch = 0 : i64, scratch_operands = 0 : i64, tpu.core_type = #tpu.core_type<tc>} {
    %c0 = arith.constant 0 : index
    %c0_0 = arith.constant 0 : index
    %0 = vector.load %arg0[%c0, %c0_0] : memref<24x128xf32, #tpu.memory_space<vmem>>, vector<24x128xf32>
    %c0_1 = arith.constant 0 : index
    %c0_2 = arith.constant 0 : index
    %1 = vector.load %arg1[%c0_1, %c0_2] : memref<24x128xf32, #tpu.memory_space<vmem>>, vector<24x128xf32>
    %c0_3 = arith.constant 0 : index
    %c0_4 = arith.constant 0 : index
    %2 = vector.load %arg2[%c0_3, %c0_4] : memref<24x128xf32, #tpu.memory_space<vmem>>, vector<24x128xf32>
    %c0_5 = arith.constant 0 : index
    %c0_6 = arith.constant 0 : index
    %3 = vector.load %arg3[%c0_5, %c0_6] : memref<24x128xf32, #tpu.memory_space<vmem>>, vector<24x128xf32>
    %c0_7 = arith.constant 0 : index
    %c0_8 = arith.constant 0 : index
    %4 = vector.load %arg4[%c0_7, %c0_8] : memref<24x128xf32, #tpu.memory_space<vmem>>, vector<24x128xf32>
    %cst = arith.constant 1.000000e+00 : f32
    %5 = vector.broadcast %cst : f32 to vector<24x128xf32>
    %6 = arith.mulf %0, %5 : vector<24x128xf32>
    %cst_9 = arith.constant 0x4B400000 : f32
    %7 = vector.broadcast %cst_9 : f32 to vector<24x128xf32>
    %8 = arith.addf %6, %7 : vector<24x128xf32>
    %cst_10 = arith.constant 0x4B400000 : f32
    %9 = vector.broadcast %cst_10 : f32 to vector<24x128xf32>
    %10 = arith.subf %8, %9 : vector<24x128xf32>
    %11 = arith.fptosi %10 : vector<24x128xf32> to vector<24x128xi32>
    %c0_11 = arith.constant 0 : index
    %c0_12 = arith.constant 0 : index
    %12 = vector.load %arg9[%c0_11, %c0_12] : memref<24x128xi32, #tpu.memory_space<vmem>>, vector<24x128xi32>
    tpu.vector_store %arg9[%c0_11, %c0_12], %11 {strides = array<i32>} : memref<24x128xi32, #tpu.memory_space<vmem>>, vector<24x128xi32>,
    %cst_13 = arith.constant 1.000000e+00 : f32
    %13 = vector.broadcast %cst_13 : f32 to vector<24x128xf32>
    %14 = arith.mulf %1, %13 : vector<24x128xf32>
    %cst_14 = arith.constant 0x4B400000 : f32
    %15 = vector.broadcast %cst_14 : f32 to vector<24x128xf32>
    %16 = arith.addf %14, %15 : vector<24x128xf32>
    %cst_15 = arith.constant 0x4B400000 : f32
    %17 = vector.broadcast %cst_15 : f32 to vector<24x128xf32>
    %18 = arith.subf %16, %17 : vector<24x128xf32>
    %19 = arith.fptosi %18 : vector<24x128xf32> to vector<24x128xi32>
    %c0_16 = arith.constant 0 : index
    %c0_17 = arith.constant 0 : index
    %20 = vector.load %arg10[%c0_16, %c0_17] : memref<24x128xi32, #tpu.memory_space<vmem>>, vector<24x128xi32>
    tpu.vector_store %arg10[%c0_16, %c0_17], %19 {strides = array<i32>} : memref<24x128xi32, #tpu.memory_space<vmem>>, vector<24x128xi32>,
    %cst_18 = arith.constant 0.000000e+00 : f32
    %21 = vector.broadcast %cst_18 : f32 to vector<24x128xf32>
    %cst_19 = arith.constant 0.000000e+00 : f32
    %22 = vector.broadcast %cst_19 : f32 to vector<24x128xf32>
    %c126_i32 = arith.constant 126 : i32
    %23 = tpu.dynamic_rotate %0 by %c126_i32 dim 1 : vector<24x128xf32>, i32 -> vector<24x128xf32>
    %c126_i32_20 = arith.constant 126 : i32
    %24 = tpu.dynamic_rotate %1 by %c126_i32_20 dim 1 : vector<24x128xf32>, i32 -> vector<24x128xf32>
    %c22_i32 = arith.constant 22 : i32
    %25 = tpu.dynamic_rotate %23 by %c22_i32 dim 0 : vector<24x128xf32>, i32 -> vector<24x128xf32>
    %c22_i32_21 = arith.constant 22 : i32
    %26 = tpu.dynamic_rotate %24 by %c22_i32_21 dim 0 : vector<24x128xf32>, i32 -> vector<24x128xf32>
    %27 = arith.subf %0, %25 : vector<24x128xf32>
    %28 = arith.subf %1, %26 : vector<24x128xf32>
    %29 = arith.mulf %27, %27 : vector<24x128xf32>
    %30 = arith.mulf %28, %28 : vector<24x128xf32>
    %31 = arith.addf %29, %30 : vector<24x128xf32>
    %cst_22 = arith.constant 9.99999993E-9 : f32
    %32 = vector.broadcast %cst_22 : f32 to vector<24x128xf32>
    %33 = arith.maximumf %32, %31 : vector<24x128xf32>
    %34 = math.rsqrt %33 : vector<24x128xf32>
    %cst_23 = arith.constant 1.000000e+03 : f32
    %35 = vector.broadcast %cst_23 : f32 to vector<24x128xf32>
    %36 = arith.mulf %35, %34 : vector<24x128xf32>
    %cst_24 = arith.constant 5.000000e+02 : f32
    %37 = vector.broadcast %cst_24 : f32 to vector<24x128xf32>
    %38 = arith.subf %37, %36 : vector<24x128xf32>
    %cst_25 = arith.constant 0.000000e+00 : f32
    %39 = vector.broadcast %cst_25 : f32 to vector<24x128xf32>
    %40 = arith.minimumf %38, %39 : vector<24x128xf32>
    %41 = arith.mulf %40, %27 : vector<24x128xf32>
    %42 = arith.addf %21, %41 : vector<24x128xf32>
    %43 = arith.mulf %40, %28 : vector<24x128xf32>
    %44 = arith.addf %22, %43 : vector<24x128xf32>
    %c23_i32 = arith.constant 23 : i32
    %45 = tpu.dynamic_rotate %23 by %c23_i32 dim 0 : vector<24x128xf32>, i32 -> vector<24x128xf32>
    %c23_i32_26 = arith.constant 23 : i32
    %46 = tpu.dynamic_rotate %24 by %c23_i32_26 dim 0 : vector<24x128xf32>, i32 -> vector<24x128xf32>
    %47 = arith.subf %0, %45 : vector<24x128xf32>
    %48 = arith.subf %1, %46 : vector<24x128xf32>
    %49 = arith.mulf %47, %47 : vector<24x128xf32>
    %50 = arith.mulf %48, %48 : vector<24x128xf32>
    %51 = arith.addf %49, %50 : vector<24x128xf32>
    %cst_27 = arith.constant 9.99999993E-9 : f32
    %52 = vector.broadcast %cst_27 : f32 to vector<24x128xf32>
    %53 = arith.maximumf %52, %51 : vector<24x128xf32>
    %54 = math.rsqrt %53 : vector<24x128xf32>
    %cst_28 = arith.constant 1.000000e+03 : f32
    %55 = vector.broadcast %cst_28 : f32 to vector<24x128xf32>
    %56 = arith.mulf %55, %54 : vector<24x128xf32>
    %cst_29 = arith.constant 5.000000e+02 : f32
    %57 = vector.broadcast %cst_29 : f32 to vector<24x128xf32>
    %58 = arith.subf %57, %56 : vector<24x128xf32>
    %cst_30 = arith.constant 0.000000e+00 : f32
    %59 = vector.broadcast %cst_30 : f32 to vector<24x128xf32>
    %60 = arith.minimumf %58, %59 : vector<24x128xf32>
    %61 = arith.mulf %60, %47 : vector<24x128xf32>
    %62 = arith.addf %42, %61 : vector<24x128xf32>
    %63 = arith.mulf %60, %48 : vector<24x128xf32>
    %64 = arith.addf %44, %63 : vector<24x128xf32>
    %65 = arith.subf %0, %23 : vector<24x128xf32>
    %66 = arith.subf %1, %24 : vector<24x128xf32>
    %67 = arith.mulf %65, %65 : vector<24x128xf32>
    %68 = arith.mulf %66, %66 : vector<24x128xf32>
    %69 = arith.addf %67, %68 : vector<24x128xf32>
    %cst_31 = arith.constant 9.99999993E-9 : f32
    %70 = vector.broadcast %cst_31 : f32 to vector<24x128xf32>
    %71 = arith.maximumf %70, %69 : vector<24x128xf32>
    %72 = math.rsqrt %71 : vector<24x128xf32>
    %cst_32 = arith.constant 1.000000e+03 : f32
    %73 = vector.broadcast %cst_32 : f32 to vector<24x128xf32>
    %74 = arith.mulf %73, %72 : vector<24x128xf32>
    %cst_33 = arith.constant 5.000000e+02 : f32
    %75 = vector.broadcast %cst_33 : f32 to vector<24x128xf32>
    %76 = arith.subf %75, %74 : vector<24x128xf32>
    %cst_34 = arith.constant 0.000000e+00 : f32
    %77 = vector.broadcast %cst_34 : f32 to vector<24x128xf32>
    %78 = arith.minimumf %76, %77 : vector<24x128xf32>
    %79 = arith.mulf %78, %65 : vector<24x128xf32>
    %80 = arith.addf %62, %79 : vector<24x128xf32>
    %81 = arith.mulf %78, %66 : vector<24x128xf32>
    %82 = arith.addf %64, %81 : vector<24x128xf32>
    %c1_i32 = arith.constant 1 : i32
    %83 = tpu.dynamic_rotate %23 by %c1_i32 dim 0 : vector<24x128xf32>, i32 -> vector<24x128xf32>
    %c1_i32_35 = arith.constant 1 : i32
    %84 = tpu.dynamic_rotate %24 by %c1_i32_35 dim 0 : vector<24x128xf32>, i32 -> vector<24x128xf32>
    %85 = arith.subf %0, %83 : vector<24x128xf32>
    %86 = arith.subf %1, %84 : vector<24x128xf32>
    %87 = arith.mulf %85, %85 : vector<24x128xf32>
    %88 = arith.mulf %86, %86 : vector<24x128xf32>
    %89 = arith.addf %87, %88 : vector<24x128xf32>
    %cst_36 = arith.constant 9.99999993E-9 : f32
    %90 = vector.broadcast %cst_36 : f32 to vector<24x128xf32>
    %91 = arith.maximumf %90, %89 : vector<24x128xf32>
    %92 = math.rsqrt %91 : vector<24x128xf32>
    %cst_37 = arith.constant 1.000000e+03 : f32
    %93 = vector.broadcast %cst_37 : f32 to vector<24x128xf32>
    %94 = arith.mulf %93, %92 : vector<24x128xf32>
    %cst_38 = arith.constant 5.000000e+02 : f32
    %95 = vector.broadcast %cst_38 : f32 to vector<24x128xf32>
    %96 = arith.subf %95, %94 : vector<24x128xf32>
    %cst_39 = arith.constant 0.000000e+00 : f32
    %97 = vector.broadcast %cst_39 : f32 to vector<24x128xf32>
    %98 = arith.minimumf %96, %97 : vector<24x128xf32>
    %99 = arith.mulf %98, %85 : vector<24x128xf32>
    %100 = arith.addf %80, %99 : vector<24x128xf32>
    %101 = arith.mulf %98, %86 : vector<24x128xf32>
    %102 = arith.addf %82, %101 : vector<24x128xf32>
    %c2_i32 = arith.constant 2 : i32
    %103 = tpu.dynamic_rotate %23 by %c2_i32 dim 0 : vector<24x128xf32>, i32 -> vector<24x128xf32>
    %c2_i32_40 = arith.constant 2 : i32
    %104 = tpu.dynamic_rotate %24 by %c2_i32_40 dim 0 : vector<24x128xf32>, i32 -> vector<24x128xf32>
    %105 = arith.subf %0, %103 : vector<24x128xf32>
    %106 = arith.subf %1, %104 : vector<24x128xf32>
    %107 = arith.mulf %105, %105 : vector<24x128xf32>
    %108 = arith.mulf %106, %106 : vector<24x128xf32>
    %109 = arith.addf %107, %108 : vector<24x128xf32>
    %cst_41 = arith.constant 9.99999993E-9 : f32
    %110 = vector.broadcast %cst_41 : f32 to vector<24x128xf32>
    %111 = arith.maximumf %110, %109 : vector<24x128xf32>
    %112 = math.rsqrt %111 : vector<24x128xf32>
    %cst_42 = arith.constant 1.000000e+03 : f32
    %113 = vector.broadcast %cst_42 : f32 to vector<24x128xf32>
    %114 = arith.mulf %113, %112 : vector<24x128xf32>
    %cst_43 = arith.constant 5.000000e+02 : f32
    %115 = vector.broadcast %cst_43 : f32 to vector<24x128xf32>
    %116 = arith.subf %115, %114 : vector<24x128xf32>
    %cst_44 = arith.constant 0.000000e+00 : f32
    %117 = vector.broadcast %cst_44 : f32 to vector<24x128xf32>
    %118 = arith.minimumf %116, %117 : vector<24x128xf32>
    %119 = arith.mulf %118, %105 : vector<24x128xf32>
    %120 = arith.addf %100, %119 : vector<24x128xf32>
    %121 = arith.mulf %118, %106 : vector<24x128xf32>
    %122 = arith.addf %102, %121 : vector<24x128xf32>
    %c127_i32 = arith.constant 127 : i32
    %123 = tpu.dynamic_rotate %0 by %c127_i32 dim 1 : vector<24x128xf32>, i32 -> vector<24x128xf32>
    %c127_i32_45 = arith.constant 127 : i32
    %124 = tpu.dynamic_rotate %1 by %c127_i32_45 dim 1 : vector<24x128xf32>, i32 -> vector<24x128xf32>
    %c22_i32_46 = arith.constant 22 : i32
    %125 = tpu.dynamic_rotate %123 by %c22_i32_46 dim 0 : vector<24x128xf32>, i32 -> vector<24x128xf32>
    %c22_i32_47 = arith.constant 22 : i32
    %126 = tpu.dynamic_rotate %124 by %c22_i32_47 dim 0 : vector<24x128xf32>, i32 -> vector<24x128xf32>
    %127 = arith.subf %0, %125 : vector<24x128xf32>
    %128 = arith.subf %1, %126 : vector<24x128xf32>
    %129 = arith.mulf %127, %127 : vector<24x128xf32>
    %130 = arith.mulf %128, %128 : vector<24x128xf32>
    %131 = arith.addf %129, %130 : vector<24x128xf32>
    %cst_48 = arith.constant 9.99999993E-9 : f32
    %132 = vector.broadcast %cst_48 : f32 to vector<24x128xf32>
    %133 = arith.maximumf %132, %131 : vector<24x128xf32>
    %134 = math.rsqrt %133 : vector<24x128xf32>
    %cst_49 = arith.constant 1.000000e+03 : f32
    %135 = vector.broadcast %cst_49 : f32 to vector<24x128xf32>
    %136 = arith.mulf %135, %134 : vector<24x128xf32>
    %cst_50 = arith.constant 5.000000e+02 : f32
    %137 = vector.broadcast %cst_50 : f32 to vector<24x128xf32>
    %138 = arith.subf %137, %136 : vector<24x128xf32>
    %cst_51 = arith.constant 0.000000e+00 : f32
    %139 = vector.broadcast %cst_51 : f32 to vector<24x128xf32>
    %140 = arith.minimumf %138, %139 : vector<24x128xf32>
    %141 = arith.mulf %140, %127 : vector<24x128xf32>
    %142 = arith.addf %120, %141 : vector<24x128xf32>
    %143 = arith.mulf %140, %128 : vector<24x128xf32>
    %144 = arith.addf %122, %143 : vector<24x128xf32>
    %c23_i32_52 = arith.constant 23 : i32
    %145 = tpu.dynamic_rotate %123 by %c23_i32_52 dim 0 : vector<24x128xf32>, i32 -> vector<24x128xf32>
    %c23_i32_53 = arith.constant 23 : i32
    %146 = tpu.dynamic_rotate %124 by %c23_i32_53 dim 0 : vector<24x128xf32>, i32 -> vector<24x128xf32>
    %147 = arith.subf %0, %145 : vector<24x128xf32>
    %148 = arith.subf %1, %146 : vector<24x128xf32>
    %149 = arith.mulf %147, %147 : vector<24x128xf32>
    %150 = arith.mulf %148, %148 : vector<24x128xf32>
    %151 = arith.addf %149, %150 : vector<24x128xf32>
    %cst_54 = arith.constant 9.99999993E-9 : f32
    %152 = vector.broadcast %cst_54 : f32 to vector<24x128xf32>
    %153 = arith.maximumf %152, %151 : vector<24x128xf32>
    %154 = math.rsqrt %153 : vector<24x128xf32>
    %cst_55 = arith.constant 1.000000e+03 : f32
    %155 = vector.broadcast %cst_55 : f32 to vector<24x128xf32>
    %156 = arith.mulf %155, %154 : vector<24x128xf32>
    %cst_56 = arith.constant 5.000000e+02 : f32
    %157 = vector.broadcast %cst_56 : f32 to vector<24x128xf32>
    %158 = arith.subf %157, %156 : vector<24x128xf32>
    %cst_57 = arith.constant 0.000000e+00 : f32
    %159 = vector.broadcast %cst_57 : f32 to vector<24x128xf32>
    %160 = arith.minimumf %158, %159 : vector<24x128xf32>
    %161 = arith.mulf %160, %147 : vector<24x128xf32>
    %162 = arith.addf %142, %161 : vector<24x128xf32>
    %163 = arith.mulf %160, %148 : vector<24x128xf32>
    %164 = arith.addf %144, %163 : vector<24x128xf32>
    %165 = arith.subf %0, %123 : vector<24x128xf32>
    %166 = arith.subf %1, %124 : vector<24x128xf32>
    %167 = arith.mulf %165, %165 : vector<24x128xf32>
    %168 = arith.mulf %166, %166 : vector<24x128xf32>
    %169 = arith.addf %167, %168 : vector<24x128xf32>
    %cst_58 = arith.constant 9.99999993E-9 : f32
    %170 = vector.broadcast %cst_58 : f32 to vector<24x128xf32>
    %171 = arith.maximumf %170, %169 : vector<24x128xf32>
    %172 = math.rsqrt %171 : vector<24x128xf32>
    %cst_59 = arith.constant 1.000000e+03 : f32
    %173 = vector.broadcast %cst_59 : f32 to vector<24x128xf32>
    %174 = arith.mulf %173, %172 : vector<24x128xf32>
    %cst_60 = arith.constant 5.000000e+02 : f32
    %175 = vector.broadcast %cst_60 : f32 to vector<24x128xf32>
    %176 = arith.subf %175, %174 : vector<24x128xf32>
    %cst_61 = arith.constant 0.000000e+00 : f32
    %177 = vector.broadcast %cst_61 : f32 to vector<24x128xf32>
    %178 = arith.minimumf %176, %177 : vector<24x128xf32>
    %179 = arith.mulf %178, %165 : vector<24x128xf32>
    %180 = arith.addf %162, %179 : vector<24x128xf32>
    %181 = arith.mulf %178, %166 : vector<24x128xf32>
    %182 = arith.addf %164, %181 : vector<24x128xf32>
    %c1_i32_62 = arith.constant 1 : i32
    %183 = tpu.dynamic_rotate %123 by %c1_i32_62 dim 0 : vector<24x128xf32>, i32 -> vector<24x128xf32>
    %c1_i32_63 = arith.constant 1 : i32
    %184 = tpu.dynamic_rotate %124 by %c1_i32_63 dim 0 : vector<24x128xf32>, i32 -> vector<24x128xf32>
    %185 = arith.subf %0, %183 : vector<24x128xf32>
    %186 = arith.subf %1, %184 : vector<24x128xf32>
    %187 = arith.mulf %185, %185 : vector<24x128xf32>
    %188 = arith.mulf %186, %186 : vector<24x128xf32>
    %189 = arith.addf %187, %188 : vector<24x128xf32>
    %cst_64 = arith.constant 9.99999993E-9 : f32
    %190 = vector.broadcast %cst_64 : f32 to vector<24x128xf32>
    %191 = arith.maximumf %190, %189 : vector<24x128xf32>
    %192 = math.rsqrt %191 : vector<24x128xf32>
    %cst_65 = arith.constant 1.000000e+03 : f32
    %193 = vector.broadcast %cst_65 : f32 to vector<24x128xf32>
    %194 = arith.mulf %193, %192 : vector<24x128xf32>
    %cst_66 = arith.constant 5.000000e+02 : f32
    %195 = vector.broadcast %cst_66 : f32 to vector<24x128xf32>
    %196 = arith.subf %195, %194 : vector<24x128xf32>
    %cst_67 = arith.constant 0.000000e+00 : f32
    %197 = vector.broadcast %cst_67 : f32 to vector<24x128xf32>
    %198 = arith.minimumf %196, %197 : vector<24x128xf32>
    %199 = arith.mulf %198, %185 : vector<24x128xf32>
    %200 = arith.addf %180, %199 : vector<24x128xf32>
    %201 = arith.mulf %198, %186 : vector<24x128xf32>
    %202 = arith.addf %182, %201 : vector<24x128xf32>
    %c2_i32_68 = arith.constant 2 : i32
    %203 = tpu.dynamic_rotate %123 by %c2_i32_68 dim 0 : vector<24x128xf32>, i32 -> vector<24x128xf32>
    %c2_i32_69 = arith.constant 2 : i32
    %204 = tpu.dynamic_rotate %124 by %c2_i32_69 dim 0 : vector<24x128xf32>, i32 -> vector<24x128xf32>
    %205 = arith.subf %0, %203 : vector<24x128xf32>
    %206 = arith.subf %1, %204 : vector<24x128xf32>
    %207 = arith.mulf %205, %205 : vector<24x128xf32>
    %208 = arith.mulf %206, %206 : vector<24x128xf32>
    %209 = arith.addf %207, %208 : vector<24x128xf32>
    %cst_70 = arith.constant 9.99999993E-9 : f32
    %210 = vector.broadcast %cst_70 : f32 to vector<24x128xf32>
    %211 = arith.maximumf %210, %209 : vector<24x128xf32>
    %212 = math.rsqrt %211 : vector<24x128xf32>
    %cst_71 = arith.constant 1.000000e+03 : f32
    %213 = vector.broadcast %cst_71 : f32 to vector<24x128xf32>
    %214 = arith.mulf %213, %212 : vector<24x128xf32>
    %cst_72 = arith.constant 5.000000e+02 : f32
    %215 = vector.broadcast %cst_72 : f32 to vector<24x128xf32>
    %216 = arith.subf %215, %214 : vector<24x128xf32>
    %cst_73 = arith.constant 0.000000e+00 : f32
    %217 = vector.broadcast %cst_73 : f32 to vector<24x128xf32>
    %218 = arith.minimumf %216, %217 : vector<24x128xf32>
    %219 = arith.mulf %218, %205 : vector<24x128xf32>
    %220 = arith.addf %200, %219 : vector<24x128xf32>
    %221 = arith.mulf %218, %206 : vector<24x128xf32>
    %222 = arith.addf %202, %221 : vector<24x128xf32>
    %c22_i32_74 = arith.constant 22 : i32
    %223 = tpu.dynamic_rotate %0 by %c22_i32_74 dim 0 : vector<24x128xf32>, i32 -> vector<24x128xf32>
    %c22_i32_75 = arith.constant 22 : i32
    %224 = tpu.dynamic_rotate %1 by %c22_i32_75 dim 0 : vector<24x128xf32>, i32 -> vector<24x128xf32>
    %225 = arith.subf %0, %223 : vector<24x128xf32>
    %226 = arith.subf %1, %224 : vector<24x128xf32>
    %227 = arith.mulf %225, %225 : vector<24x128xf32>
    %228 = arith.mulf %226, %226 : vector<24x128xf32>
    %229 = arith.addf %227, %228 : vector<24x128xf32>
    %cst_76 = arith.constant 9.99999993E-9 : f32
    %230 = vector.broadcast %cst_76 : f32 to vector<24x128xf32>
    %231 = arith.maximumf %230, %229 : vector<24x128xf32>
    %232 = math.rsqrt %231 : vector<24x128xf32>
    %cst_77 = arith.constant 1.000000e+03 : f32
    %233 = vector.broadcast %cst_77 : f32 to vector<24x128xf32>
    %234 = arith.mulf %233, %232 : vector<24x128xf32>
    %cst_78 = arith.constant 5.000000e+02 : f32
    %235 = vector.broadcast %cst_78 : f32 to vector<24x128xf32>
    %236 = arith.subf %235, %234 : vector<24x128xf32>
    %cst_79 = arith.constant 0.000000e+00 : f32
    %237 = vector.broadcast %cst_79 : f32 to vector<24x128xf32>
    %238 = arith.minimumf %236, %237 : vector<24x128xf32>
    %239 = arith.mulf %238, %225 : vector<24x128xf32>
    %240 = arith.addf %220, %239 : vector<24x128xf32>
    %241 = arith.mulf %238, %226 : vector<24x128xf32>
    %242 = arith.addf %222, %241 : vector<24x128xf32>
    %c23_i32_80 = arith.constant 23 : i32
    %243 = tpu.dynamic_rotate %0 by %c23_i32_80 dim 0 : vector<24x128xf32>, i32 -> vector<24x128xf32>
    %c23_i32_81 = arith.constant 23 : i32
    %244 = tpu.dynamic_rotate %1 by %c23_i32_81 dim 0 : vector<24x128xf32>, i32 -> vector<24x128xf32>
    %245 = arith.subf %0, %243 : vector<24x128xf32>
    %246 = arith.subf %1, %244 : vector<24x128xf32>
    %247 = arith.mulf %245, %245 : vector<24x128xf32>
    %248 = arith.mulf %246, %246 : vector<24x128xf32>
    %249 = arith.addf %247, %248 : vector<24x128xf32>
    %cst_82 = arith.constant 9.99999993E-9 : f32
    %250 = vector.broadcast %cst_82 : f32 to vector<24x128xf32>
    %251 = arith.maximumf %250, %249 : vector<24x128xf32>
    %252 = math.rsqrt %251 : vector<24x128xf32>
    %cst_83 = arith.constant 1.000000e+03 : f32
    %253 = vector.broadcast %cst_83 : f32 to vector<24x128xf32>
    %254 = arith.mulf %253, %252 : vector<24x128xf32>
    %cst_84 = arith.constant 5.000000e+02 : f32
    %255 = vector.broadcast %cst_84 : f32 to vector<24x128xf32>
    %256 = arith.subf %255, %254 : vector<24x128xf32>
    %cst_85 = arith.constant 0.000000e+00 : f32
    %257 = vector.broadcast %cst_85 : f32 to vector<24x128xf32>
    %258 = arith.minimumf %256, %257 : vector<24x128xf32>
    %259 = arith.mulf %258, %245 : vector<24x128xf32>
    %260 = arith.addf %240, %259 : vector<24x128xf32>
    %261 = arith.mulf %258, %246 : vector<24x128xf32>
    %262 = arith.addf %242, %261 : vector<24x128xf32>
    %c1_i32_86 = arith.constant 1 : i32
    %263 = tpu.dynamic_rotate %0 by %c1_i32_86 dim 0 : vector<24x128xf32>, i32 -> vector<24x128xf32>
    %c1_i32_87 = arith.constant 1 : i32
    %264 = tpu.dynamic_rotate %1 by %c1_i32_87 dim 0 : vector<24x128xf32>, i32 -> vector<24x128xf32>
    %265 = arith.subf %0, %263 : vector<24x128xf32>
    %266 = arith.subf %1, %264 : vector<24x128xf32>
    %267 = arith.mulf %265, %265 : vector<24x128xf32>
    %268 = arith.mulf %266, %266 : vector<24x128xf32>
    %269 = arith.addf %267, %268 : vector<24x128xf32>
    %cst_88 = arith.constant 9.99999993E-9 : f32
    %270 = vector.broadcast %cst_88 : f32 to vector<24x128xf32>
    %271 = arith.maximumf %270, %269 : vector<24x128xf32>
    %272 = math.rsqrt %271 : vector<24x128xf32>
    %cst_89 = arith.constant 1.000000e+03 : f32
    %273 = vector.broadcast %cst_89 : f32 to vector<24x128xf32>
    %274 = arith.mulf %273, %272 : vector<24x128xf32>
    %cst_90 = arith.constant 5.000000e+02 : f32
    %275 = vector.broadcast %cst_90 : f32 to vector<24x128xf32>
    %276 = arith.subf %275, %274 : vector<24x128xf32>
    %cst_91 = arith.constant 0.000000e+00 : f32
    %277 = vector.broadcast %cst_91 : f32 to vector<24x128xf32>
    %278 = arith.minimumf %276, %277 : vector<24x128xf32>
    %279 = arith.mulf %278, %265 : vector<24x128xf32>
    %280 = arith.addf %260, %279 : vector<24x128xf32>
    %281 = arith.mulf %278, %266 : vector<24x128xf32>
    %282 = arith.addf %262, %281 : vector<24x128xf32>
    %c2_i32_92 = arith.constant 2 : i32
    %283 = tpu.dynamic_rotate %0 by %c2_i32_92 dim 0 : vector<24x128xf32>, i32 -> vector<24x128xf32>
    %c2_i32_93 = arith.constant 2 : i32
    %284 = tpu.dynamic_rotate %1 by %c2_i32_93 dim 0 : vector<24x128xf32>, i32 -> vector<24x128xf32>
    %285 = arith.subf %0, %283 : vector<24x128xf32>
    %286 = arith.subf %1, %284 : vector<24x128xf32>
    %287 = arith.mulf %285, %285 : vector<24x128xf32>
    %288 = arith.mulf %286, %286 : vector<24x128xf32>
    %289 = arith.addf %287, %288 : vector<24x128xf32>
    %cst_94 = arith.constant 9.99999993E-9 : f32
    %290 = vector.broadcast %cst_94 : f32 to vector<24x128xf32>
    %291 = arith.maximumf %290, %289 : vector<24x128xf32>
    %292 = math.rsqrt %291 : vector<24x128xf32>
    %cst_95 = arith.constant 1.000000e+03 : f32
    %293 = vector.broadcast %cst_95 : f32 to vector<24x128xf32>
    %294 = arith.mulf %293, %292 : vector<24x128xf32>
    %cst_96 = arith.constant 5.000000e+02 : f32
    %295 = vector.broadcast %cst_96 : f32 to vector<24x128xf32>
    %296 = arith.subf %295, %294 : vector<24x128xf32>
    %cst_97 = arith.constant 0.000000e+00 : f32
    %297 = vector.broadcast %cst_97 : f32 to vector<24x128xf32>
    %298 = arith.minimumf %296, %297 : vector<24x128xf32>
    %299 = arith.mulf %298, %285 : vector<24x128xf32>
    %300 = arith.addf %280, %299 : vector<24x128xf32>
    %301 = arith.mulf %298, %286 : vector<24x128xf32>
    %302 = arith.addf %282, %301 : vector<24x128xf32>
    %c1_i32_98 = arith.constant 1 : i32
    %303 = tpu.dynamic_rotate %0 by %c1_i32_98 dim 1 : vector<24x128xf32>, i32 -> vector<24x128xf32>
    %c1_i32_99 = arith.constant 1 : i32
    %304 = tpu.dynamic_rotate %1 by %c1_i32_99 dim 1 : vector<24x128xf32>, i32 -> vector<24x128xf32>
    %c22_i32_100 = arith.constant 22 : i32
    %305 = tpu.dynamic_rotate %303 by %c22_i32_100 dim 0 : vector<24x128xf32>, i32 -> vector<24x128xf32>
    %c22_i32_101 = arith.constant 22 : i32
    %306 = tpu.dynamic_rotate %304 by %c22_i32_101 dim 0 : vector<24x128xf32>, i32 -> vector<24x128xf32>
    %307 = arith.subf %0, %305 : vector<24x128xf32>
    %308 = arith.subf %1, %306 : vector<24x128xf32>
    %309 = arith.mulf %307, %307 : vector<24x128xf32>
    %310 = arith.mulf %308, %308 : vector<24x128xf32>
    %311 = arith.addf %309, %310 : vector<24x128xf32>
    %cst_102 = arith.constant 9.99999993E-9 : f32
    %312 = vector.broadcast %cst_102 : f32 to vector<24x128xf32>
    %313 = arith.maximumf %312, %311 : vector<24x128xf32>
    %314 = math.rsqrt %313 : vector<24x128xf32>
    %cst_103 = arith.constant 1.000000e+03 : f32
    %315 = vector.broadcast %cst_103 : f32 to vector<24x128xf32>
    %316 = arith.mulf %315, %314 : vector<24x128xf32>
    %cst_104 = arith.constant 5.000000e+02 : f32
    %317 = vector.broadcast %cst_104 : f32 to vector<24x128xf32>
    %318 = arith.subf %317, %316 : vector<24x128xf32>
    %cst_105 = arith.constant 0.000000e+00 : f32
    %319 = vector.broadcast %cst_105 : f32 to vector<24x128xf32>
    %320 = arith.minimumf %318, %319 : vector<24x128xf32>
    %321 = arith.mulf %320, %307 : vector<24x128xf32>
    %322 = arith.addf %300, %321 : vector<24x128xf32>
    %323 = arith.mulf %320, %308 : vector<24x128xf32>
    %324 = arith.addf %302, %323 : vector<24x128xf32>
    %c23_i32_106 = arith.constant 23 : i32
    %325 = tpu.dynamic_rotate %303 by %c23_i32_106 dim 0 : vector<24x128xf32>, i32 -> vector<24x128xf32>
    %c23_i32_107 = arith.constant 23 : i32
    %326 = tpu.dynamic_rotate %304 by %c23_i32_107 dim 0 : vector<24x128xf32>, i32 -> vector<24x128xf32>
    %327 = arith.subf %0, %325 : vector<24x128xf32>
    %328 = arith.subf %1, %326 : vector<24x128xf32>
    %329 = arith.mulf %327, %327 : vector<24x128xf32>
    %330 = arith.mulf %328, %328 : vector<24x128xf32>
    %331 = arith.addf %329, %330 : vector<24x128xf32>
    %cst_108 = arith.constant 9.99999993E-9 : f32
    %332 = vector.broadcast %cst_108 : f32 to vector<24x128xf32>
    %333 = arith.maximumf %332, %331 : vector<24x128xf32>
    %334 = math.rsqrt %333 : vector<24x128xf32>
    %cst_109 = arith.constant 1.000000e+03 : f32
    %335 = vector.broadcast %cst_109 : f32 to vector<24x128xf32>
    %336 = arith.mulf %335, %334 : vector<24x128xf32>
    %cst_110 = arith.constant 5.000000e+02 : f32
    %337 = vector.broadcast %cst_110 : f32 to vector<24x128xf32>
    %338 = arith.subf %337, %336 : vector<24x128xf32>
    %cst_111 = arith.constant 0.000000e+00 : f32
    %339 = vector.broadcast %cst_111 : f32 to vector<24x128xf32>
    %340 = arith.minimumf %338, %339 : vector<24x128xf32>
    %341 = arith.mulf %340, %327 : vector<24x128xf32>
    %342 = arith.addf %322, %341 : vector<24x128xf32>
    %343 = arith.mulf %340, %328 : vector<24x128xf32>
    %344 = arith.addf %324, %343 : vector<24x128xf32>
    %345 = arith.subf %0, %303 : vector<24x128xf32>
    %346 = arith.subf %1, %304 : vector<24x128xf32>
    %347 = arith.mulf %345, %345 : vector<24x128xf32>
    %348 = arith.mulf %346, %346 : vector<24x128xf32>
    %349 = arith.addf %347, %348 : vector<24x128xf32>
    %cst_112 = arith.constant 9.99999993E-9 : f32
    %350 = vector.broadcast %cst_112 : f32 to vector<24x128xf32>
    %351 = arith.maximumf %350, %349 : vector<24x128xf32>
    %352 = math.rsqrt %351 : vector<24x128xf32>
    %cst_113 = arith.constant 1.000000e+03 : f32
    %353 = vector.broadcast %cst_113 : f32 to vector<24x128xf32>
    %354 = arith.mulf %353, %352 : vector<24x128xf32>
    %cst_114 = arith.constant 5.000000e+02 : f32
    %355 = vector.broadcast %cst_114 : f32 to vector<24x128xf32>
    %356 = arith.subf %355, %354 : vector<24x128xf32>
    %cst_115 = arith.constant 0.000000e+00 : f32
    %357 = vector.broadcast %cst_115 : f32 to vector<24x128xf32>
    %358 = arith.minimumf %356, %357 : vector<24x128xf32>
    %359 = arith.mulf %358, %345 : vector<24x128xf32>
    %360 = arith.addf %342, %359 : vector<24x128xf32>
    %361 = arith.mulf %358, %346 : vector<24x128xf32>
    %362 = arith.addf %344, %361 : vector<24x128xf32>
    %c1_i32_116 = arith.constant 1 : i32
    %363 = tpu.dynamic_rotate %303 by %c1_i32_116 dim 0 : vector<24x128xf32>, i32 -> vector<24x128xf32>
    %c1_i32_117 = arith.constant 1 : i32
    %364 = tpu.dynamic_rotate %304 by %c1_i32_117 dim 0 : vector<24x128xf32>, i32 -> vector<24x128xf32>
    %365 = arith.subf %0, %363 : vector<24x128xf32>
    %366 = arith.subf %1, %364 : vector<24x128xf32>
    %367 = arith.mulf %365, %365 : vector<24x128xf32>
    %368 = arith.mulf %366, %366 : vector<24x128xf32>
    %369 = arith.addf %367, %368 : vector<24x128xf32>
    %cst_118 = arith.constant 9.99999993E-9 : f32
    %370 = vector.broadcast %cst_118 : f32 to vector<24x128xf32>
    %371 = arith.maximumf %370, %369 : vector<24x128xf32>
    %372 = math.rsqrt %371 : vector<24x128xf32>
    %cst_119 = arith.constant 1.000000e+03 : f32
    %373 = vector.broadcast %cst_119 : f32 to vector<24x128xf32>
    %374 = arith.mulf %373, %372 : vector<24x128xf32>
    %cst_120 = arith.constant 5.000000e+02 : f32
    %375 = vector.broadcast %cst_120 : f32 to vector<24x128xf32>
    %376 = arith.subf %375, %374 : vector<24x128xf32>
    %cst_121 = arith.constant 0.000000e+00 : f32
    %377 = vector.broadcast %cst_121 : f32 to vector<24x128xf32>
    %378 = arith.minimumf %376, %377 : vector<24x128xf32>
    %379 = arith.mulf %378, %365 : vector<24x128xf32>
    %380 = arith.addf %360, %379 : vector<24x128xf32>
    %381 = arith.mulf %378, %366 : vector<24x128xf32>
    %382 = arith.addf %362, %381 : vector<24x128xf32>
    %c2_i32_122 = arith.constant 2 : i32
    %383 = tpu.dynamic_rotate %303 by %c2_i32_122 dim 0 : vector<24x128xf32>, i32 -> vector<24x128xf32>
    %c2_i32_123 = arith.constant 2 : i32
    %384 = tpu.dynamic_rotate %304 by %c2_i32_123 dim 0 : vector<24x128xf32>, i32 -> vector<24x128xf32>
    %385 = arith.subf %0, %383 : vector<24x128xf32>
    %386 = arith.subf %1, %384 : vector<24x128xf32>
    %387 = arith.mulf %385, %385 : vector<24x128xf32>
    %388 = arith.mulf %386, %386 : vector<24x128xf32>
    %389 = arith.addf %387, %388 : vector<24x128xf32>
    %cst_124 = arith.constant 9.99999993E-9 : f32
    %390 = vector.broadcast %cst_124 : f32 to vector<24x128xf32>
    %391 = arith.maximumf %390, %389 : vector<24x128xf32>
    %392 = math.rsqrt %391 : vector<24x128xf32>
    %cst_125 = arith.constant 1.000000e+03 : f32
    %393 = vector.broadcast %cst_125 : f32 to vector<24x128xf32>
    %394 = arith.mulf %393, %392 : vector<24x128xf32>
    %cst_126 = arith.constant 5.000000e+02 : f32
    %395 = vector.broadcast %cst_126 : f32 to vector<24x128xf32>
    %396 = arith.subf %395, %394 : vector<24x128xf32>
    %cst_127 = arith.constant 0.000000e+00 : f32
    %397 = vector.broadcast %cst_127 : f32 to vector<24x128xf32>
    %398 = arith.minimumf %396, %397 : vector<24x128xf32>
    %399 = arith.mulf %398, %385 : vector<24x128xf32>
    %400 = arith.addf %380, %399 : vector<24x128xf32>
    %401 = arith.mulf %398, %386 : vector<24x128xf32>
    %402 = arith.addf %382, %401 : vector<24x128xf32>
    %c2_i32_128 = arith.constant 2 : i32
    %403 = tpu.dynamic_rotate %0 by %c2_i32_128 dim 1 : vector<24x128xf32>, i32 -> vector<24x128xf32>
    %c2_i32_129 = arith.constant 2 : i32
    %404 = tpu.dynamic_rotate %1 by %c2_i32_129 dim 1 : vector<24x128xf32>, i32 -> vector<24x128xf32>
    %c22_i32_130 = arith.constant 22 : i32
    %405 = tpu.dynamic_rotate %403 by %c22_i32_130 dim 0 : vector<24x128xf32>, i32 -> vector<24x128xf32>
    %c22_i32_131 = arith.constant 22 : i32
    %406 = tpu.dynamic_rotate %404 by %c22_i32_131 dim 0 : vector<24x128xf32>, i32 -> vector<24x128xf32>
    %407 = arith.subf %0, %405 : vector<24x128xf32>
    %408 = arith.subf %1, %406 : vector<24x128xf32>
    %409 = arith.mulf %407, %407 : vector<24x128xf32>
    %410 = arith.mulf %408, %408 : vector<24x128xf32>
    %411 = arith.addf %409, %410 : vector<24x128xf32>
    %cst_132 = arith.constant 9.99999993E-9 : f32
    %412 = vector.broadcast %cst_132 : f32 to vector<24x128xf32>
    %413 = arith.maximumf %412, %411 : vector<24x128xf32>
    %414 = math.rsqrt %413 : vector<24x128xf32>
    %cst_133 = arith.constant 1.000000e+03 : f32
    %415 = vector.broadcast %cst_133 : f32 to vector<24x128xf32>
    %416 = arith.mulf %415, %414 : vector<24x128xf32>
    %cst_134 = arith.constant 5.000000e+02 : f32
    %417 = vector.broadcast %cst_134 : f32 to vector<24x128xf32>
    %418 = arith.subf %417, %416 : vector<24x128xf32>
    %cst_135 = arith.constant 0.000000e+00 : f32
    %419 = vector.broadcast %cst_135 : f32 to vector<24x128xf32>
    %420 = arith.minimumf %418, %419 : vector<24x128xf32>
    %421 = arith.mulf %420, %407 : vector<24x128xf32>
    %422 = arith.addf %400, %421 : vector<24x128xf32>
    %423 = arith.mulf %420, %408 : vector<24x128xf32>
    %424 = arith.addf %402, %423 : vector<24x128xf32>
    %c23_i32_136 = arith.constant 23 : i32
    %425 = tpu.dynamic_rotate %403 by %c23_i32_136 dim 0 : vector<24x128xf32>, i32 -> vector<24x128xf32>
    %c23_i32_137 = arith.constant 23 : i32
    %426 = tpu.dynamic_rotate %404 by %c23_i32_137 dim 0 : vector<24x128xf32>, i32 -> vector<24x128xf32>
    %427 = arith.subf %0, %425 : vector<24x128xf32>
    %428 = arith.subf %1, %426 : vector<24x128xf32>
    %429 = arith.mulf %427, %427 : vector<24x128xf32>
    %430 = arith.mulf %428, %428 : vector<24x128xf32>
    %431 = arith.addf %429, %430 : vector<24x128xf32>
    %cst_138 = arith.constant 9.99999993E-9 : f32
    %432 = vector.broadcast %cst_138 : f32 to vector<24x128xf32>
    %433 = arith.maximumf %432, %431 : vector<24x128xf32>
    %434 = math.rsqrt %433 : vector<24x128xf32>
    %cst_139 = arith.constant 1.000000e+03 : f32
    %435 = vector.broadcast %cst_139 : f32 to vector<24x128xf32>
    %436 = arith.mulf %435, %434 : vector<24x128xf32>
    %cst_140 = arith.constant 5.000000e+02 : f32
    %437 = vector.broadcast %cst_140 : f32 to vector<24x128xf32>
    %438 = arith.subf %437, %436 : vector<24x128xf32>
    %cst_141 = arith.constant 0.000000e+00 : f32
    %439 = vector.broadcast %cst_141 : f32 to vector<24x128xf32>
    %440 = arith.minimumf %438, %439 : vector<24x128xf32>
    %441 = arith.mulf %440, %427 : vector<24x128xf32>
    %442 = arith.addf %422, %441 : vector<24x128xf32>
    %443 = arith.mulf %440, %428 : vector<24x128xf32>
    %444 = arith.addf %424, %443 : vector<24x128xf32>
    %445 = arith.subf %0, %403 : vector<24x128xf32>
    %446 = arith.subf %1, %404 : vector<24x128xf32>
    %447 = arith.mulf %445, %445 : vector<24x128xf32>
    %448 = arith.mulf %446, %446 : vector<24x128xf32>
    %449 = arith.addf %447, %448 : vector<24x128xf32>
    %cst_142 = arith.constant 9.99999993E-9 : f32
    %450 = vector.broadcast %cst_142 : f32 to vector<24x128xf32>
    %451 = arith.maximumf %450, %449 : vector<24x128xf32>
    %452 = math.rsqrt %451 : vector<24x128xf32>
    %cst_143 = arith.constant 1.000000e+03 : f32
    %453 = vector.broadcast %cst_143 : f32 to vector<24x128xf32>
    %454 = arith.mulf %453, %452 : vector<24x128xf32>
    %cst_144 = arith.constant 5.000000e+02 : f32
    %455 = vector.broadcast %cst_144 : f32 to vector<24x128xf32>
    %456 = arith.subf %455, %454 : vector<24x128xf32>
    %cst_145 = arith.constant 0.000000e+00 : f32
    %457 = vector.broadcast %cst_145 : f32 to vector<24x128xf32>
    %458 = arith.minimumf %456, %457 : vector<24x128xf32>
    %459 = arith.mulf %458, %445 : vector<24x128xf32>
    %460 = arith.addf %442, %459 : vector<24x128xf32>
    %461 = arith.mulf %458, %446 : vector<24x128xf32>
    %462 = arith.addf %444, %461 : vector<24x128xf32>
    %c1_i32_146 = arith.constant 1 : i32
    %463 = tpu.dynamic_rotate %403 by %c1_i32_146 dim 0 : vector<24x128xf32>, i32 -> vector<24x128xf32>
    %c1_i32_147 = arith.constant 1 : i32
    %464 = tpu.dynamic_rotate %404 by %c1_i32_147 dim 0 : vector<24x128xf32>, i32 -> vector<24x128xf32>
    %465 = arith.subf %0, %463 : vector<24x128xf32>
    %466 = arith.subf %1, %464 : vector<24x128xf32>
    %467 = arith.mulf %465, %465 : vector<24x128xf32>
    %468 = arith.mulf %466, %466 : vector<24x128xf32>
    %469 = arith.addf %467, %468 : vector<24x128xf32>
    %cst_148 = arith.constant 9.99999993E-9 : f32
    %470 = vector.broadcast %cst_148 : f32 to vector<24x128xf32>
    %471 = arith.maximumf %470, %469 : vector<24x128xf32>
    %472 = math.rsqrt %471 : vector<24x128xf32>
    %cst_149 = arith.constant 1.000000e+03 : f32
    %473 = vector.broadcast %cst_149 : f32 to vector<24x128xf32>
    %474 = arith.mulf %473, %472 : vector<24x128xf32>
    %cst_150 = arith.constant 5.000000e+02 : f32
    %475 = vector.broadcast %cst_150 : f32 to vector<24x128xf32>
    %476 = arith.subf %475, %474 : vector<24x128xf32>
    %cst_151 = arith.constant 0.000000e+00 : f32
    %477 = vector.broadcast %cst_151 : f32 to vector<24x128xf32>
    %478 = arith.minimumf %476, %477 : vector<24x128xf32>
    %479 = arith.mulf %478, %465 : vector<24x128xf32>
    %480 = arith.addf %460, %479 : vector<24x128xf32>
    %481 = arith.mulf %478, %466 : vector<24x128xf32>
    %482 = arith.addf %462, %481 : vector<24x128xf32>
    %c2_i32_152 = arith.constant 2 : i32
    %483 = tpu.dynamic_rotate %403 by %c2_i32_152 dim 0 : vector<24x128xf32>, i32 -> vector<24x128xf32>
    %c2_i32_153 = arith.constant 2 : i32
    %484 = tpu.dynamic_rotate %404 by %c2_i32_153 dim 0 : vector<24x128xf32>, i32 -> vector<24x128xf32>
    %485 = arith.subf %0, %483 : vector<24x128xf32>
    %486 = arith.subf %1, %484 : vector<24x128xf32>
    %487 = arith.mulf %485, %485 : vector<24x128xf32>
    %488 = arith.mulf %486, %486 : vector<24x128xf32>
    %489 = arith.addf %487, %488 : vector<24x128xf32>
    %cst_154 = arith.constant 9.99999993E-9 : f32
    %490 = vector.broadcast %cst_154 : f32 to vector<24x128xf32>
    %491 = arith.maximumf %490, %489 : vector<24x128xf32>
    %492 = math.rsqrt %491 : vector<24x128xf32>
    %cst_155 = arith.constant 1.000000e+03 : f32
    %493 = vector.broadcast %cst_155 : f32 to vector<24x128xf32>
    %494 = arith.mulf %493, %492 : vector<24x128xf32>
    %cst_156 = arith.constant 5.000000e+02 : f32
    %495 = vector.broadcast %cst_156 : f32 to vector<24x128xf32>
    %496 = arith.subf %495, %494 : vector<24x128xf32>
    %cst_157 = arith.constant 0.000000e+00 : f32
    %497 = vector.broadcast %cst_157 : f32 to vector<24x128xf32>
    %498 = arith.minimumf %496, %497 : vector<24x128xf32>
    %499 = arith.mulf %498, %485 : vector<24x128xf32>
    %500 = arith.addf %480, %499 : vector<24x128xf32>
    %501 = arith.mulf %498, %486 : vector<24x128xf32>
    %502 = arith.addf %482, %501 : vector<24x128xf32>
    %cst_158 = arith.constant 0.00999999977 : f32
    %503 = vector.broadcast %cst_158 : f32 to vector<24x128xf32>
    %504 = arith.cmpf ogt, %1, %503 : vector<24x128xf32>
    %cst_159 = arith.constant 1.000000e+00 : f32
    %505 = vector.broadcast %cst_159 : f32 to vector<24x128xf32>
    %506 = arith.cmpf olt, %1, %505 : vector<24x128xf32>
    %507 = arith.andi %504, %506 : vector<24x128xi1>
    %cst_160 = arith.constant 5.000000e+02 : f32
    %508 = vector.broadcast %cst_160 : f32 to vector<24x128xf32>
    %509 = arith.mulf %508, %4 : vector<24x128xf32>
    %cst_161 = arith.constant 1.000000e+00 : f32
    %510 = vector.broadcast %cst_161 : f32 to vector<24x128xf32>
    %511 = arith.subf %510, %1 : vector<24x128xf32>
    %512 = arith.mulf %509, %511 : vector<24x128xf32>
    %cst_162 = arith.constant 0.000000e+00 : f32
    %513 = vector.broadcast %cst_162 : f32 to vector<24x128xf32>
    %514 = arith.select %507, %512, %513 : vector<24x128xi1>, vector<24x128xf32>
    %cst_163 = arith.constant 1.900000e+01 : f32
    %515 = vector.broadcast %cst_163 : f32 to vector<24x128xf32>
    %516 = arith.cmpf ogt, %1, %515 : vector<24x128xf32>
    %cst_164 = arith.constant 2.000000e+01 : f32
    %517 = vector.broadcast %cst_164 : f32 to vector<24x128xf32>
    %518 = arith.cmpf olt, %1, %517 : vector<24x128xf32>
    %519 = arith.andi %516, %518 : vector<24x128xi1>
    %cst_165 = arith.constant -5.000000e+02 : f32
    %520 = vector.broadcast %cst_165 : f32 to vector<24x128xf32>
    %521 = arith.mulf %520, %4 : vector<24x128xf32>
    %cst_166 = arith.constant 1.000000e+00 : f32
    %522 = vector.broadcast %cst_166 : f32 to vector<24x128xf32>
    %523 = arith.addf %1, %522 : vector<24x128xf32>
    %cst_167 = arith.constant 2.000000e+01 : f32
    %524 = vector.broadcast %cst_167 : f32 to vector<24x128xf32>
    %525 = arith.subf %523, %524 : vector<24x128xf32>
    %526 = arith.mulf %521, %525 : vector<24x128xf32>
    %cst_168 = arith.constant 0.000000e+00 : f32
    %527 = vector.broadcast %cst_168 : f32 to vector<24x128xf32>
    %528 = arith.select %519, %526, %527 : vector<24x128xi1>, vector<24x128xf32>
    %cst_169 = arith.constant 0.00999999977 : f32
    %529 = vector.broadcast %cst_169 : f32 to vector<24x128xf32>
    %530 = arith.cmpf ogt, %0, %529 : vector<24x128xf32>
    %cst_170 = arith.constant 1.000000e+00 : f32
    %531 = vector.broadcast %cst_170 : f32 to vector<24x128xf32>
    %532 = arith.cmpf olt, %0, %531 : vector<24x128xf32>
    %533 = arith.andi %530, %532 : vector<24x128xi1>
    %cst_171 = arith.constant 5.000000e+02 : f32
    %534 = vector.broadcast %cst_171 : f32 to vector<24x128xf32>
    %535 = arith.mulf %534, %4 : vector<24x128xf32>
    %cst_172 = arith.constant 1.000000e+00 : f32
    %536 = vector.broadcast %cst_172 : f32 to vector<24x128xf32>
    %537 = arith.subf %536, %0 : vector<24x128xf32>
    %538 = arith.mulf %535, %537 : vector<24x128xf32>
    %cst_173 = arith.constant 0.000000e+00 : f32
    %539 = vector.broadcast %cst_173 : f32 to vector<24x128xf32>
    %540 = arith.select %533, %538, %539 : vector<24x128xi1>, vector<24x128xf32>
    %cst_174 = arith.constant 1.900000e+01 : f32
    %541 = vector.broadcast %cst_174 : f32 to vector<24x128xf32>
    %542 = arith.cmpf ogt, %0, %541 : vector<24x128xf32>
    %cst_175 = arith.constant 2.000000e+01 : f32
    %543 = vector.broadcast %cst_175 : f32 to vector<24x128xf32>
    %544 = arith.cmpf olt, %0, %543 : vector<24x128xf32>
    %545 = arith.andi %542, %544 : vector<24x128xi1>
    %cst_176 = arith.constant -5.000000e+02 : f32
    %546 = vector.broadcast %cst_176 : f32 to vector<24x128xf32>
    %547 = arith.mulf %546, %4 : vector<24x128xf32>
    %cst_177 = arith.constant 1.000000e+00 : f32
    %548 = vector.broadcast %cst_177 : f32 to vector<24x128xf32>
    %549 = arith.addf %0, %548 : vector<24x128xf32>
    %cst_178 = arith.constant 2.000000e+01 : f32
    %550 = vector.broadcast %cst_178 : f32 to vector<24x128xf32>
    %551 = arith.subf %549, %550 : vector<24x128xf32>
    %552 = arith.mulf %547, %551 : vector<24x128xf32>
    %cst_179 = arith.constant 0.000000e+00 : f32
    %553 = vector.broadcast %cst_179 : f32 to vector<24x128xf32>
    %554 = arith.select %545, %552, %553 : vector<24x128xi1>, vector<24x128xf32>
    %555 = arith.addf %540, %554 : vector<24x128xf32>
    %556 = arith.mulf %500, %4 : vector<24x128xf32>
    %557 = arith.addf %555, %556 : vector<24x128xf32>
    %cst_180 = arith.constant 1.000000e-03 : f32
    %558 = vector.broadcast %cst_180 : f32 to vector<24x128xf32>
    %559 = arith.mulf %558, %557 : vector<24x128xf32>
    %560 = arith.subf %2, %559 : vector<24x128xf32>
    %561 = arith.addf %528, %514 : vector<24x128xf32>
    %562 = arith.mulf %502, %4 : vector<24x128xf32>
    %563 = arith.subf %561, %562 : vector<24x128xf32>
    %cst_181 = arith.constant 1.000000e-03 : f32
    %564 = vector.broadcast %cst_181 : f32 to vector<24x128xf32>
    %565 = arith.mulf %564, %563 : vector<24x128xf32>
    %566 = arith.addf %3, %565 : vector<24x128xf32>
    %cst_182 = arith.constant 1.000000e-03 : f32
    %567 = vector.broadcast %cst_182 : f32 to vector<24x128xf32>
    %568 = arith.mulf %567, %560 : vector<24x128xf32>
    %569 = arith.addf %0, %568 : vector<24x128xf32>
    %c0_183 = arith.constant 0 : index
    %c0_184 = arith.constant 0 : index
    %570 = vector.load %arg5[%c0_183, %c0_184] : memref<24x128xf32, #tpu.memory_space<vmem>>, vector<24x128xf32>
    tpu.vector_store %arg5[%c0_183, %c0_184], %569 {strides = array<i32>} : memref<24x128xf32, #tpu.memory_space<vmem>>, vector<24x128xf32>,
    %cst_185 = arith.constant 1.000000e-03 : f32
    %571 = vector.broadcast %cst_185 : f32 to vector<24x128xf32>
    %572 = arith.mulf %571, %566 : vector<24x128xf32>
    %573 = arith.addf %1, %572 : vector<24x128xf32>
    %c0_186 = arith.constant 0 : index
    %c0_187 = arith.constant 0 : index
    %574 = vector.load %arg6[%c0_186, %c0_187] : memref<24x128xf32, #tpu.memory_space<vmem>>, vector<24x128xf32>
    tpu.vector_store %arg6[%c0_186, %c0_187], %573 {strides = array<i32>} : memref<24x128xf32, #tpu.memory_space<vmem>>, vector<24x128xf32>,
    %c0_188 = arith.constant 0 : index
    %c0_189 = arith.constant 0 : index
    %575 = vector.load %arg7[%c0_188, %c0_189] : memref<24x128xf32, #tpu.memory_space<vmem>>, vector<24x128xf32>
    tpu.vector_store %arg7[%c0_188, %c0_189], %560 {strides = array<i32>} : memref<24x128xf32, #tpu.memory_space<vmem>>, vector<24x128xf32>,
    %c0_190 = arith.constant 0 : index
    %c0_191 = arith.constant 0 : index
    %576 = vector.load %arg8[%c0_190, %c0_191] : memref<24x128xf32, #tpu.memory_space<vmem>>, vector<24x128xf32>
    tpu.vector_store %arg8[%c0_190, %c0_191], %566 {strides = array<i32>} : memref<24x128xf32, #tpu.memory_space<vmem>>, vector<24x128xf32>,
    return
  }
}

</mosaic_0001>

<bundles_post_ra>
// kernel: ai4dem_forward.1
= control target key start
LH: loop header
LB: loop body
LE: loop exit
PB: predicated region body
PF: predicated region fallthrough
CT: control target
= control target key end

     0   :  { %s2388_s19 = smov 126   ;;  %s2389_s26 = smov 127   ;;  %v80_v9 = vlaneseq  ;;  %s6371_s1 = inlined_call_operand.vmem [shape: f32[24,128], index: 1, kind: input, shape index: {}, may-alias: {1,6}]   ;;  %s6372_s0 = inlined_call_operand.vmem [shape: f32[24,128], index: 0, kind: input, shape index: {}, may-alias: {0,5}]   ;;  %s6373_s4 = inlined_call_operand.vmem [shape: f32[24,128], index: 4, kind: input, shape index: {}]   ;;  %s6374_s2 = inlined_call_operand.vmem [shape: f32[24,128], index: 2, kind: input, shape index: {}, may-alias: {2,7}]   ;;  %s6375_s3 = inlined_call_operand.vmem [shape: f32[24,128], index: 3, kind: input, shape index: {}, may-alias: {3,8}]   ;;  %s6376_s7 = inlined_call_operand.vmem [shape: f32[24,128], index: 7, kind: output, shape index: {2}, may-alias: {2,7}]   ;;  %s6377_s8 = inlined_call_operand.vmem [shape: f32[24,128], index: 8, kind: output, shape index: {3}, may-alias: {3,8}]   ;;  %s6378_s5 = inlined_call_operand.vmem [shape: f32[24,128], index: 5, kind: output, shape index: {0}, may-alias: {0,5}]   ;;  %s6379_s6 = inlined_call_operand.vmem [shape: f32[24,128], index: 6, kind: output, shape index: {1}, may-alias: {1,6}]   ;;  %s6380_s9 = inlined_call_operand.vmem [shape: s32[24,128], index: 9, kind: output, shape index: {4}]   ;;  %s6381_s10 = inlined_call_operand.vmem [shape: s32[24,128], index: 10, kind: output, shape index: {5}]  }
   0x1   :  { %v2450_v0 = vld [vmem:[%s6371_s1 + $0x8] sm:$0xff]  ;;  %v2455_v1 = vld [vmem:[%s6372_s0 + $0x10] sm:$0xff]  ;;  %v2460_v2 = vld [vmem:[%s6372_s0] sm:$0xff]  ;;  %s2390_s27 = smov 1   ;;  %s2391_s28 = smov 2  }
   0x2   :  { %73 = vrot.lane.b32.xlu2 %v2450_v0, %s2388_s19  ;;  %69 = vrot.lane.b32.xlu1 %v2455_v1, %s2388_s19  ;;  %v2468_v3 = vld [vmem:[%s6371_s1 + $0x10] sm:$0xff]  ;;  %v2473_v4 = vld [vmem:[%s6371_s1] sm:$0xff]  ;;  %v2511_v11 = vshrl.u32 %v80_v9, 7 }
   0x3   :  { %65 = vrot.lane.b32.xlu0 %v2460_v2, %s2388_s19  ;;  %v2478_v5 = vld [vmem:[%s6372_s0 + $0x8] sm:$0xff] }
   0x4   :  { %vm6497_vm0 = vcmp.lt.s32.totalorder %v2511_v11, 6  ;;  %vm6496_vm1 = vcmp.lt.s32.totalorder %v2511_v11, 7  ;;  %vm6495_vm2 = vcmp.lt.s32.totalorder %v2511_v11, 1  ;;  %vm6494_vm3 = vcmp.lt.s32.totalorder %v2511_v11, 2 }
   0xa   :  { %75 = vrot.lane.b32.xlu2 %v2468_v3, %s2388_s19  ;;  %71 = vrot.lane.b32.xlu1 %v2473_v4, %s2388_s19 }
   0xb   :  { %67 = vrot.lane.b32.xlu0 %v2478_v5, %s2388_s19 }
  0x12   :  { %480 = vrot.lane.b32.xlu2 %v2455_v1, %s2389_s26  ;;  %478 = vrot.lane.b32.xlu1 %v2478_v5, %s2389_s26 }
  0x13   :  { %476 = vrot.lane.b32.xlu0 %v2460_v2, %s2389_s26 }
  0x1a   :  { %486 = vrot.lane.b32.xlu2 %v2468_v3, %s2389_s26  ;;  %484 = vrot.lane.b32.xlu1 %v2450_v0, %s2389_s26 }
  0x1b   :  { %482 = vrot.lane.b32.xlu0 %v2473_v4, %s2389_s26 }
  0x22   :  { %1209 = vrot.lane.b32.xlu2 %v2455_v1, %s2390_s27  ;;  %1207 = vrot.lane.b32.xlu1 %v2478_v5, %s2390_s27 }
  0x23   :  { %1205 = vrot.lane.b32.xlu0 %v2460_v2, %s2390_s27 }
  0x2a   :  { %1215 = vrot.lane.b32.xlu2 %v2468_v3, %s2390_s27  ;;  %1213 = vrot.lane.b32.xlu1 %v2450_v0, %s2390_s27 }
  0x2b   :  { %1211 = vrot.lane.b32.xlu0 %v2473_v4, %s2390_s27 }
  0x32   :  { %1614 = vrot.lane.b32.xlu2 %v2455_v1, %s2391_s28  ;;  %1612 = vrot.lane.b32.xlu1 %v2478_v5, %s2391_s28 }
  0x33   :  { %1610 = vrot.lane.b32.xlu0 %v2460_v2, %s2391_s28 }
  0x3a   :  { %1620 = vrot.lane.b32.xlu2 %v2468_v3, %s2391_s28  ;;  %1618 = vrot.lane.b32.xlu1 %v2450_v0, %s2391_s28 }
  0x3b   :  { %1616 = vrot.lane.b32.xlu0 %v2473_v4, %s2391_s28 }
  0x5c   :  { %v2501_v6 = vpop.permute.xlu2 %73 }
  0x5d   :  { %v87_v19 = vrot.slane %v2501_v6, 2  ;;  %v6393_v23 = vrot.slane %v2501_v6, 1  ;;  %v6387_v26 = vrot.slane %v2501_v6, 7  ;;  %v6385_v27 = vrot.slane %v2501_v6, 6 }
  0x5e   :  { %v2569_v40 = vsub.f32 %v2450_v0, %v2501_v6 }
  0x60   :  { %6508 = vst [vmem:[#allocation4_spill] sm:$0xff] %v2569_v40  ;;  %v2617_v54 = vmul.f32 %v2569_v40, %v2569_v40  ;;  %v6517_v40 = vrot.slane %v2501_v6, 1 }
  0x64   :  { %v2503_v7 = vpop.permute.xlu2 %75 }
  0x65   :  { %v2515_v12 = vsub.f32 %v2468_v3, %v2503_v7  ;;  %v88_v20 = vrot.slane %v2503_v7, 2  ;;  %v170_v24 = vrot.slane %v2503_v7, 1  ;;  %v321_v28 = vrot.slane %v2503_v7, 7 }
  0x66   :  { %v403_v30 = vrot.slane %v2503_v7, 6 }
  0x67   :  { %v254_v17 = vmul.f32 %v2515_v12, %v2515_v12  ;;  %v89_v34 = vsel %vm6497_vm0, %v87_v19, %v88_v20  ;;  %v171_v38 = vsel %vm6496_vm1, %v6393_v23, %v170_v24  ;;  %v322_v41 = vsel %vm6495_vm2, %v6387_v26, %v321_v28 }
  0x68   :  { %v2579_v43 = vsub.f32 %v2450_v0, %v89_v34  ;;  %v404_v44 = vsel %vm6494_vm3, %v6385_v27, %v403_v30  ;;  %v2595_v46 = vsub.f32 %v2450_v0, %v171_v38  ;;  %v2620_v55 = vsub.f32 %v2468_v3, %v322_v41 }
  0x69   :  { %v2623_v56 = vsub.f32 %v2468_v3, %v404_v44 }
  0x6a   :  { %6509 = vst [vmem:[#allocation5_spill] sm:$0xff] %v2579_v43  ;;  %v2630_v58 = vmul.f32 %v2579_v43, %v2579_v43  ;;  %v2645_v63 = vmul.f32 %v2595_v46, %v2595_v46 }
  0x6b   :  { %6510 = vst [vmem:[#allocation6_spill] sm:$0xff] %v2595_v46 }
  0x6c   :  { %v2505_v8 = vpop.permute.xlu2 %480  ;;  %6511 = vst [vmem:[#allocation7_spill] sm:$0xff] %v2620_v55 }
  0x6d   :  { %6506 = vst [vmem:[#allocation2_spill] sm:$0xff] %v2505_v8  ;;  %v2509_v10 = vsub.f32 %v2455_v1, %v2505_v8 }
  0x6e   :  { %6512 = vst [vmem:[#allocation8_spill] sm:$0xff] %v2623_v56 }
  0x6f   :  { %v658_v15 = vmul.f32 %v2509_v10, %v2509_v10 }
  0x74   :  { %v2517_v13 = vpop.permute.xlu2 %486  ;;  %v2519_v14 = vpop.permute.xlu1 %69 }
  0x75   :  { %6507 = vst [vmem:[#allocation3_spill] sm:$0xff] %v2517_v13  ;;  %v2525_v16 = vsub.f32 %v2468_v3, %v2517_v13  ;;  %v2533_v18 = vsub.f32 %v2455_v1, %v2519_v14  ;;  %v2540_v22 = vpop.permute.xlu0 %65  ;;  %v79_v31 = vrot.slane %v2519_v14, 2  ;;  %v6384_v36 = vrot.slane %v2519_v14, 1 }
  0x76   :  { %v77_v33 = vrot.slane %v2540_v22, 2  ;;  %v6386_v37 = vrot.slane %v2540_v22, 1  ;;  %v6383_v47 = vrot.slane %v2519_v14, 7  ;;  %v2606_v49 = vsub.f32 %v2460_v2, %v2540_v22 }
  0x77   :  { %v661_v21 = vmul.f32 %v2525_v16, %v2525_v16  ;;  %v251_v25 = vmul.f32 %v2533_v18, %v2533_v18  ;;  %v6382_v50 = vrot.slane %v2540_v22, 7  ;;  %v6389_v38 = vrot.slane %v2540_v22, 6 }
  0x78   :  { %v85_v45 = vsel %vm6497_vm0, %v79_v31, %v77_v33  ;;  %v167_v48 = vsel %vm6496_vm1, %v6384_v36, %v6386_v37 }
  0x79   :  { %v664_v29 = vadd.f32 %v661_v21, %v658_v15  ;;  %v257_v32 = vadd.f32 %v254_v17, %v251_v25  ;;  %v2626_v57 = vsub.f32 %v2455_v1, %v85_v45  ;;  %v2633_v59 = vsub.f32 %v2455_v1, %v167_v48 }
  0x7a   :  { %v318_v25 = vsel %vm6495_vm2, %v6383_v47, %v6382_v50 }
  0x7b   :  { %v2557_v35 = vmax.f32 %v664_v29, 1e-08  ;;  %v2565_v39 = vmax.f32 %v257_v32, 1e-08  ;;  %v6390_v32 = vrot.slane %v2519_v14, 6  ;;  %v100_v34 = vmul.f32 %v2626_v57, %v2626_v57 }
  0x7c   :  { %v2576_v42 = vpop.permute.xlu1 %71  ;;  %v182_v45 = vmul.f32 %v2633_v59, %v2633_v59  ;;  %v2682_v50 = vsub.f32 %v2460_v2, %v318_v25  ;;  %v2702_v25 = vmul.f32 %v2623_v56, %v2623_v56  ;;  %v2792_v23 = vpop.permute.xlu2 %1209 }
  0x7d   :  { %2223 = vrsqrt.f32 %v2557_v35  ;;  %v86_v51 = vrot.slane %v2576_v42, 2  ;;  %v6388_v52 = vrot.slane %v2576_v42, 1  ;;  %v2613_v53 = vsub.f32 %v2473_v4, %v2576_v42  ;;  %v2688_v27 = vpop.permute.xlu0 %67  ;;  %6516 = vst [vmem:[#allocation10_spill] sm:$0xff] %v2792_v23 }
  0x7e   :  { %2225 = vrsqrt.f32 %v2565_v39  ;;  %v6391_v17 = vrot.slane %v2576_v42, 7  ;;  %vm694_vm4 = vweird.f32 %v2557_v35  ;;  %vm287_vm8 = vweird.f32 %v2565_v39 }
  0x7f   :  { %v91_v60 = vsel %vm6497_vm0, %v88_v20, %v86_v51  ;;  %v173_v61 = vsel %vm6496_vm1, %v170_v24, %v6388_v52  ;;  %v249_v24 = vmul.f32 %v2606_v49, %v2606_v49  ;;  %v252_v29 = vmul.f32 %v2613_v53, %v2613_v53 }
  0x80   :  { %v2648_v9 = vsub.f32 %v2468_v3, %v91_v60  ;;  %v2651_v15 = vsub.f32 %v2468_v3, %v173_v61  ;;  %v324_v36 = vsel %vm6495_vm2, %v321_v28, %v6391_v17  ;;  %v400_v28 = vsel %vm6494_vm3, %v6390_v32, %v6389_v38 }
  0x81   :  { %v255_v60 = vadd.f32 %v252_v29, %v249_v24  ;;  %v2693_v52 = vsub.f32 %v2473_v4, %v324_v36  ;;  %v6392_v24 = vrot.slane %v2576_v42, 6 }
  0x82   :  { %v103_v41 = vmul.f32 %v2648_v9, %v2648_v9  ;;  %v185_v48 = vmul.f32 %v2651_v15, %v2651_v15 }
  0x83   :  { %v2641_v62 = vpop.eup %2223  ;;  %v2690_v26 = vmax.f32 %v255_v60, 1e-08  ;;  %v334_v60 = vmul.f32 %v2693_v52, %v2693_v52 }
  0x84   :  { %v2654_v20 = vpop.eup %2225  ;;  %v689_v21 = vmul.f32 %v2641_v62, %v2557_v35  ;;  %v106_v47 = vadd.f32 %v103_v41, %v100_v34  ;;  %v188_v37 = vadd.f32 %v185_v48, %v182_v45  ;;  %v78_v41 = vrot.slane %v2688_v27, 2 }
  0x85   :  { %v282_v44 = vmul.f32 %v2654_v20, %v2565_v39  ;;  %2227 = vrsqrt.f32 %v2690_v26  ;;  %v331_v48 = vmul.f32 %v2682_v50, %v2682_v50  ;;  %vm695_vm5 = vweird.f32 %v2641_v62 }
  0x86   :  { %v690_v61 = vmul.f32 %v2641_v62, %v689_v21  ;;  %v2698_v21 = vmul.f32 %v2620_v55, %v2620_v55  ;;  %v2710_v29 = vmax.f32 %v106_v47, 1e-08  ;;  %v2713_v34 = vmax.f32 %v188_v37, 1e-08  ;;  %vm2787_vm6 = vmor %vm694_vm4, %vm695_vm5 }
  0x87   :  { %v283_v36 = vmul.f32 %v2654_v20, %v282_v44  ;;  %v90_v37 = vsel %vm6497_vm0, %v86_v51, %v87_v19  ;;  %v406_v44 = vsel %vm6494_vm3, %v403_v30, %v6392_v24  ;;  %v337_v32 = vadd.f32 %v334_v60, %v331_v48 }
  0x88   :  { %v691_v45 = vmul.f32 0.5, %v690_v61  ;;  %2229 = vrsqrt.f32 %v2710_v29  ;;  %v2737_v47 = vsub.f32 %v2473_v4, %v406_v44  ;;  %v2741_v51 = vsub.f32 %v2460_v2, %v400_v28 }
  0x89   :  { %2231 = vrsqrt.f32 %v2713_v34  ;;  %v284_v19 = vmul.f32 0.5, %v283_v36  ;;  %v84_v7 = vsel %vm6497_vm0, %v77_v33, %v78_v41  ;;  %v2749_v38 = vsub.f32 %v2473_v4, %v90_v37 }
  0x8a   :  { %v692_v61 = vsub.f32 1.5, %v691_v45  ;;  %v2751_v48 = vmax.f32 %v337_v32, 1e-08  ;;  %v416_v28 = vmul.f32 %v2737_v47, %v2737_v47  ;;  %v83_v33 = vsel %vm6497_vm0, %v78_v41, %v79_v31 }
  0x8b   :  { %v2753_v60 = vpop.eup %2227  ;;  %v2763_v44 = vsub.f32 %v2460_v2, %v84_v7  ;;  %v285_v30 = vsub.f32 1.5, %v284_v19  ;;  %v413_v31 = vmul.f32 %v2741_v51, %v2741_v51  ;;  %v101_v7 = vmul.f32 %v2749_v38, %v2749_v38 }
  0x8c   :  { %v262_v32 = vmul.f32 %v2753_v60, %v2690_v26  ;;  %2233 = vrsqrt.f32 %v2751_v48  ;;  %v693_v35 = vmul.f32 %v2641_v62, %v692_v61  ;;  %v2785_v24 = vsub.f32 %v2478_v5, %v83_v33 }
  0x8d   :  { %v419_v61 = vadd.f32 %v416_v28, %v413_v31  ;;  %v98_v55 = vmul.f32 %v2763_v44, %v2763_v44  ;;  %v6518_v33 = vrot.slane %v2576_v42, 1  ;;  %v286_v13 = vmul.f32 %v2654_v20, %v285_v30 }
  0x8e   :  { %v2765_v45 = vpop.eup %2229  ;;  %6513 = vst [vmem:[#allocation9_spill] sm:$0xff] %v2785_v24  ;;  %v263_v19 = vmul.f32 %v2753_v60, %v262_v32  ;;  %vm288_vm7 = vweird.f32 %v2654_v20  ;;  %v697_v8 = vsel %vm2787_vm6, %v2641_v62, %v693_v35  ;;  %vm136_vm11 = vweird.f32 %v2710_v29 }
  0x8f   :  { %v2772_v37 = vpop.eup %2231  ;;  %v131_v41 = vmul.f32 %v2765_v45, %v2710_v29  ;;  %v172_v46 = vsel %vm6496_vm1, %v6518_v33, %v6517_v40  ;;  %v2808_v31 = vmax.f32 %v419_v61, 1e-08  ;;  %v99_v40 = vmul.f32 %v2785_v24, %v2785_v24  ;;  %vm2823_vm9 = vmor %vm287_vm8, %vm288_vm7 }
  0x90   :  { %v213_v17 = vmul.f32 %v2772_v37, %v2713_v34  ;;  %v104_v33 = vadd.f32 %v101_v7, %v98_v55  ;;  %v264_v62 = vmul.f32 0.5, %v263_v19  ;;  %v700_v35 = vmul.f32 1000.0, %v697_v8 }
  0x91   :  { %v132_v56 = vmul.f32 %v2765_v45, %v131_v41  ;;  %2235 = vrsqrt.f32 %v2808_v31  ;;  %v105_v55 = vadd.f32 %v2630_v58, %v99_v40  ;;  %v290_v39 = vsel %vm2823_vm9, %v2654_v20, %v286_v13 }
  0x92   :  { %v214_v43 = vmul.f32 %v2772_v37, %v213_v17  ;;  %v2810_v41 = vpop.eup %2233  ;;  %v162_v17 = vrot.slane %v2688_v27, 1  ;;  %v6523_v7 = vrot.slane %v2501_v6, 7  ;;  %v6524_v19 = vrot.slane %v2576_v42, 7 }
  0x93   :  { %v133_v28 = vmul.f32 0.5, %v132_v56  ;;  %v2821_v56 = vsub.f32 %v2473_v4, %v172_v46  ;;  %v344_v4 = vmul.f32 %v2810_v41, %v2751_v48  ;;  %v2834_v46 = vmax.f32 %v104_v33, 1e-08 }
  0x94   :  { %v215_v32 = vmul.f32 0.5, %v214_v43  ;;  %v2838_v43 = vsub.f32 %v2455_v1, %v2792_v23  ;;  %v323_v8 = vsel %vm6495_vm2, %v6524_v19, %v6523_v7  ;;  %v2846_v58 = vmax.f32 %v105_v55, 1e-08 }
  0x95   :  { %6519 = vst [vmem:[#allocation11_spill] sm:$0xff] %v2821_v56  ;;  %v134_v36 = vsub.f32 1.5, %v133_v28  ;;  %v6525_v13 = vrot.slane %v2540_v22, 1  ;;  %v183_v28 = vmul.f32 %v2821_v56, %v2821_v56  ;;  %v6526_v33 = vrot.slane %v2501_v6, 6 }
  0x96   :  { %6522 = vst [vmem:[#allocation12_spill] sm:$0xff] %v2838_v43  ;;  %v216_v40 = vsub.f32 1.5, %v215_v32  ;;  %v6527_v61 = vrot.slane %v2576_v42, 6  ;;  %v6528_v7 = vrot.slane %v2519_v14, 1  ;;  %v293_v19 = vmul.f32 1000.0, %v290_v39 }
  0x97   :  { %v166_v20 = vsel %vm6496_vm1, %v6525_v13, %v162_v17  ;;  %v135_v24 = vmul.f32 %v2765_v45, %v134_v36  ;;  %vm137_vm10 = vweird.f32 %v2765_v45  ;;  %v265_v13 = vsub.f32 1.5, %v264_v62  ;;  %v2871_v42 = vpop.eup %2235 }
  0x98   :  { %v405_v30 = vsel %vm6494_vm3, %v6527_v61, %v6526_v33  ;;  %v165_v55 = vsel %vm6496_vm1, %v162_v17, %v6528_v7  ;;  %v703_v56 = vsub.f32 500.0, %v700_v35  ;;  %v345_v32 = vmul.f32 %v2810_v41, %v344_v4  ;;  %vm2881_vm12 = vmor %vm136_vm11, %vm137_vm10 }
  0x99   :  { %2237 = vrsqrt.f32 %v2834_v46  ;;  %v2869_v6 = vsub.f32 %v2460_v2, %v166_v20  ;;  %v2875_v17 = vsub.f32 %v2450_v0, %v323_v8  ;;  %v2879_v36 = vsub.f32 %v2478_v5, %v165_v55 }
  0x9a   :  { %2239 = vrsqrt.f32 %v2846_v58  ;;  %v217_v35 = vmul.f32 %v2772_v37, %v216_v40  ;;  %vm218_vm13 = vweird.f32 %v2713_v34  ;;  %vm219_vm14 = vweird.f32 %v2772_v37 }
  0x9b   :  { %v2889_v29 = vsub.f32 %v2450_v0, %v405_v30  ;;  %v296_v39 = vsub.f32 500.0, %v293_v19  ;;  %v139_v4 = vsel %vm2881_vm12, %v2765_v45, %v135_v24  ;;  %v266_v8 = vmul.f32 %v2753_v60, %v265_v13  ;;  %vm2902_vm4 = vmor %vm218_vm13, %vm219_vm14 }
  0x9c   :  { %vm268_vm15 = vweird.f32 %v2753_v60  ;;  %v706_v20 = vmin.f32 %v703_v56, 0.0  ;;  %v346_v33 = vmul.f32 0.5, %v345_v32  ;;  %v426_v40 = vmul.f32 %v2871_v42, %v2808_v31 }
  0x9d   :  { %v180_v34 = vmul.f32 %v2869_v6, %v2869_v6  ;;  %vm267_vm5 = vweird.f32 %v2690_v26  ;;  %v181_v24 = vmul.f32 %v2879_v36, %v2879_v36  ;;  %v2913_v56 = vmul.f32 %v2838_v43, %v2838_v43 }
  0x9e   :  { %v142_v7 = vmul.f32 1000.0, %v139_v4  ;;  %v221_v55 = vsel %vm2902_vm4, %v2772_v37, %v217_v35  ;;  %vm2918_vm6 = vmor %vm267_vm5, %vm268_vm15  ;;  %v335_v26 = vmul.f32 %v2875_v17, %v2875_v17  ;;  %v299_v32 = vmin.f32 %v296_v39, 0.0 }
  0x9f   :  { %v2909_v45 = vpop.eup %2237  ;;  %v270_v62 = vsel %vm2918_vm6, %v2753_v60, %v266_v8  ;;  %vm349_vm7 = vweird.f32 %v2751_v48  ;;  %v2932_v4 = vmul.f32 %v2889_v29, %v2889_v29  ;;  %v2935_v37 = vmul.f32 %v706_v20, %v2509_v10 }
  0xa0   :  { %v2924_v13 = vpop.eup %2239  ;;  %v347_v35 = vsub.f32 1.5, %v346_v33  ;;  %v427_v61 = vmul.f32 %v2871_v42, %v426_v40  ;;  %v186_v30 = vadd.f32 %v183_v28, %v180_v34  ;;  %v224_v0 = vmul.f32 1000.0, %v221_v55 }
  0xa1   :  { %6535 = vst [vmem:[#allocation13_spill] sm:$0xff] %v2935_v37  ;;  %v111_v39 = vmul.f32 %v2909_v45, %v2834_v46  ;;  %v187_v19 = vadd.f32 %v2645_v63, %v181_v24  ;;  %v2943_v60 = vsub.f32 %v2478_v5, %v2688_v27  ;;  %v145_v8 = vsub.f32 500.0, %v142_v7 }
  0xa2   :  { %v291_v23 = vmul.f32 1000.0, %v270_v62  ;;  %v121_v10 = vmul.f32 %v2924_v13, %v2846_v58  ;;  %v2947_v37 = vmax.f32 %v186_v30, 1e-08  ;;  %v2950_v33 = vmul.f32 %v706_v20, %v2525_v16 }
  0xa3   :  { %v2953_v28 = vmul.f32 %v299_v32, %v2533_v18  ;;  %v2956_v40 = vmul.f32 %v299_v32, %v2515_v12  ;;  %vm350_vm8 = vweird.f32 %v2810_v41  ;;  %v348_v63 = vmul.f32 %v2810_v41, %v347_v35 }
  0xa4   :  { %6536 = vst [vmem:[#allocation14_spill] sm:$0xff] %v2950_v33  ;;  %v428_v34 = vmul.f32 0.5, %v427_v61  ;;  %v2960_v24 = vmax.f32 %v187_v19, 1e-08  ;;  %2241 = vrsqrt.f32 %v2947_v37  ;;  %v227_v30 = vsub.f32 500.0, %v224_v0  ;;  %vm2971_vm9 = vmor %vm349_vm7, %vm350_vm8 }
  0xa5   :  { %v112_v7 = vmul.f32 %v2909_v45, %v111_v39  ;;  %v250_v16 = vmul.f32 %v2943_v60, %v2943_v60  ;;  %v313_v18 = vrot.slane %v2688_v27, 7  ;;  %v148_v20 = vmin.f32 %v145_v8, 0.0 }
  0xa6   :  { %v294_v12 = vsub.f32 500.0, %v291_v23  ;;  %v122_v55 = vmul.f32 %v2924_v13, %v121_v10  ;;  %2243 = vrsqrt.f32 %v2960_v24  ;;  %vm431_vm10 = vweird.f32 %v2808_v31 }
  0xa7   :  { %v256_v0 = vadd.f32 %v2617_v54, %v250_v16  ;;  %v6539_v62 = vrot.slane %v2519_v14, 7  ;;  %v6540_v23 = vrot.slane %v2540_v22, 7  ;;  %v352_v48 = vsel %vm2971_vm9, %v2810_v41, %v348_v63 }
  0xa8   :  { %v429_v39 = vsub.f32 1.5, %v428_v34  ;;  %v230_v8 = vmin.f32 %v227_v30, 0.0  ;;  %vm432_vm11 = vweird.f32 %v2871_v42  ;;  %v113_v10 = vmul.f32 0.5, %v112_v7 }
  0xa9   :  { %v316_v35 = vsel %vm6495_vm2, %v313_v18, %v6539_v62  ;;  %v317_v61 = vsel %vm6495_vm2, %v6540_v23, %v313_v18  ;;  %v2995_v16 = vmax.f32 %v256_v0, 1e-08  ;;  %v151_v18 = vmul.f32 %v148_v20, %v2626_v57  ;;  %vm3030_vm14 = vmor %vm431_vm10, %vm432_vm11 }
  0xaa   :  { %v2989_v19 = vsub.f32 %v2478_v5, %v317_v61  ;;  %v2992_v54 = vsub.f32 %v2455_v1, %v316_v35  ;;  %v2997_v62 = vpop.eup %2241  ;;  %v3000_v23 = vmin.f32 %v294_v12, 0.0  ;;  %v123_v41 = vmul.f32 0.5, %v122_v55 }
  0xab   :  { %v157_v34 = vmul.f32 %v148_v20, %v2648_v9  ;;  %v3005_v32 = vmul.f32 1000.0, %v352_v48  ;;  %vm116_vm12 = vweird.f32 %v2834_v46  ;;  %v193_v30 = vmul.f32 %v2997_v62, %v2947_v37 }
  0xac   :  { %v332_v63 = vmul.f32 %v2989_v19, %v2989_v19  ;;  %2245 = vrsqrt.f32 %v2995_v16  ;;  %v3011_v7 = vpop.eup %2243  ;;  %v430_v57 = vmul.f32 %v2871_v42, %v429_v39  ;;  %vm126_vm13 = vweird.f32 %v2846_v58 }
  0xad   :  { %v333_v12 = vmul.f32 %v2992_v54, %v2992_v54  ;;  %v395_v9 = vrot.slane %v2688_v27, 6  ;;  %v233_v20 = vmul.f32 %v230_v8, %v2633_v59  ;;  %v114_v0 = vsub.f32 1.5, %v113_v10 }
  0xae   :  { %v338_v55 = vadd.f32 %v335_v26, %v332_v63  ;;  %v194_v35 = vmul.f32 %v2997_v62, %v193_v30  ;;  %v203_v61 = vmul.f32 %v3011_v7, %v2960_v24  ;;  %v239_v48 = vmul.f32 %v230_v8, %v2651_v15 }
  0xaf   :  { %v124_v33 = vsub.f32 1.5, %v123_v41  ;;  %v339_v39 = vadd.f32 %v2698_v21, %v333_v12  ;;  %vm117_vm15 = vweird.f32 %v2909_v45  ;;  %vm127_vm4 = vweird.f32 %v2924_v13 }
  0xb0   :  { %v3024_v43 = vmax.f32 %v338_v55, 1e-08  ;;  %v195_v59 = vmul.f32 0.5, %v194_v35  ;;  %v204_v15 = vmul.f32 %v3011_v7, %v203_v61  ;;  %v434_v21 = vsel %vm3030_vm14, %v2871_v42, %v430_v57  ;;  %vm3071_vm6 = vmor %vm116_vm12, %vm117_vm15 }
  0xb1   :  { %v3040_v26 = vmax.f32 %v339_v39, 1e-08  ;;  %v6543_v31 = vrot.slane %v2519_v14, 6  ;;  %v115_v41 = vmul.f32 %v2909_v45, %v114_v0  ;;  %v6544_v12 = vrot.slane %v2540_v22, 6  ;;  %vm3083_vm7 = vmor %vm126_vm13, %vm127_vm4 }
  0xb2   :  { %2247 = vrsqrt.f32 %v3024_v43  ;;  %v3047_v10 = vpop.eup %2245  ;;  %v196_v63 = vsub.f32 1.5, %v195_v59  ;;  %v205_v30 = vmul.f32 0.5, %v204_v15  ;;  %v125_v57 = vmul.f32 %v2924_v13, %v124_v33 }
  0xb3   :  { %v398_v8 = vsel %vm6494_vm3, %v395_v9, %v6543_v31  ;;  %v399_v42 = vsel %vm6494_vm3, %v6544_v12, %v395_v9  ;;  %vm199_vm5 = vweird.f32 %v2997_v62  ;;  %v272_v14 = vmul.f32 %v3047_v10, %v2995_v16 }
  0xb4   :  { %2249 = vrsqrt.f32 %v3040_v26  ;;  %v197_v55 = vmul.f32 %v2997_v62, %v196_v63  ;;  %v206_v35 = vsub.f32 1.5, %v205_v30  ;;  %v3061_v0 = vsub.f32 %v2478_v5, %v399_v42 }
  0xb5   :  { %v3064_v22 = vsub.f32 %v2455_v1, %v398_v8  ;;  %v242_v61 = vadd.f32 %v239_v48, %v157_v34  ;;  %v376_v9 = vsub.f32 500.0, %v3005_v32  ;;  %v236_v33 = vadd.f32 %v233_v20, %v151_v18  ;;  %v3092_v32 = vpop.permute.xlu2 %1215 }
  0xb6   :  { %v273_v27 = vmul.f32 %v3047_v10, %v272_v14  ;;  %v119_v59 = vsel %vm3071_vm6, %v2909_v45, %v115_v41  ;;  %vm198_vm8 = vweird.f32 %v2947_v37  ;;  %v414_v46 = vmul.f32 %v3061_v0, %v3061_v0  ;;  %6549 = vst [vmem:[#allocation15_spill] sm:$0xff] %v3092_v32 }
  0xb7   :  { %v415_v34 = vmul.f32 %v3064_v22, %v3064_v22  ;;  %v455_v45 = vmul.f32 1000.0, %v434_v21  ;;  %v129_v58 = vsel %vm3083_vm7, %v2924_v13, %v125_v57  ;;  %vm3101_vm9 = vmor %vm198_vm8, %vm199_vm5  ;;  %vm209_vm10 = vweird.f32 %v3011_v7 }
  0xb8   :  { %v3094_v20 = vpop.eup %2247  ;;  %v274_v37 = vmul.f32 0.5, %v273_v27  ;;  %v201_v15 = vsel %vm3101_vm9, %v2997_v62, %v197_v55  ;;  %v207_v31 = vmul.f32 %v3011_v7, %v206_v35  ;;  %v420_v13 = vadd.f32 %v2932_v4, %v414_v46 }
  0xb9   :  { %v354_v21 = vmul.f32 %v3094_v20, %v3024_v43  ;;  %v140_v41 = vmul.f32 1000.0, %v119_v59  ;;  %v421_v30 = vadd.f32 %v2702_v25, %v415_v34  ;;  %v3118_v12 = vsub.f32 %v2468_v3, %v3092_v32 }
  0xba   :  { %v3113_v8 = vpop.eup %2249  ;;  %v275_v63 = vsub.f32 1.5, %v274_v37  ;;  %vm208_vm11 = vweird.f32 %v2960_v24  ;;  %v3124_v57 = vmax.f32 %v420_v13, 1e-08  ;;  %v458_v4 = vsub.f32 500.0, %v455_v45 }
  0xbb   :  { %v355_v62 = vmul.f32 %v3094_v20, %v354_v21  ;;  %v364_v42 = vmul.f32 %v3113_v8, %v3040_v26  ;;  %v141_v14 = vmul.f32 1000.0, %v129_v58  ;;  %vm3128_vm12 = vmor %vm208_vm11, %vm209_vm10  ;;  %v222_v25 = vmul.f32 1000.0, %v201_v15 }
  0xbc   :  { %v3132_v3 = vmax.f32 %v421_v30, 1e-08  ;;  %v211_v24 = vsel %vm3128_vm12, %v3011_v7, %v207_v31  ;;  %2251 = vrsqrt.f32 %v3124_v57  ;;  %v143_v27 = vsub.f32 500.0, %v140_v41 }
  0xbd   :  { %v356_v35 = vmul.f32 0.5, %v355_v62  ;;  %v365_v39 = vmul.f32 %v3113_v8, %v364_v42  ;;  %v276_v59 = vmul.f32 %v3047_v10, %v275_v63  ;;  %vm278_vm13 = vweird.f32 %v3047_v10  ;;  %v3481_v32 = vpop.permute.xlu2 %1614 }
  0xbe   :  { %v1390_v18 = vmul.f32 %v3118_v12, %v3118_v12  ;;  %v379_v46 = vmin.f32 %v376_v9, 0.0  ;;  %2253 = vrsqrt.f32 %v3132_v3  ;;  %v3146_v7 = vmul.f32 %v3000_v23, %v2606_v49  ;;  %6597 = vst [vmem:[#allocation19_spill] sm:$0xff] %v3481_v32 }
  0xbf   :  { %v357_v34 = vsub.f32 1.5, %v356_v35  ;;  %v366_v45 = vmul.f32 0.5, %v365_v39  ;;  %v223_v58 = vmul.f32 1000.0, %v211_v24  ;;  %v225_v48 = vsub.f32 500.0, %v222_v25 }
  0xc0   :  { %vm277_vm14 = vweird.f32 %v2995_v16  ;;  %v3151_v37 = vmul.f32 %v3000_v23, %v2613_v53  ;;  %v3154_v15 = vadd.f32 %v2956_v40, %v242_v61  ;;  %v461_v9 = vmin.f32 %v458_v4, 0.0 }
  0xc1   :  { %v3157_v31 = vadd.f32 %v2953_v28, %v236_v33  ;;  %vm3159_vm15 = vmor %vm277_vm14, %vm278_vm13  ;;  %v144_v49 = vsub.f32 500.0, %v141_v14  ;;  %v146_v13 = vmin.f32 %v143_v27, 0.0  ;;  %v1393_v53 = vadd.f32 %v1390_v18, %v2913_v56 }
  0xc2   :  { %v280_v16 = vsel %vm3159_vm15, %v3047_v10, %v276_v59  ;;  %v3167_v23 = vpop.eup %2251  ;;  %v3170_v40 = vmul.f32 %v379_v46, %v2682_v50  ;;  %v358_v28 = vmul.f32 %v3094_v20, %v357_v34  ;;  %vm360_vm4 = vweird.f32 %v3094_v20 }
  0xc3   :  { %v367_v61 = vsub.f32 1.5, %v366_v45  ;;  %v3175_v33 = vmul.f32 %v379_v46, %v2693_v52  ;;  %v226_v41 = vsub.f32 500.0, %v223_v58  ;;  %v228_v63 = vmin.f32 %v225_v48, 0.0  ;;  %v6559_v46 = vld [vmem:[#allocation5_spill] sm:$0xff]  ;;  %v6562_v48 = vld [vmem:[#allocation11_spill] sm:$0xff] }
  0xc4   :  { %v436_v10 = vmul.f32 %v3167_v23, %v3124_v57  ;;  %v3179_v30 = vpop.eup %2253  ;;  %v3182_v56 = vmul.f32 %v461_v9, %v2741_v51  ;;  %v292_v50 = vmul.f32 1000.0, %v280_v16  ;;  %vm359_vm5 = vweird.f32 %v3024_v43 }
  0xc5   :  { %v3185_v62 = vmax.f32 %v1393_v53, 1e-08  ;;  %v147_v42 = vmin.f32 %v144_v49, 0.0  ;;  %v149_v4 = vmul.f32 %v146_v13, %v2763_v44  ;;  %vm3188_vm6 = vmor %vm359_vm5, %vm360_vm4  ;;  %v446_v55 = vmul.f32 %v3179_v30, %v3132_v3  ;;  %v6563_v53 = vld [vmem:[#allocation6_spill] sm:$0xff] }
  0xc6   :  { %v437_v14 = vmul.f32 %v3167_v23, %v436_v10  ;;  %v362_v51 = vsel %vm3188_vm6, %v3094_v20, %v358_v28  ;;  %v368_v43 = vmul.f32 %v3113_v8, %v367_v61  ;;  %vm370_vm7 = vweird.f32 %v3113_v8  ;;  %v6558_v20 = vld [vmem:[#allocation9_spill] sm:$0xff] }
  0xc7   :  { %2255 = vrsqrt.f32 %v3185_v62  ;;  %v229_v44 = vmin.f32 %v226_v41, 0.0  ;;  %v231_v25 = vmul.f32 %v228_v63, %v2869_v6  ;;  %v447_v35 = vmul.f32 %v3179_v30, %v446_v55 }
  0xc8   :  { %v438_v24 = vmul.f32 0.5, %v437_v14  ;;  %v3204_v39 = vmul.f32 %v461_v9, %v2737_v47  ;;  %v155_v27 = vmul.f32 %v146_v13, %v2749_v38  ;;  %v295_v59 = vsub.f32 500.0, %v292_v50  ;;  %v3238_v14 = vpop.permute.xlu1 %478 }
  0xc9   :  { %vm369_vm8 = vweird.f32 %v3040_v26  ;;  %v150_v18 = vmul.f32 %v147_v42, %v6558_v20  ;;  %v156_v34 = vmul.f32 %v147_v42, %v6559_v46  ;;  %v374_v6 = vmul.f32 1000.0, %v362_v51 }
  0xca   :  { %vm3210_vm9 = vmor %vm369_vm8, %vm370_vm7  ;;  %v439_v58 = vsub.f32 1.5, %v438_v24  ;;  %v237_v21 = vmul.f32 %v228_v63, %v6562_v48  ;;  %v448_v38 = vmul.f32 0.5, %v447_v35  ;;  %v232_v26 = vmul.f32 %v229_v44, %v2879_v36  ;;  %v6566_v24 = vld [vmem:[#allocation4_spill] sm:$0xff] }
  0xcb   :  { %v372_v47 = vsel %vm3210_vm9, %v3113_v8, %v368_v43  ;;  %v234_v49 = vadd.f32 %v231_v25, %v149_v4  ;;  %vm442_vm10 = vweird.f32 %v3167_v23  ;;  %v238_v28 = vmul.f32 %v229_v44, %v6563_v53 }
  0xcc   :  { %v298_v61 = vmin.f32 %v295_v59, 0.0  ;;  %v440_v41 = vmul.f32 %v3167_v23, %v439_v58  ;;  %v449_v63 = vsub.f32 1.5, %v448_v38  ;;  %v375_v10 = vmul.f32 1000.0, %v372_v47 }
  0xcd   :  { %v3222_v16 = vpop.eup %2255  ;;  %v377_v8 = vsub.f32 500.0, %v374_v6  ;;  %vm441_vm11 = vweird.f32 %v3124_v57  ;;  %v3229_v50 = vadd.f32 %v237_v21, %v155_v27  ;;  %vm452_vm13 = vweird.f32 %v3179_v30  ;;  %v3248_v27 = vpop.permute.xlu0 %476 }
  0xce   :  { %v1418_v36 = vmul.f32 %v3222_v16, %v3185_v62  ;;  %vm3231_vm12 = vmor %vm441_vm11, %vm442_vm10  ;;  %v450_v4 = vmul.f32 %v3179_v30, %v449_v63  ;;  %v303_v55 = vadd.f32 %v3146_v7, %v234_v49  ;;  %vm451_vm14 = vweird.f32 %v3132_v3  ;;  %v6569_v49 = vld [vmem:[#allocation2_spill] sm:$0xff] }
  0xcf   :  { %v444_v57 = vsel %vm3231_vm12, %v3167_v23, %v440_v41  ;;  %v235_v43 = vadd.f32 %v232_v26, %v150_v18  ;;  %v241_v44 = vadd.f32 %v238_v28, %v156_v34  ;;  %v301_v25 = vmul.f32 %v298_v61, %v2943_v60  ;;  %vm3250_vm15 = vmor %vm451_vm14, %vm452_vm13 }
  0xd0   :  { %v1419_v51 = vmul.f32 %v3222_v16, %v1418_v36  ;;  %v307_v35 = vmul.f32 %v298_v61, %v6566_v24  ;;  %v378_v59 = vsub.f32 500.0, %v375_v10  ;;  %v380_v20 = vmin.f32 %v377_v8, 0.0 }
  0xd1   :  { %v489_v23 = vrot.slane %v3238_v14, 2  ;;  %v570_v3 = vrot.slane %v3238_v14, 1  ;;  %v454_v18 = vsel %vm3250_vm15, %v3179_v30, %v450_v4  ;;  %v456_v46 = vmul.f32 1000.0, %v444_v57 }
  0xd2   :  { %v6413_v60 = vrot.slane %v3238_v14, 7  ;;  %v6412_v34 = vrot.slane %v3238_v14, 6  ;;  %v3262_v45 = vadd.f32 %v3170_v40, %v303_v55  ;;  %v1420_v6 = vmul.f32 0.5, %v1419_v51 }
  0xd3   :  { %v488_v48 = vrot.slane %v3248_v27, 2  ;;  %v304_v21 = vadd.f32 %v301_v25, %v235_v43  ;;  %v310_v47 = vadd.f32 %v307_v35, %v241_v44  ;;  %vm1423_vm4 = vweird.f32 %v3185_v62 }
  0xd4   :  { %v3269_v30 = vsub.f32 %v2478_v5, %v3238_v14  ;;  %v381_v38 = vmin.f32 %v378_v59, 0.0  ;;  %v457_v26 = vmul.f32 1000.0, %v454_v18  ;;  %v6570_v53 = vrot.slane %v6569_v49, 2 }
  0xd5   :  { %v6571_v28 = vrot.slane %v6569_v49, 1  ;;  %v383_v41 = vmul.f32 %v380_v20, %v2989_v19  ;;  %v459_v63 = vsub.f32 500.0, %v456_v46  ;;  %v6572_v10 = vrot.slane %v6569_v49, 7  ;;  %v6579_v46 = vld [vmem:[#allocation7_spill] sm:$0xff] }
  0xd6   :  { %v491_v40 = vsel %vm6497_vm0, %v489_v23, %v6570_v53  ;;  %v6573_v36 = vrot.slane %v6569_v49, 6  ;;  %v389_v4 = vmul.f32 %v380_v20, %v2875_v17  ;;  %v1421_v55 = vsub.f32 1.5, %v1420_v6 }
  0xd7   :  { %v572_v61 = vsel %vm6496_vm1, %v570_v3, %v6571_v28  ;;  %v722_v8 = vsel %vm6495_vm2, %v6413_v60, %v6572_v10  ;;  %v492_v19 = vsel %vm6497_vm0, %v488_v48, %v489_v23  ;;  %v6574_v57 = vmov %v6570_v53 }
  0xd8   :  { %v803_v42 = vsel %vm6494_vm3, %v6412_v34, %v6573_v36  ;;  %v493_v51 = vsel %vm6497_vm0, %v6574_v57, %v488_v48  ;;  %v3300_v43 = vsub.f32 %v2478_v5, %v491_v40  ;;  %v3303_v44 = vsub.f32 %v2478_v5, %v572_v61 }
  0xd9   :  { %v657_v25 = vmul.f32 %v3269_v30, %v3269_v30  ;;  %v569_v17 = vrot.slane %v3248_v27, 1  ;;  %v460_v24 = vsub.f32 500.0, %v457_v26  ;;  %vm1424_vm5 = vweird.f32 %v3222_v16 }
  0xda   :  { %v3310_v35 = vsub.f32 %v2455_v1, %v722_v8  ;;  %v3313_v59 = vsub.f32 %v2455_v1, %v803_v42  ;;  %v384_v20 = vmul.f32 %v381_v38, %v2992_v54  ;;  %v462_v7 = vmin.f32 %v459_v63, 0.0  ;;  %vm3333_vm6 = vmor %vm1423_vm4, %vm1424_vm5  ;;  %v3371_v8 = vld [vmem:[%s6372_s0] sm:$0xff] }
  0xdb   :  { %v3317_v5 = vsub.f32 %v2460_v2, %v492_v19  ;;  %v3320_v23 = vsub.f32 %v2455_v1, %v493_v51  ;;  %v386_v18 = vadd.f32 %v383_v41, %v304_v21  ;;  %v3323_v6 = vmul.f32 %v381_v38, %v6579_v46  ;;  %v3345_v38 = vpop.permute.xlu1 %484  ;;  %6583 = vst [vmem:[#allocation4_spill] sm:$0xff] %v3371_v8 }
  0xdc   :  { %6575 = vst [vmem:[#allocation9_spill] sm:$0xff] %v3310_v35  ;;  %v3325_v48 = vadd.f32 %v389_v4, %v310_v47  ;;  %v1422_v26 = vmul.f32 %v3222_v16, %v1421_v55  ;;  %v3329_v53 = vadd.f32 %v384_v20, %v3157_v31  ;;  %v507_v1 = vmul.f32 %v3300_v43, %v3300_v43  ;;  %v3389_v4 = vld [vmem:[%s6371_s1 + $0x8] sm:$0xff] }
  0xdd   :  { %6576 = vst [vmem:[#allocation5_spill] sm:$0xff] %v3313_v59  ;;  %v573_v2 = vsel %vm6496_vm1, %v569_v17, %v570_v3  ;;  %v6582_v21 = vmov %v6571_v28  ;;  %v463_v31 = vmin.f32 %v460_v24, 0.0  ;;  %v588_v62 = vmul.f32 %v3303_v44, %v3303_v44  ;;  %v6587_v24 = vld [vmem:[#allocation8_spill] sm:$0xff] }
  0xde   :  { %6577 = vst [vmem:[#allocation11_spill] sm:$0xff] %v3317_v5  ;;  %v574_v47 = vsel %vm6496_vm1, %v6582_v21, %v569_v17  ;;  %v739_v40 = vmul.f32 %v3310_v35, %v3310_v35  ;;  %v820_v28 = vmul.f32 %v3313_v59, %v3313_v59  ;;  %v465_v61 = vmul.f32 %v462_v7, %v3061_v0  ;;  %v3379_v0 = vld [vmem:[%s6372_s0 + $0x10] sm:$0xff] }
  0xdf   :  { %6578 = vst [vmem:[#allocation6_spill] sm:$0xff] %v3320_v23  ;;  %v3355_v3 = vmul.f32 %v462_v7, %v2889_v29  ;;  %v3359_v41 = vmul.f32 %v3317_v5, %v3317_v5  ;;  %v3363_v63 = vmul.f32 %v3320_v23, %v3320_v23  ;;  %v1426_v10 = vsel %vm3333_vm6, %v3222_v16, %v1422_v26  ;;  %v6588_v7 = vld [vmem:[#allocation3_spill] sm:$0xff] }
  0xe0   :  { %v3374_v29 = vsub.f32 %v3371_v8, %v573_v2  ;;  %6585 = vst [vmem:[#allocation7_spill] sm:$0xff] %v3379_v0  ;;  %v3382_v36 = vsub.f32 %v3379_v0, %v574_v47  ;;  %v6411_v42 = vrot.slane %v3345_v38, 2  ;;  %v6410_v16 = vrot.slane %v3345_v38, 1 }
  0xe1   :  { %v3393_v55 = vsub.f32 %v3389_v4, %v3345_v38  ;;  %v6409_v19 = vrot.slane %v3345_v38, 7  ;;  %v6408_v57 = vrot.slane %v3345_v38, 6  ;;  %v466_v51 = vmul.f32 %v463_v31, %v3064_v22 }
  0xe2   :  { %6584 = vst [vmem:[#allocation2_spill] sm:$0xff] %v3374_v29  ;;  %v3398_v17 = vadd.f32 %v465_v61, %v386_v18  ;;  %v3401_v20 = vmul.f32 %v463_v31, %v6587_v24  ;;  %v6589_v46 = vrot.slane %v6588_v7, 2  ;;  %v6590_v2 = vrot.slane %v6588_v7, 1  ;;  %v3432_v24 = vld [vmem:[%s6371_s1 + $0x10] sm:$0xff] }
  0xe3   :  { %6586 = vst [vmem:[#allocation16_spill] sm:$0xff] %v3382_v36  ;;  %v660_v18 = vmul.f32 %v3393_v55, %v3393_v55  ;;  %v6591_v21 = vrot.slane %v6588_v7, 7  ;;  %v1429_v31 = vmul.f32 1000.0, %v1426_v10  ;;  %v3445_v10 = vmul.f32 %v3374_v29, %v3374_v29 }
  0xe4   :  { %v497_v26 = vsel %vm6497_vm0, %v6411_v42, %v6589_v46  ;;  %v578_v22 = vsel %vm6496_vm1, %v6410_v16, %v6590_v2  ;;  %v3458_v52 = vsub.f32 %v3371_v8, %v3248_v27  ;;  %v6417_v42 = vrot.slane %v3379_v0, 2 }
  0xe5   :  { %v3410_v54 = vsub.f32 %v3389_v4, %v497_v26  ;;  %v728_v47 = vsel %vm6495_vm2, %v6409_v19, %v6591_v21  ;;  %v3427_v61 = vsub.f32 %v3389_v4, %v578_v22  ;;  %v6593_v26 = vrot.slane %v6588_v7, 6 }
  0xe6   :  { %v3435_v46 = vsub.f32 %v3432_v24, %v728_v47  ;;  %v663_v21 = vadd.f32 %v660_v18, %v657_v25  ;;  %v3454_v47 = vmul.f32 %v3382_v36, %v3382_v36  ;;  %6595 = vst [vmem:[#allocation17_spill] sm:$0xff] %v3458_v52  ;;  %v3471_v18 = vld [vmem:[%s6372_s0 + $0x8] sm:$0xff]  ;;  %v6419_v34 = vrot.slane %v3389_v4, 2 }
  0xe7   :  { %v809_v2 = vsel %vm6494_vm3, %v6408_v57, %v6593_v26  ;;  %v510_v22 = vmul.f32 %v3410_v54, %v3410_v54  ;;  %v591_v26 = vmul.f32 %v3427_v61, %v3427_v61  ;;  %6596 = vst [vmem:[#allocation18_spill] sm:$0xff] %v3471_v18  ;;  %v800_v60 = vrot.slane %v3248_v27, 6 }
  0xe8   :  { %6592 = vst [vmem:[#allocation8_spill] sm:$0xff] %v3435_v46  ;;  %v3450_v58 = vsub.f32 %v3432_v24, %v809_v2  ;;  %v742_v13 = vmul.f32 %v3435_v46, %v3435_v46  ;;  %v3464_v57 = vmax.f32 %v663_v21, 1e-08 }
  0xe9   :  { %v513_v9 = vadd.f32 %v510_v22, %v507_v1  ;;  %v594_v19 = vadd.f32 %v591_v26, %v588_v62  ;;  %v719_v1 = vrot.slane %v3248_v27, 7  ;;  %v3489_v62 = vadd.f32 %v466_v51, %v3329_v53 }
  0xea   :  { %6594 = vst [vmem:[#allocation3_spill] sm:$0xff] %v3450_v58  ;;  %v823_v25 = vmul.f32 %v3450_v58, %v3450_v58  ;;  %v745_v16 = vadd.f32 %v742_v13, %v739_v40  ;;  %2257 = vrsqrt.f32 %v3464_v57  ;;  %v6418_v13 = vrot.slane %v3432_v24, 2 }
  0xeb   :  { %v3477_v22 = vmax.f32 %v513_v9, 1e-08  ;;  %v3483_v36 = vmax.f32 %v594_v19, 1e-08  ;;  %6598 = vst [vmem:[#allocation20_spill] sm:$0xff] %v3489_v62  ;;  %v6599_v27 = vrot.slane %v3471_v18, 2  ;;  %v3510_v19 = vmul.f32 %v3458_v52, %v3458_v52 }
  0xec   :  { %v826_v21 = vadd.f32 %v823_v25, %v820_v28  ;;  %v3485_v2 = vmax.f32 %v745_v16, 1e-08  ;;  %v1432_v28 = vsub.f32 500.0, %v1429_v31  ;;  %v890_v53 = vsel %vm6497_vm0, %v6419_v34, %v6418_v13 }
  0xed   :  { %2259 = vrsqrt.f32 %v3477_v22  ;;  %v884_v16 = vsel %vm6497_vm0, %v6599_v27, %v6417_v42  ;;  %v6600_v51 = vrot.slane %v3238_v14, 7  ;;  %v6601_v26 = vrot.slane %v6569_v49, 7 }
  0xee   :  { %v3493_v9 = vmax.f32 %v826_v21, 1e-08  ;;  %2261 = vrsqrt.f32 %v3483_v36  ;;  %v6602_v21 = vrot.slane %v3238_v14, 6  ;;  %v3538_v14 = vsub.f32 %v3389_v4, %v890_v53 }
  0xef   :  { %v723_v31 = vsel %vm6495_vm2, %v719_v1, %v6600_v51  ;;  %v724_v25 = vsel %vm6495_vm2, %v6601_v26, %v719_v1  ;;  %2263 = vrsqrt.f32 %v3485_v2  ;;  %v6603_v51 = vrot.slane %v6569_v49, 6 }
  0xf0   :  { %v804_v27 = vsel %vm6494_vm3, %v800_v60, %v6602_v21  ;;  %2265 = vrsqrt.f32 %v3493_v9  ;;  %v3528_v13 = vpop.eup %2257  ;;  %v3535_v26 = vsub.f32 %v3471_v18, %v884_v16  ;;  %6605 = vst [vmem:[#allocation22_spill] sm:$0xff] %v3538_v14  ;;  %v1435_v34 = vmin.f32 %v1432_v28, 0.0 }
  0xf1   :  { %v805_v1 = vsel %vm6494_vm3, %v6603_v51, %v800_v60  ;;  %v3544_v42 = vsub.f32 %v3379_v0, %v3481_v32  ;;  %v679_v49 = vmul.f32 %v3528_v13, %v3464_v57  ;;  %v3551_v60 = vsub.f32 %v3371_v8, %v724_v25 }
  0xf2   :  { %6604 = vst [vmem:[#allocation21_spill] sm:$0xff] %v3535_v26  ;;  %v3554_v16 = vsub.f32 %v3471_v18, %v723_v31  ;;  %v6608_v53 = vrot.slane %v3379_v0, 1  ;;  %v6609_v28 = vrot.slane %v3471_v18, 1  ;;  %v6433_v40 = vrot.slane %v3432_v24, 1 }
  0xf3   :  { %6606 = vst [vmem:[#allocation23_spill] sm:$0xff] %v3544_v42  ;;  %v3548_v52 = vpop.eup %2259  ;;  %v3566_v29 = vsub.f32 %v3371_v8, %v805_v1  ;;  %v3569_v25 = vsub.f32 %v3471_v18, %v804_v27  ;;  %v680_v0 = vmul.f32 %v3528_v13, %v679_v49  ;;  %v903_v1 = vmul.f32 %v3538_v14, %v3538_v14 }
  0xf4   :  { %6607 = vst [vmem:[#allocation24_spill] sm:$0xff] %v3554_v16  ;;  %v965_v51 = vsel %vm6496_vm1, %v6609_v28, %v6608_v53  ;;  %v3563_v21 = vpop.eup %2261  ;;  %v529_v31 = vmul.f32 %v3548_v52, %v3477_v22  ;;  %v900_v28 = vmul.f32 %v3535_v26, %v3535_v26  ;;  %v6612_v27 = vrot.slane %v3389_v4, 1 }
  0xf5   :  { %6610 = vst [vmem:[#allocation25_spill] sm:$0xff] %v3566_v29  ;;  %v3574_v62 = vpop.eup %2263  ;;  %v610_v53 = vmul.f32 %v3563_v21, %v3483_v36  ;;  %v681_v8 = vmul.f32 0.5, %v680_v0  ;;  %v3594_v26 = vsub.f32 %v3471_v18, %v965_v51  ;;  %v3598_v14 = vmul.f32 %v3544_v42, %v3544_v42  ;;  %v6614_v51 = vld [vmem:[#allocation12_spill] sm:$0xff] }
  0xf6   :  { %6611 = vst [vmem:[#allocation26_spill] sm:$0xff] %v3569_v25  ;;  %v971_v23 = vsel %vm6496_vm1, %v6612_v27, %v6433_v40  ;;  %v3588_v5 = vpop.eup %2265  ;;  %v530_v49 = vmul.f32 %v3548_v52, %v529_v31  ;;  %v770_v58 = vmul.f32 %v3574_v62, %v3485_v2  ;;  %v3609_v18 = vmul.f32 %v1435_v34, %v6614_v51 }
  0xf7   :  { %6613 = vst [vmem:[#allocation27_spill] sm:$0xff] %v3598_v14  ;;  %v611_v46 = vmul.f32 %v3563_v21, %v610_v53  ;;  %v851_v27 = vmul.f32 %v3588_v5, %v3493_v9  ;;  %v682_v31 = vsub.f32 1.5, %v681_v8  ;;  %v3606_v35 = vsub.f32 %v3389_v4, %v971_v23 }
  0xf8   :  { %v531_v40 = vmul.f32 0.5, %v530_v49  ;;  %v771_v0 = vmul.f32 %v3574_v62, %v770_v58  ;;  %6615 = vst [vmem:[#allocation12_spill] sm:$0xff] %v3609_v18  ;;  %v3612_v42 = vmul.f32 %v1435_v34, %v3118_v12  ;;  %v906_v14 = vadd.f32 %v903_v1, %v900_v28  ;;  %v3633_v34 = vld [vmem:[%s6371_s1] sm:$0xff]  ;;  %v3638_v1 = vpop.permute.xlu0 %482 }
  0xf9   :  { %v3617_v53 = vmul.f32 %v3551_v60, %v3551_v60  ;;  %v612_v49 = vmul.f32 0.5, %v611_v46  ;;  %v852_v8 = vmul.f32 %v3588_v5, %v851_v27  ;;  %v981_v58 = vmul.f32 %v3594_v26, %v3594_v26 }
  0xfa   :  { %6616 = vst [vmem:[#allocation28_spill] sm:$0xff] %v3612_v42  ;;  %v3624_v23 = vmul.f32 %v3554_v16, %v3554_v16  ;;  %v3628_v12 = vmul.f32 %v3566_v29, %v3566_v29  ;;  %v984_v28 = vmul.f32 %v3606_v35, %v3606_v35  ;;  %v532_v27 = vsub.f32 1.5, %v531_v40 }
  0xfb   :  { %v683_v51 = vmul.f32 %v3528_v13, %v682_v31  ;;  %vm685_vm7 = vweird.f32 %v3528_v13  ;;  %v772_v59 = vmul.f32 0.5, %v771_v0  ;;  %v3644_v42 = vmul.f32 %v3569_v25, %v3569_v25 }
  0xfc   :  { %vm684_vm8 = vweird.f32 %v3464_v57  ;;  %v3647_v18 = vmax.f32 %v906_v14, 1e-08  ;;  %v6442_v46 = vrot.slane %v3633_v34, 1  ;;  %v613_v32 = vsub.f32 1.5, %v612_v49 }
  0xfd   :  { %v853_v29 = vmul.f32 0.5, %v852_v8  ;;  %v987_v16 = vadd.f32 %v984_v28, %v981_v58  ;;  %v494_v40 = vrot.slane %v3638_v1, 2  ;;  %v3653_v31 = vadd.f32 %v3355_v3, %v3325_v48  ;;  %vm3655_vm9 = vmor %vm684_vm8, %vm685_vm7 }
  0xfe   :  { %v309_v57 = vadd.f32 %v3151_v37, %v3229_v50  ;;  %v393_v14 = vadd.f32 %v3323_v6, %v3154_v15  ;;  %v6619_v49 = vrot.slane %v3389_v4, 2  ;;  %v6620_v8 = vrot.slane %v3633_v34, 2 }
  0xff   :  { %v533_v48 = vmul.f32 %v3548_v52, %v532_v27  ;;  %vm535_vm10 = vweird.f32 %v3548_v52  ;;  %v687_v3 = vsel %vm3655_vm9, %v3528_v13, %v683_v51  ;;  %v773_v28 = vsub.f32 1.5, %v772_v59 }
 0x100   :  { %v891_v58 = vsel %vm6497_vm0, %v6620_v8, %v6619_v49  ;;  %vm534_vm11 = vweird.f32 %v3477_v22  ;;  %vm616_vm12 = vweird.f32 %v3563_v21  ;;  %2267 = vrsqrt.f32 %v3647_v18 }
 0x101   :  { %v6621_v37 = vrot.slane %v3389_v4, 1  ;;  %v614_v50 = vmul.f32 %v3563_v21, %v613_v32  ;;  %v854_v6 = vsub.f32 1.5, %v853_v29  ;;  %v3684_v27 = vmax.f32 %v987_v16, 1e-08  ;;  %vm3690_vm13 = vmor %vm534_vm11, %vm535_vm10 }
 0x102   :  { %v6622_v59 = vrot.slane %v3345_v38, 2  ;;  %vm615_vm14 = vweird.f32 %v3483_v36  ;;  %v699_v51 = vmul.f32 1000.0, %v687_v3  ;;  %v391_v0 = vadd.f32 %v3175_v33, %v309_v57 }
 0x103   :  { %v972_v15 = vsel %vm6496_vm1, %v6442_v46, %v6621_v37  ;;  %v3697_v49 = vsub.f32 %v3633_v34, %v891_v58  ;;  %v537_v32 = vsel %vm3690_vm13, %v3548_v52, %v533_v48  ;;  %v774_v29 = vmul.f32 %v3574_v62, %v773_v28  ;;  %vm3707_vm4 = vmor %vm615_vm14, %vm616_vm12 }
 0x104   :  { %v498_v22 = vsel %vm6497_vm0, %v494_v40, %v6622_v59  ;;  %vm776_vm15 = vweird.f32 %v3574_v62  ;;  %2269 = vrsqrt.f32 %v3684_v27  ;;  %v3713_v33 = vadd.f32 %v3182_v56, %v3262_v45 }
 0x105   :  { %6625 = vst [vmem:[#allocation29_spill] sm:$0xff] %v3697_v49  ;;  %v3716_v16 = vsub.f32 %v3633_v34, %v972_v15  ;;  %v6629_v52 = vrot.slane %v6588_v7, 2  ;;  %v3723_v8 = vsub.f32 %v3633_v34, %v498_v22  ;;  %v618_v58 = vsel %vm3707_vm4, %v3563_v21, %v614_v50 }
 0x106   :  { %vm775_vm5 = vweird.f32 %v3485_v2  ;;  %v855_v56 = vmul.f32 %v3588_v5, %v854_v6  ;;  %vm857_vm6 = vweird.f32 %v3588_v5  ;;  %v3731_v45 = vpop.eup %2267  ;;  %v549_v48 = vmul.f32 1000.0, %v537_v32 }
 0x107   :  { %6628 = vst [vmem:[#allocation30_spill] sm:$0xff] %v3716_v16  ;;  %v499_v57 = vsel %vm6497_vm0, %v6629_v52, %v494_v40  ;;  %v702_v3 = vsub.f32 500.0, %v699_v51  ;;  %vm3733_vm7 = vmor %vm775_vm5, %vm776_vm15  ;;  %v3738_v40 = vadd.f32 %v3204_v39, %v391_v0  ;;  %v3741_v37 = vadd.f32 %v3401_v20, %v393_v14 }
 0x108   :  { %v778_v2 = vsel %vm3733_vm7, %v3574_v62, %v774_v29  ;;  %vm856_vm8 = vweird.f32 %v3493_v9  ;;  %v3749_v21 = vmul.f32 %v3697_v49, %v3697_v49  ;;  %v3752_v15 = vsub.f32 %v3432_v24, %v499_v57 }
 0x109   :  { %v630_v50 = vmul.f32 1000.0, %v618_v58  ;;  %vm3754_vm9 = vmor %vm856_vm8, %vm857_vm6  ;;  %v3760_v20 = vmul.f32 %v3716_v16, %v3716_v16  ;;  %v509_v62 = vmul.f32 %v3723_v8, %v3723_v8  ;;  %v575_v9 = vrot.slane %v3638_v1, 1 }
 0x10a   :  { %v3765_v14 = vpop.eup %2269  ;;  %v859_v6 = vsel %vm3754_vm9, %v3588_v5, %v855_v56  ;;  %v922_v59 = vmul.f32 %v3731_v45, %v3647_v18  ;;  %v511_v22 = vmul.f32 %v3752_v15, %v3752_v15  ;;  %v3776_v13 = vsub.f32 %v3633_v34, %v3638_v1 }
 0x10b   :  { %v552_v51 = vsub.f32 500.0, %v549_v48  ;;  %v705_v0 = vmin.f32 %v702_v3, 0.0  ;;  %v781_v32 = vmul.f32 1000.0, %v778_v2  ;;  %v1003_v29 = vmul.f32 %v3765_v14, %v3684_v27 }
 0x10c   :  { %v512_v36 = vadd.f32 %v509_v62, %v3359_v41  ;;  %v514_v5 = vadd.f32 %v511_v22, %v3363_v63  ;;  %v6634_v52 = vrot.slane %v3345_v38, 1  ;;  %v725_v58 = vrot.slane %v3638_v1, 7 }
 0x10d   :  { %v633_v56 = vsub.f32 500.0, %v630_v50  ;;  %v862_v28 = vmul.f32 1000.0, %v859_v6  ;;  %v6635_v48 = vrot.slane %v6588_v7, 1  ;;  %v659_v62 = vmul.f32 %v3776_v13, %v3776_v13 }
 0x10e   :  { %v579_v57 = vsel %vm6496_vm1, %v575_v9, %v6634_v52  ;;  %v3794_v41 = vmax.f32 %v512_v36, 1e-08  ;;  %v3796_v63 = vmax.f32 %v514_v5, 1e-08  ;;  %v555_v50 = vmin.f32 %v552_v51, 0.0 }
 0x10f   :  { %v580_v3 = vsel %vm6496_vm1, %v6635_v48, %v575_v9  ;;  %v3792_v2 = vsub.f32 %v3633_v34, %v579_v57  ;;  %v923_v6 = vmul.f32 %v3731_v45, %v922_v59  ;;  %v1004_v22 = vmul.f32 %v3765_v14, %v1003_v29 }
 0x110   :  { %v3799_v39 = vsub.f32 %v3432_v24, %v580_v3  ;;  %v3808_v52 = vmul.f32 %v705_v0, %v3269_v30  ;;  %2271 = vrsqrt.f32 %v3794_v41  ;;  %v6636_v5 = vrot.slane %v3345_v38, 7 }
 0x111   :  { %v590_v9 = vmul.f32 %v3792_v2, %v3792_v2  ;;  %v636_v57 = vmin.f32 %v633_v56, 0.0  ;;  %v784_v59 = vsub.f32 500.0, %v781_v32  ;;  %v865_v48 = vsub.f32 500.0, %v862_v28 }
 0x112   :  { %v592_v36 = vmul.f32 %v3799_v39, %v3799_v39  ;;  %v729_v51 = vsel %vm6495_vm2, %v725_v58, %v6636_v5  ;;  %2273 = vrsqrt.f32 %v3796_v63  ;;  %v662_v3 = vadd.f32 %v659_v62, %v3510_v19 }
 0x113   :  { %v593_v29 = vadd.f32 %v590_v9, %v3445_v10  ;;  %v6637_v46 = vrot.slane %v6588_v7, 7  ;;  %v924_v49 = vmul.f32 0.5, %v923_v6  ;;  %v1005_v25 = vmul.f32 0.5, %v1004_v22 }
 0x114   :  { %v595_v30 = vadd.f32 %v592_v36, %v3454_v47  ;;  %v3829_v32 = vsub.f32 %v3389_v4, %v729_v51  ;;  %v3832_v56 = vmul.f32 %v705_v0, %v3393_v55  ;;  %vm927_vm10 = vweird.f32 %v3647_v18 }
 0x115   :  { %v730_v16 = vsel %vm6495_vm2, %v6637_v46, %v725_v58  ;;  %vm928_vm11 = vweird.f32 %v3731_v45  ;;  %v3836_v10 = vmax.f32 %v593_v29, 1e-08  ;;  %v3840_v19 = vmax.f32 %v662_v3, 1e-08 }
 0x116   :  { %v3826_v5 = vsub.f32 %v3633_v34, %v730_v16  ;;  %v3838_v47 = vmax.f32 %v595_v30, 1e-08  ;;  %v558_v46 = vmul.f32 %v555_v50, %v3300_v43  ;;  %v564_v16 = vmul.f32 %v555_v50, %v3410_v54  ;;  %v3848_v0 = vpop.eup %2271  ;;  %vm3916_vm4 = vmor %vm927_vm10, %vm928_vm11 }
 0x117   :  { %v741_v55 = vmul.f32 %v3829_v32, %v3829_v32  ;;  %v3850_v28 = vmin.f32 %v784_v59, 0.0  ;;  %vm1008_vm12 = vweird.f32 %v3684_v27  ;;  %2275 = vrsqrt.f32 %v3836_v10 }
 0x118   :  { %v740_v58 = vmul.f32 %v3826_v5, %v3826_v5  ;;  %v806_v62 = vrot.slane %v3638_v1, 6  ;;  %v3855_v6 = vpop.eup %2273  ;;  %v3858_v43 = vmul.f32 %v636_v57, %v3303_v44  ;;  %v925_v54 = vsub.f32 1.5, %v924_v49 }
 0x119   :  { %v519_v50 = vmul.f32 %v3848_v0, %v3794_v41  ;;  %2277 = vrsqrt.f32 %v3838_v47  ;;  %v3864_v22 = vmul.f32 %v636_v57, %v3427_v61  ;;  %v1006_v9 = vsub.f32 1.5, %v1005_v25 }
 0x11a   :  { %v539_v36 = vmul.f32 %v3855_v6, %v3796_v63  ;;  %2279 = vrsqrt.f32 %v3840_v19  ;;  %v3869_v1 = vmin.f32 %v865_v48, 0.0  ;;  %v743_v49 = vadd.f32 %v740_v58, %v3617_v53 }
 0x11b   :  { %v520_v44 = vmul.f32 %v3848_v0, %v519_v50  ;;  %v744_v51 = vadd.f32 %v741_v55, %v3624_v23  ;;  %v3875_v59 = vadd.f32 %v558_v46, %v3398_v17  ;;  %v3878_v61 = vadd.f32 %v564_v16, %v3653_v31 }
 0x11c   :  { %v540_v25 = vmul.f32 %v3855_v6, %v539_v36  ;;  %v6638_v57 = vrot.slane %v6588_v7, 6  ;;  %v926_v29 = vmul.f32 %v3731_v45, %v925_v54  ;;  %vm1009_vm13 = vweird.f32 %v3765_v14 }
 0x11d   :  { %v521_v53 = vmul.f32 0.5, %v520_v44  ;;  %v3887_v30 = vmax.f32 %v743_v49, 1e-08  ;;  %v3889_v23 = vpop.eup %2275  ;;  %v1007_v17 = vmul.f32 %v3765_v14, %v1006_v9  ;;  %v3892_v3 = vmax.f32 %v744_v51, 1e-08  ;;  %vm3931_vm5 = vmor %vm1008_vm12, %vm1009_vm13 }
 0x11e   :  { %v811_v48 = vsel %vm6494_vm3, %v6638_v57, %v806_v62  ;;  %v541_v31 = vmul.f32 0.5, %v540_v25  ;;  %v6639_v46 = vrot.slane %v3345_v38, 6  ;;  %v600_v55 = vmul.f32 %v3889_v23, %v3836_v10 }
 0x11f   :  { %v3898_v16 = vpop.eup %2277  ;;  %v522_v58 = vsub.f32 1.5, %v521_v53  ;;  %2281 = vrsqrt.f32 %v3887_v30  ;;  %v3904_v54 = vsub.f32 %v3633_v34, %v811_v48  ;;  %vm525_vm14 = vweird.f32 %v3848_v0 }
 0x120   :  { %v810_v7 = vsel %vm6494_vm3, %v806_v62, %v6639_v46  ;;  %v3906_v50 = vpop.eup %2279  ;;  %v542_v9 = vsub.f32 1.5, %v541_v31  ;;  %vm545_vm15 = vweird.f32 %v3855_v6  ;;  %v620_v38 = vmul.f32 %v3898_v16, %v3838_v47  ;;  %v6646_v31 = vld [vmem:[#allocation9_spill] sm:$0xff] }
 0x121   :  { %v523_v36 = vmul.f32 %v3848_v0, %v522_v58  ;;  %v601_v44 = vmul.f32 %v3889_v23, %v600_v55  ;;  %v669_v49 = vmul.f32 %v3906_v50, %v3840_v19  ;;  %v3925_v51 = vsub.f32 %v3389_v4, %v810_v7 }
 0x122   :  { %vm524_vm6 = vweird.f32 %v3794_v41  ;;  %v543_v25 = vmul.f32 %v3855_v6, %v542_v9  ;;  %v621_v57 = vmul.f32 %v3898_v16, %v620_v38  ;;  %2283 = vrsqrt.f32 %v3892_v3 }
 0x123   :  { %vm3939_vm7 = vmor %vm524_vm6, %vm525_vm14  ;;  %vm544_vm8 = vweird.f32 %v3796_v63  ;;  %v602_v4 = vmul.f32 0.5, %v601_v44  ;;  %v670_v27 = vmul.f32 %v3906_v50, %v669_v49  ;;  %v821_v53 = vmul.f32 %v3904_v54, %v3904_v54 }
 0x124   :  { %v3949_v41 = vmul.f32 %v3850_v28, %v6646_v31  ;;  %v930_v46 = vsel %vm3916_vm4, %v3731_v45, %v926_v29  ;;  %v527_v7 = vsel %vm3939_vm7, %v3848_v0, %v523_v36  ;;  %vm3959_vm9 = vmor %vm544_vm8, %vm545_vm15  ;;  %v622_v58 = vmul.f32 0.5, %v621_v57  ;;  %v6660_v31 = vld [vmem:[#allocation11_spill] sm:$0xff] }
 0x125   :  { %v3963_v55 = vpop.eup %2281  ;;  %v1011_v9 = vsel %vm3931_vm5, %v3765_v14, %v1007_v17  ;;  %v547_v45 = vsel %vm3959_vm9, %v3855_v6, %v543_v25  ;;  %v603_v29 = vsub.f32 1.5, %v602_v4  ;;  %v822_v0 = vmul.f32 %v3925_v51, %v3925_v51  ;;  %v6649_v6 = vld [vmem:[#allocation8_spill] sm:$0xff] }
 0x126   :  { %vm606_vm10 = vweird.f32 %v3889_v23  ;;  %v623_v38 = vsub.f32 1.5, %v622_v58  ;;  %v671_v62 = vmul.f32 0.5, %v670_v27  ;;  %v750_v36 = vmul.f32 %v3963_v55, %v3887_v30  ;;  %v6659_v4 = vld [vmem:[#allocation4_spill] sm:$0xff] }
 0x127   :  { %v548_v44 = vmul.f32 1000.0, %v527_v7  ;;  %v604_v49 = vmul.f32 %v3889_v23, %v603_v29  ;;  %vm626_vm11 = vweird.f32 %v3898_v16  ;;  %v824_v14 = vadd.f32 %v821_v53, %v3628_v12 }
 0x128   :  { %v3979_v17 = vpop.eup %2283  ;;  %v3983_v18 = vmul.f32 %v3850_v28, %v6649_v6  ;;  %v550_v25 = vmul.f32 1000.0, %v547_v45  ;;  %vm605_vm12 = vweird.f32 %v3836_v10  ;;  %v624_v57 = vmul.f32 %v3898_v16, %v623_v38 }
 0x129   :  { %v942_v48 = vmul.f32 1000.0, %v930_v46  ;;  %vm3987_vm13 = vmor %vm605_vm12, %vm606_vm10  ;;  %vm625_vm14 = vweird.f32 %v3838_v47  ;;  %v751_v12 = vmul.f32 %v3963_v55, %v750_v36  ;;  %v825_v27 = vadd.f32 %v822_v0, %v3644_v42 }
 0x12a   :  { %v642_v28 = vadd.f32 %v3858_v43, %v3875_v59  ;;  %v1023_v53 = vmul.f32 1000.0, %v1011_v9  ;;  %vm3996_vm15 = vmor %vm625_vm14, %vm626_vm11  ;;  %v672_v10 = vsub.f32 1.5, %v671_v62  ;;  %v760_v46 = vmul.f32 %v3979_v17, %v3892_v3  ;;  %v6654_v59 = vld [vmem:[#allocation5_spill] sm:$0xff]  ;;  %v6655_v9 = vld [vmem:[#allocation3_spill] sm:$0xff] }
 0x12b   :  { %v551_v7 = vsub.f32 500.0, %v548_v44  ;;  %v608_v47 = vsel %vm3987_vm13, %v3889_v23, %v604_v49  ;;  %v628_v42 = vsel %vm3996_vm15, %v3898_v16, %v624_v57  ;;  %v4008_v63 = vmax.f32 %v824_v14, 1e-08 }
 0x12c   :  { %v648_v43 = vadd.f32 %v3864_v22, %v3878_v61  ;;  %v4014_v58 = vmul.f32 %v3869_v1, %v6654_v59  ;;  %v4018_v45 = vmul.f32 %v3869_v1, %v6655_v9  ;;  %v553_v29 = vsub.f32 500.0, %v550_v25  ;;  %v4029_v1 = vpop.permute.xlu2 %1620 }
 0x12d   :  { %v945_v0 = vsub.f32 500.0, %v942_v48  ;;  %vm675_vm4 = vweird.f32 %v3906_v50  ;;  %v752_v23 = vmul.f32 0.5, %v751_v12  ;;  %v4021_v38 = vmax.f32 %v825_v27, 1e-08  ;;  %6656 = vst [vmem:[#allocation9_spill] sm:$0xff] %v4029_v1 }
 0x12e   :  { %v629_v16 = vmul.f32 1000.0, %v608_v47  ;;  %v631_v62 = vmul.f32 1000.0, %v628_v42  ;;  %v673_v36 = vmul.f32 %v3906_v50, %v672_v10  ;;  %v761_v22 = vmul.f32 %v3979_v17, %v760_v46 }
 0x12f   :  { %v4026_v61 = vadd.f32 %v3808_v52, %v642_v28  ;;  %v1026_v44 = vsub.f32 500.0, %v1023_v53  ;;  %v554_v49 = vmin.f32 %v551_v7, 0.0  ;;  %2285 = vrsqrt.f32 %v4008_v63  ;;  %v6661_v7 = vld [vmem:[#allocation6_spill] sm:$0xff] }
 0x130   :  { %v4032_v14 = vadd.f32 %v3832_v56, %v648_v43  ;;  %v556_v6 = vmin.f32 %v553_v29, 0.0  ;;  %vm674_vm5 = vweird.f32 %v3840_v19  ;;  %v762_v25 = vmul.f32 0.5, %v761_v22  ;;  %v6662_v29 = vld [vmem:[#allocation18_spill] sm:$0xff] }
 0x131   :  { %v4035_v57 = vmin.f32 %v945_v0, 0.0  ;;  %vm4039_vm6 = vmor %vm674_vm5, %vm675_vm4  ;;  %v753_v48 = vsub.f32 1.5, %v752_v23  ;;  %2287 = vrsqrt.f32 %v4021_v38  ;;  %v6447_v12 = vrot.slane %v6659_v4, 2 }
 0x132   :  { %v632_v27 = vsub.f32 500.0, %v629_v16  ;;  %v634_v56 = vsub.f32 500.0, %v631_v62  ;;  %v677_v19 = vsel %vm4039_vm6, %v3906_v50, %v673_v36  ;;  %v4050_v28 = vsub.f32 %v3432_v24, %v4029_v1 }
 0x133   :  { %v4052_v53 = vmin.f32 %v1026_v44, 0.0  ;;  %v557_v10 = vmul.f32 %v554_v49, %v6660_v31  ;;  %vm755_vm7 = vweird.f32 %v3887_v30  ;;  %v763_v46 = vsub.f32 1.5, %v762_v25  ;;  %v6667_v30 = vld [vmem:[#allocation2_spill] sm:$0xff] }
 0x134   :  { %v559_v47 = vmul.f32 %v556_v6, %v6661_v7  ;;  %v565_v42 = vmul.f32 %v556_v6, %v3752_v15  ;;  %vm756_vm8 = vweird.f32 %v3963_v55  ;;  %vm765_vm9 = vweird.f32 %v3892_v3  ;;  %v6664_v6 = vld [vmem:[#allocation20_spill] sm:$0xff] }
 0x135   :  { %v4060_v50 = vpop.eup %2285  ;;  %v563_v43 = vmul.f32 %v554_v49, %v3723_v8  ;;  %v698_v59 = vmul.f32 1000.0, %v677_v19  ;;  %v754_v9 = vmul.f32 %v3963_v55, %v753_v48  ;;  %v6663_v0 = vrot.slane %v6662_v29, 2  ;;  %vm4087_vm11 = vmor %vm755_vm7, %vm756_vm8 }
 0x136   :  { %v635_v16 = vmin.f32 %v632_v27, 0.0  ;;  %v637_v15 = vmin.f32 %v634_v56, 0.0  ;;  %v831_v62 = vmul.f32 %v4060_v50, %v4008_v63  ;;  %v560_v8 = vadd.f32 %v557_v10, %v3713_v33 }
 0x137   :  { %v885_v23 = vsel %vm6497_vm0, %v6447_v12, %v6663_v0  ;;  %v4075_v22 = vpop.eup %2287  ;;  %v764_v44 = vmul.f32 %v3979_v17, %v763_v46  ;;  %vm766_vm10 = vweird.f32 %v3979_v17  ;;  %v6446_v49 = vrot.slane %v6659_v4, 1  ;;  %v6668_v46 = vld [vmem:[#allocation16_spill] sm:$0xff] }
 0x138   :  { %v4073_v36 = vsub.f32 %v6659_v4, %v885_v23  ;;  %v562_v25 = vadd.f32 %v559_v47, %v6664_v6  ;;  %v568_v52 = vadd.f32 %v565_v42, %v3741_v37  ;;  %v832_v33 = vmul.f32 %v4060_v50, %v831_v62  ;;  %vm767_vm12 = vmor %vm765_vm9, %vm766_vm10 }
 0x139   :  { %v841_v27 = vmul.f32 %v4075_v22, %v4021_v38  ;;  %v566_v56 = vadd.f32 %v563_v43, %v3738_v40  ;;  %v701_v19 = vsub.f32 500.0, %v698_v59  ;;  %v758_v37 = vsel %vm4087_vm11, %v3963_v55, %v754_v9 }
 0x13a   :  { %v899_v31 = vmul.f32 %v4073_v36, %v4073_v36  ;;  %v638_v10 = vmul.f32 %v635_v16, %v6667_v30  ;;  %v640_v7 = vmul.f32 %v637_v15, %v6668_v46  ;;  %v646_v47 = vmul.f32 %v637_v15, %v3799_v39 }
 0x13b   :  { %v833_v42 = vmul.f32 0.5, %v832_v33  ;;  %v768_v40 = vsel %vm767_vm12, %v3979_v17, %v764_v44  ;;  %v842_v43 = vmul.f32 %v4075_v22, %v841_v27  ;;  %v6669_v55 = vrot.slane %v6662_v29, 1 }
 0x13c   :  { %v905_v59 = vadd.f32 %v3749_v21, %v899_v31  ;;  %v643_v0 = vadd.f32 %v640_v7, %v562_v25  ;;  %v644_v39 = vmul.f32 %v635_v16, %v3792_v2  ;;  %v649_v23 = vadd.f32 %v646_v47, %v568_v52  ;;  %v6670_v16 = vld [vmem:[#allocation13_spill] sm:$0xff]  ;;  %v6671_v52 = vld [vmem:[#allocation14_spill] sm:$0xff] }
 0x13d   :  { %v966_v9 = vsel %vm6496_vm1, %v6446_v49, %v6669_v55  ;;  %v779_v3 = vmul.f32 1000.0, %v758_v37  ;;  %v834_v15 = vsub.f32 1.5, %v833_v42  ;;  %v843_v62 = vmul.f32 0.5, %v842_v43 }
 0x13e   :  { %v4115_v6 = vmax.f32 %v905_v59, 1e-08  ;;  %v4118_v17 = vsub.f32 %v6659_v4, %v966_v9  ;;  %v704_v21 = vmin.f32 %v701_v19, 0.0  ;;  %v780_v44 = vmul.f32 1000.0, %v768_v40  ;;  %v6672_v19 = vld [vmem:[#allocation27_spill] sm:$0xff]  ;;  %v6673_v59 = vld [vmem:[#allocation17_spill] sm:$0xff] }
 0x13f   :  { %vm846_vm13 = vweird.f32 %v4021_v38  ;;  %v1795_v48 = vmul.f32 %v4050_v28, %v4050_v28  ;;  %v844_v33 = vsub.f32 1.5, %v843_v62  ;;  %vm847_vm14 = vweird.f32 %v4075_v22 }
 0x140   :  { %2289 = vrsqrt.f32 %v4115_v6  ;;  %v980_v2 = vmul.f32 %v4118_v17, %v4118_v17  ;;  %v712_v25 = vadd.f32 %v6670_v16, %v643_v0  ;;  %v718_v27 = vadd.f32 %v6671_v52, %v649_v23  ;;  %vm848_vm4 = vmor %vm846_vm13, %vm847_vm14 }
 0x141   :  { %v782_v37 = vsub.f32 500.0, %v779_v3  ;;  %v1798_v31 = vadd.f32 %v1795_v48, %v6672_v19  ;;  %v835_v30 = vmul.f32 %v4060_v50, %v834_v15  ;;  %vm837_vm15 = vweird.f32 %v4060_v50  ;;  %v6676_v15 = vld [vmem:[#allocation21_spill] sm:$0xff] }
 0x142   :  { %v845_v46 = vmul.f32 %v4075_v22, %v844_v33  ;;  %v986_v7 = vadd.f32 %v3760_v20, %v980_v2  ;;  %v641_v47 = vadd.f32 %v638_v10, %v560_v8  ;;  %v647_v42 = vadd.f32 %v644_v39, %v566_v56 }
 0x143   :  { %v783_v40 = vsub.f32 500.0, %v780_v44  ;;  %v4136_v43 = vmax.f32 %v1798_v31, 1e-08  ;;  %v707_v55 = vmul.f32 %v704_v21, %v6673_v59  ;;  %vm836_vm5 = vweird.f32 %v4008_v63 }
 0x144   :  { %v849_v9 = vsel %vm848_vm4, %v4075_v22, %v845_v46  ;;  %v4141_v0 = vmax.f32 %v986_v7, 1e-08  ;;  %v713_v23 = vmul.f32 %v704_v21, %v3776_v13  ;;  %v785_v3 = vmin.f32 %v782_v37, 0.0  ;;  %vm4147_vm6 = vmor %vm836_vm5, %vm837_vm15  ;;  %v6677_v21 = vld [vmem:[#allocation22_spill] sm:$0xff] }
 0x145   :  { %v793_v20 = vadd.f32 %v3949_v41, %v712_v25  ;;  %2291 = vrsqrt.f32 %v4136_v43  ;;  %v799_v63 = vadd.f32 %v3983_v18, %v718_v27  ;;  %v839_v22 = vsel %vm4147_vm6, %v4060_v50, %v835_v30  ;;  %v4180_v25 = vpop.permute.xlu1 %1207 }
 0x146   :  { %v4152_v8 = vpop.eup %2289  ;;  %v861_v13 = vmul.f32 1000.0, %v849_v9  ;;  %2293 = vrsqrt.f32 %v4141_v0  ;;  %v710_v41 = vadd.f32 %v707_v55, %v641_v47  ;;  %v716_v56 = vadd.f32 %v713_v23, %v647_v42 }
 0x147   :  { %v786_v10 = vmin.f32 %v783_v40, 0.0  ;;  %v912_v39 = vmul.f32 %v4152_v8, %v4115_v6  ;;  %v4163_v62 = vmul.f32 %v4035_v57, %v6676_v15  ;;  %v4167_v18 = vmul.f32 %v4035_v57, %v6677_v21  ;;  %v6685_v15 = vld [vmem:[#allocation26_spill] sm:$0xff] }
 0x148   :  { %v4171_v50 = vmul.f32 %v4052_v53, %v3594_v26  ;;  %v4175_v44 = vmul.f32 %v4052_v53, %v3606_v35  ;;  %v788_v48 = vmul.f32 %v785_v3, %v3551_v60  ;;  %v794_v33 = vmul.f32 %v785_v3, %v3826_v5  ;;  %v6680_v53 = vld [vmem:[#allocation24_spill] sm:$0xff] }
 0x149   :  { %v860_v2 = vmul.f32 1000.0, %v839_v22  ;;  %v913_v16 = vmul.f32 %v4152_v8, %v912_v39  ;;  %v864_v52 = vsub.f32 500.0, %v861_v13  ;;  %v4183_v57 = vadd.f32 %v4014_v58, %v793_v20  ;;  %v4213_v20 = vpop.permute.xlu0 %1205 }
 0x14a   :  { %v4186_v26 = vadd.f32 %v4018_v45, %v799_v63  ;;  %v789_v60 = vmul.f32 %v786_v10, %v6680_v53  ;;  %v4192_v37 = vadd.f32 %v788_v48, %v710_v41  ;;  %v4194_v5 = vadd.f32 %v794_v33, %v716_v56  ;;  %v6683_v63 = vld [vmem:[#allocation10_spill] sm:$0xff] }
 0x14b   :  { %6678 = vst [vmem:[#allocation8_spill] sm:$0xff] %v4183_v57  ;;  %v4189_v35 = vpop.eup %2291  ;;  %v914_v19 = vmul.f32 0.5, %v913_v16  ;;  %v795_v30 = vmul.f32 %v786_v10, %v3829_v32  ;;  %vm917_vm7 = vweird.f32 %v4115_v6  ;;  %v1218_v45 = vrot.slane %v4180_v25, 2 }
 0x14c   :  { %6679 = vst [vmem:[#allocation5_spill] sm:$0xff] %v4186_v26  ;;  %v4196_v31 = vpop.eup %2293  ;;  %v1823_v58 = vmul.f32 %v4189_v35, %v4136_v43  ;;  %v863_v46 = vsub.f32 500.0, %v860_v2  ;;  %vm918_vm8 = vweird.f32 %v4152_v8  ;;  %v792_v42 = vadd.f32 %v789_v60, %v4026_v61 }
 0x14d   :  { %v915_v7 = vsub.f32 1.5, %v914_v19  ;;  %v993_v47 = vmul.f32 %v4196_v31, %v4141_v0  ;;  %v867_v40 = vmin.f32 %v864_v52, 0.0  ;;  %v798_v55 = vadd.f32 %v795_v30, %v4032_v14  ;;  %vm4217_vm9 = vmor %vm917_vm7, %vm918_vm8 }
 0x14e   :  { %v1824_v32 = vmul.f32 %v4189_v35, %v1823_v58  ;;  %v6684_v22 = vrot.slane %v6683_v63, 2  ;;  %v1299_v13 = vrot.slane %v4180_v25, 1  ;;  %v6458_v41 = vrot.slane %v4180_v25, 7  ;;  %v6688_v58 = vld [vmem:[#allocation25_spill] sm:$0xff] }
 0x14f   :  { %v916_v9 = vmul.f32 %v4152_v8, %v915_v7  ;;  %v994_v23 = vmul.f32 %v4196_v31, %v993_v47  ;;  %v866_v56 = vmin.f32 %v863_v46, 0.0  ;;  %v4230_v6 = vsub.f32 %v6662_v29, %v4180_v25 }
 0x150   :  { %v1220_v14 = vsel %vm6497_vm0, %v1218_v45, %v6684_v22  ;;  %v1825_v10 = vmul.f32 0.5, %v1824_v32  ;;  %v6457_v39 = vrot.slane %v4180_v25, 6  ;;  %v870_v21 = vmul.f32 %v867_v40, %v6685_v15 }
 0x151   :  { %v876_v48 = vmul.f32 %v867_v40, %v3925_v51  ;;  %v995_v33 = vmul.f32 0.5, %v994_v23  ;;  %v1217_v2 = vrot.slane %v4213_v20, 2  ;;  %v920_v16 = vsel %vm4217_vm9, %v4152_v8, %v916_v9 }
 0x152   :  { %vm998_vm10 = vweird.f32 %v4141_v0  ;;  %vm1828_vm11 = vweird.f32 %v4136_v43  ;;  %v4242_v52 = vsub.f32 %v6662_v29, %v1220_v14  ;;  %v873_v53 = vadd.f32 %v870_v21, %v792_v42 }
 0x153   :  { %v879_v60 = vadd.f32 %v876_v48, %v798_v55  ;;  %v6686_v19 = vrot.slane %v6683_v63, 1  ;;  %v6687_v30 = vrot.slane %v6683_v63, 7  ;;  %v869_v46 = vmul.f32 %v866_v56, %v6688_v58 }
 0x154   :  { %v875_v7 = vmul.f32 %v866_v56, %v3904_v54  ;;  %v1826_v47 = vsub.f32 1.5, %v1825_v10  ;;  %v6689_v42 = vrot.slane %v6683_v63, 6  ;;  %v941_v32 = vmul.f32 1000.0, %v920_v16  ;;  %v6690_v54 = vld [vmem:[#allocation7_spill] sm:$0xff] }
 0x155   :  { %v1301_v51 = vsel %vm6496_vm1, %v1299_v13, %v6686_v19  ;;  %v1451_v8 = vsel %vm6495_vm2, %v6458_v41, %v6687_v30  ;;  %v996_v55 = vsub.f32 1.5, %v995_v33  ;;  %v1221_v9 = vsel %vm6497_vm0, %v1217_v2, %v1218_v45  ;;  %v4404_v30 = vld [vmem:[%s6372_s0 + $0x8] sm:$0xff] }
 0x156   :  { %v1532_v40 = vsel %vm6494_vm3, %v6457_v39, %v6689_v42  ;;  %v1298_v23 = vrot.slane %v4213_v20, 1  ;;  %vm1829_vm12 = vweird.f32 %v4189_v35  ;;  %v4267_v38 = vsub.f32 %v6662_v29, %v1301_v51 }
 0x157   :  { %v4270_v22 = vsub.f32 %v6690_v54, %v1451_v8  ;;  %v6692_v14 = vrot.slane %v6683_v63, 2  ;;  %v954_v10 = vadd.f32 %v4163_v62, %v873_v53  ;;  %v960_v15 = vadd.f32 %v4167_v18, %v879_v60  ;;  %vm4297_vm14 = vmor %vm1828_vm11, %vm1829_vm12  ;;  %v4304_v53 = vld [vmem:[%s6372_s0 + $0x10] sm:$0xff] }
 0x158   :  { %vm999_vm13 = vweird.f32 %v4196_v31  ;;  %v4280_v45 = vsub.f32 %v6690_v54, %v1532_v40  ;;  %v1827_v21 = vmul.f32 %v4189_v35, %v1826_v47  ;;  %v4285_v48 = vmul.f32 %v4242_v52, %v4242_v52 }
 0x159   :  { %6691 = vst [vmem:[#allocation3_spill] sm:$0xff] %v4270_v22  ;;  %v1222_v56 = vsel %vm6497_vm0, %v6692_v14, %v1217_v2  ;;  %v4289_v33 = vmul.f32 %v4230_v6, %v4230_v6  ;;  %v4292_v2 = vsub.f32 %v6659_v4, %v1221_v9  ;;  %v944_v62 = vsub.f32 500.0, %v941_v32  ;;  %vm4319_vm15 = vmor %vm998_vm10, %vm999_vm13  ;;  %v4373_v9 = vpop.permute.xlu1 %1213 }
 0x15a   :  { %6693 = vst [vmem:[#allocation4_spill] sm:$0xff] %v4280_v45  ;;  %v997_v18 = vmul.f32 %v4196_v31, %v996_v55  ;;  %v4307_v60 = vsub.f32 %v4304_v53, %v1222_v56  ;;  %v1302_v19 = vsel %vm6496_vm1, %v1298_v23, %v1299_v13  ;;  %v4312_v51 = vadd.f32 %v869_v46, %v4192_v37 }
 0x15b   :  { %6694 = vst [vmem:[#allocation11_spill] sm:$0xff] %v4292_v2  ;;  %v4315_v43 = vadd.f32 %v875_v7, %v4194_v5  ;;  %v4325_v8 = vmul.f32 %v4267_v38, %v4267_v38  ;;  %v6700_v58 = vrot.slane %v6683_v63, 1  ;;  %v4332_v37 = vadd.f32 %v4171_v50, %v954_v10  ;;  %v4355_v50 = vld [vmem:[%s6372_s0] sm:$0xff] }
 0x15c   :  { %6697 = vst [vmem:[#allocation6_spill] sm:$0xff] %v4307_v60  ;;  %v4335_v5 = vadd.f32 %v4175_v44, %v960_v15  ;;  %v4339_v0 = vmul.f32 %v4270_v22, %v4270_v22  ;;  %v4343_v46 = vmul.f32 %v4280_v45, %v4280_v45  ;;  %v1831_v7 = vsel %vm4297_vm14, %v4189_v35, %v1827_v21 }
 0x15d   :  { %v1303_v13 = vsel %vm6496_vm1, %v6700_v58, %v1298_v23  ;;  %v4350_v47 = vmul.f32 %v4292_v2, %v4292_v2  ;;  %v4358_v44 = vsub.f32 %v4355_v50, %v1302_v19  ;;  %v6454_v42 = vrot.slane %v3633_v34, 7  ;;  %v4378_v23 = vld [vmem:[%s6371_s1 + $0x8] sm:$0xff] }
 0x15e   :  { %v4361_v40 = vmin.f32 %v944_v62, 0.0  ;;  %v1001_v35 = vsel %vm4319_vm15, %v4196_v31, %v997_v18  ;;  %v4368_v32 = vmul.f32 %v4307_v60, %v4307_v60  ;;  %v4371_v55 = vsub.f32 %v4304_v53, %v1303_v13 }
 0x15f   :  { %6701 = vst [vmem:[#allocation18_spill] sm:$0xff] %v4358_v44  ;;  %v6455_v14 = vrot.slane %v4378_v23, 7  ;;  %v6449_v56 = vrot.slane %v3633_v34, 6  ;;  %v6450_v31 = vrot.slane %v4378_v23, 6  ;;  %v6448_v10 = vrot.slane %v4355_v50, 7 }
 0x160   :  { %6702 = vst [vmem:[#allocation20_spill] sm:$0xff] %v4371_v55  ;;  %v4384_v15 = vmul.f32 1000.0, %v1831_v7  ;;  %v1448_v21 = vrot.slane %v4213_v20, 7  ;;  %v6456_v62 = vrot.slane %v6662_v29, 7  ;;  %v6451_v18 = vrot.slane %v4355_v50, 6 }
 0x161   :  { %v1053_v16 = vsel %vm6495_vm2, %v6454_v42, %v6455_v14  ;;  %v1134_v19 = vsel %vm6494_vm3, %v6449_v56, %v6450_v31  ;;  %v6452_v58 = vrot.slane %v4404_v30, 6  ;;  %v6453_v13 = vrot.slane %v4373_v9, 2 }
 0x162   :  { %v4409_v7 = vsub.f32 %v4378_v23, %v1053_v16  ;;  %v4412_v61 = vsub.f32 %v4378_v23, %v1134_v19  ;;  %v1047_v3 = vsel %vm6495_vm2, %v6448_v10, %v6456_v62  ;;  %v6461_v59 = vrot.slane %v4373_v9, 1  ;;  %v6703_v19 = vld [vmem:[#allocation15_spill] sm:$0xff] }
 0x163   :  { %v4422_v27 = vsub.f32 %v4404_v30, %v1047_v3  ;;  %v1128_v16 = vsel %vm6494_vm3, %v6451_v18, %v6452_v58  ;;  %v6704_v49 = vrot.slane %v6703_v19, 2  ;;  %v4438_v10 = vsub.f32 %v4378_v23, %v4373_v9 }
 0x164   :  { %v1065_v3 = vmul.f32 %v4409_v7, %v4409_v7  ;;  %v1146_v56 = vmul.f32 %v4412_v61, %v4412_v61  ;;  %v4445_v31 = vsub.f32 %v4404_v30, %v1128_v16  ;;  %v6465_v14 = vrot.slane %v4373_v9, 7 }
 0x165   :  { %v1226_v12 = vsel %vm6497_vm0, %v6453_v13, %v6704_v49  ;;  %6705 = vst [vmem:[#allocation2_spill] sm:$0xff] %v4438_v10  ;;  %v1062_v58 = vmul.f32 %v4422_v27, %v4422_v27  ;;  %v6706_v49 = vrot.slane %v6703_v19, 1  ;;  %v1389_v42 = vmul.f32 %v4438_v10, %v4438_v10 }
 0x166   :  { %v4448_v18 = vsub.f32 %v4378_v23, %v1226_v12  ;;  %v1143_v16 = vmul.f32 %v4445_v31, %v4445_v31  ;;  %v6466_v39 = vrot.slane %v4373_v9, 6  ;;  %v1022_v41 = vmul.f32 1000.0, %v1001_v35  ;;  %v4482_v35 = vld [vmem:[%s6371_s1 + $0x10] sm:$0xff] }
 0x167   :  { %v1307_v13 = vsel %vm6496_vm1, %v6461_v59, %v6706_v49  ;;  %v1068_v1 = vadd.f32 %v1065_v3, %v1062_v58  ;;  %v1392_v49 = vadd.f32 %v1389_v42, %v4289_v33  ;;  %v6707_v59 = vrot.slane %v6703_v19, 7 }
 0x168   :  { %v1239_v12 = vmul.f32 %v4448_v18, %v4448_v18  ;;  %v4466_v62 = vsub.f32 %v4378_v23, %v1307_v13  ;;  %v1149_v2 = vadd.f32 %v1146_v56, %v1143_v16  ;;  %v1837_v42 = vsub.f32 500.0, %v4384_v15 }
 0x169   :  { %v1457_v60 = vsel %vm6495_vm2, %v6465_v14, %v6707_v59  ;;  %v4490_v58 = vmul.f32 %v4358_v44, %v4358_v44  ;;  %v4492_v59 = vmax.f32 %v1068_v1, 1e-08  ;;  %v4512_v14 = vmax.f32 %v1392_v49, 1e-08 }
 0x16a   :  { %v1242_v45 = vadd.f32 %v1239_v12, %v4285_v48  ;;  %v1320_v13 = vmul.f32 %v4466_v62, %v4466_v62  ;;  %v4485_v33 = vsub.f32 %v4482_v35, %v1457_v60  ;;  %v6710_v48 = vrot.slane %v6703_v19, 6 }
 0x16b   :  { %6709 = vst [vmem:[#allocation13_spill] sm:$0xff] %v4490_v58  ;;  %v4500_v3 = vmax.f32 %v1149_v2, 1e-08  ;;  %v6711_v12 = vrot.slane %v6683_v63, 7  ;;  %2295 = vrsqrt.f32 %v4492_v59  ;;  %v1025_v2 = vsub.f32 500.0, %v1022_v41 }
 0x16c   :  { %6708 = vst [vmem:[#allocation16_spill] sm:$0xff] %v4485_v33  ;;  %v1538_v56 = vsel %vm6494_vm3, %v6466_v39, %v6710_v48  ;;  %v4502_v16 = vmax.f32 %v1242_v45, 1e-08  ;;  %v1323_v60 = vadd.f32 %v1320_v13, %v4325_v8  ;;  %v1471_v15 = vmul.f32 %v4485_v33, %v4485_v33 }
 0x16d   :  { %v1453_v1 = vsel %vm6495_vm2, %v6711_v12, %v1448_v21  ;;  %v4515_v48 = vsub.f32 %v4482_v35, %v1538_v56  ;;  %v1529_v45 = vrot.slane %v4213_v20, 6  ;;  %2297 = vrsqrt.f32 %v4500_v3  ;;  %v6714_v56 = vld [vmem:[#allocation29_spill] sm:$0xff] }
 0x16e   :  { %v4519_v8 = vmax.f32 %v1323_v60, 1e-08  ;;  %v4523_v13 = vsub.f32 %v4355_v50, %v4213_v20  ;;  %2299 = vrsqrt.f32 %v4502_v16  ;;  %v1474_v12 = vadd.f32 %v1471_v15, %v4339_v0 }
 0x16f   :  { %6712 = vst [vmem:[#allocation14_spill] sm:$0xff] %v4515_v48  ;;  %v1552_v49 = vmul.f32 %v4515_v48, %v4515_v48  ;;  %v950_v41 = vmul.f32 %v4361_v40, %v4073_v36  ;;  %v956_v39 = vmul.f32 %v4361_v40, %v6714_v56  ;;  %v6715_v60 = vrot.slane %v4180_v25, 7 }
 0x170   :  { %6713 = vst [vmem:[#allocation27_spill] sm:$0xff] %v4523_v13  ;;  %2301 = vrsqrt.f32 %v4519_v8  ;;  %v4539_v20 = vsub.f32 %v4355_v50, %v1453_v1  ;;  %v4542_v0 = vmax.f32 %v1474_v12, 1e-08  ;;  %v1028_v36 = vmin.f32 %v1025_v2, 0.0 }
 0x171   :  { %v1452_v44 = vsel %vm6495_vm2, %v1448_v21, %v6715_v60  ;;  %2303 = vrsqrt.f32 %v4512_v14  ;;  %v1555_v15 = vadd.f32 %v1552_v49, %v4343_v46  ;;  %v1840_v48 = vmin.f32 %v1837_v42, 0.0  ;;  %v4553_v1 = vpop.eup %2295 }
 0x172   :  { %6716 = vst [vmem:[#allocation17_spill] sm:$0xff] %v4539_v20  ;;  %v6717_v40 = vrot.slane %v4180_v25, 6  ;;  %v6718_v21 = vrot.slane %v6683_v63, 6  ;;  %v4557_v12 = vmul.f32 %v4371_v55, %v4371_v55  ;;  %v4561_v46 = vmul.f32 %v4523_v13, %v4523_v13 }
 0x173   :  { %2305 = vrsqrt.f32 %v4542_v0  ;;  %v4564_v25 = vmax.f32 %v1555_v15, 1e-08  ;;  %v4566_v42 = vpop.eup %2297  ;;  %v953_v63 = vadd.f32 %v950_v41, %v4312_v51  ;;  %v4570_v2 = vadd.f32 %v956_v39, %v4315_v43  ;;  %v6725_v41 = vld [vmem:[#allocation23_spill] sm:$0xff] }
 0x174   :  { %v1533_v56 = vsel %vm6494_vm3, %v1529_v45, %v6717_v40  ;;  %v1534_v60 = vsel %vm6494_vm3, %v6718_v21, %v1529_v45  ;;  %6719 = vst [vmem:[#allocation21_spill] sm:$0xff] %v4557_v12  ;;  %v4573_v45 = vsub.f32 %v4404_v30, %v1452_v44  ;;  %v1084_v49 = vmul.f32 %v4553_v1, %v4492_v59  ;;  %v4577_v40 = vpop.eup %2299 }
 0x175   :  { %6720 = vst [vmem:[#allocation22_spill] sm:$0xff] %v4561_v46  ;;  %v4581_v21 = vmul.f32 %v4539_v20, %v4539_v20  ;;  %v4584_v15 = vsub.f32 %v4355_v50, %v1534_v60  ;;  %v4587_v51 = vsub.f32 %v4404_v30, %v1533_v56  ;;  %v1165_v39 = vmul.f32 %v4566_v42, %v4500_v3 }
 0x176   :  { %6721 = vst [vmem:[#allocation24_spill] sm:$0xff] %v4573_v45  ;;  %v4591_v43 = vpop.eup %2301  ;;  %v1031_v44 = vmul.f32 %v1028_v36, %v4118_v17  ;;  %v4595_v13 = vmul.f32 %v1840_v48, %v6725_v41  ;;  %v1085_v55 = vmul.f32 %v4553_v1, %v1084_v49  ;;  %v1258_v20 = vmul.f32 %v4577_v40, %v4502_v16 }
 0x177   :  { %6722 = vst [vmem:[#allocation10_spill] sm:$0xff] %v4581_v21  ;;  %v4600_v60 = vpop.eup %2303  ;;  %vm1089_vm4 = vweird.f32 %v4492_v59  ;;  %v1166_v56 = vmul.f32 %v4566_v42, %v1165_v39  ;;  %v1339_v21 = vmul.f32 %v4591_v43, %v4519_v8  ;;  %2307 = vrsqrt.f32 %v4564_v25 }
 0x178   :  { %6723 = vst [vmem:[#allocation26_spill] sm:$0xff] %v4584_v15  ;;  %v1086_v17 = vmul.f32 0.5, %v1085_v55  ;;  %vm1090_vm5 = vweird.f32 %v4553_v1  ;;  %v1259_v41 = vmul.f32 %v4577_v40, %v1258_v20  ;;  %v1408_v49 = vmul.f32 %v4600_v60, %v4512_v14 }
 0x179   :  { %6724 = vst [vmem:[#allocation25_spill] sm:$0xff] %v4587_v51  ;;  %v1167_v46 = vmul.f32 0.5, %v1166_v56  ;;  %v1340_v26 = vmul.f32 %v4591_v43, %v1339_v21  ;;  %v1051_v57 = vrot.slane %v4482_v35, 7  ;;  %vm4621_vm6 = vmor %vm1089_vm4, %vm1090_vm5  ;;  %vm1170_vm7 = vweird.f32 %v4500_v3 }
 0x17a   :  { %6726 = vst [vmem:[#allocation7_spill] sm:$0xff] %v4595_v13  ;;  %v4611_v13 = vpop.eup %2305  ;;  %v1087_v12 = vsub.f32 1.5, %v1086_v17  ;;  %v1260_v33 = vmul.f32 0.5, %v1259_v41  ;;  %v1409_v55 = vmul.f32 %v4600_v60, %v1408_v49  ;;  %vm1171_vm8 = vweird.f32 %v4566_v42 }
 0x17b   :  { %v1499_v22 = vmul.f32 %v4611_v13, %v4542_v0  ;;  %v1168_v56 = vsub.f32 1.5, %v1167_v46  ;;  %v1341_v21 = vmul.f32 0.5, %v1340_v26  ;;  %v4628_v17 = vmul.f32 %v1840_v48, %v4050_v28  ;;  %v6732_v48 = vld [vmem:[#allocation30_spill] sm:$0xff]  ;;  %vm4649_vm9 = vmor %vm1170_vm7, %vm1171_vm8 }
 0x17c   :  { %v1088_v41 = vmul.f32 %v4553_v1, %v1087_v12  ;;  %v1261_v49 = vsub.f32 1.5, %v1260_v33  ;;  %v1410_v39 = vmul.f32 0.5, %v1409_v55  ;;  %v4635_v59 = vmul.f32 %v4573_v45, %v4573_v45 }
 0x17d   :  { %6729 = vst [vmem:[#allocation15_spill] sm:$0xff] %v4628_v17  ;;  %v4631_v58 = vpop.eup %2307  ;;  %v1169_v46 = vmul.f32 %v4566_v42, %v1168_v56  ;;  %v1500_v3 = vmul.f32 %v4611_v13, %v1499_v22  ;;  %v6730_v10 = vrot.slane %v4304_v53, 7  ;;  %v6731_v26 = vrot.slane %v6662_v29, 7 }
 0x17e   :  { %v1037_v33 = vmul.f32 %v1028_v36, %v6732_v48  ;;  %v1092_v12 = vsel %vm4621_vm6, %v4553_v1, %v1088_v41  ;;  %v1342_v56 = vsub.f32 1.5, %v1341_v21  ;;  %v6735_v22 = vrot.slane %v4378_v23, 7 }
 0x17f   :  { %v1046_v28 = vsel %vm6495_vm2, %v6731_v26, %v6730_v10  ;;  %v4657_v29 = vadd.f32 %v1031_v44, %v953_v63  ;;  %v4661_v10 = vmul.f32 %v4584_v15, %v4584_v15  ;;  %v4665_v36 = vmul.f32 %v4587_v51, %v4587_v51 }
 0x180   :  { %v1052_v17 = vsel %vm6495_vm2, %v6735_v22, %v1051_v57  ;;  %vm1264_vm10 = vweird.f32 %v4577_v40  ;;  %v1262_v1 = vmul.f32 %v4577_v40, %v1261_v49  ;;  %v1411_v20 = vsub.f32 1.5, %v1410_v39 }
 0x181   :  { %6736 = vst [vmem:[#allocation29_spill] sm:$0xff] %v4657_v29  ;;  %v1580_v21 = vmul.f32 %v4631_v58, %v4564_v25  ;;  %v4672_v41 = vsub.f32 %v4304_v53, %v1046_v28  ;;  %v1104_v63 = vmul.f32 1000.0, %v1092_v12  ;;  %v1173_v44 = vsel %vm4649_vm9, %v4566_v42, %v1169_v46 }
 0x182   :  { %v1501_v26 = vmul.f32 0.5, %v1500_v3  ;;  %v4678_v48 = vsub.f32 %v4482_v35, %v1052_v17  ;;  %vm1263_vm11 = vweird.f32 %v4502_v16  ;;  %v1343_v49 = vmul.f32 %v4591_v43, %v1342_v56 }
 0x183   :  { %vm1345_vm12 = vweird.f32 %v4591_v43  ;;  %v6737_v39 = vrot.slane %v3633_v34, 2  ;;  %v6738_v28 = vrot.slane %v3432_v24, 2  ;;  %vm4689_vm13 = vmor %vm1263_vm11, %vm1264_vm10  ;;  %vm1344_vm14 = vweird.f32 %v4519_v8 }
 0x184   :  { %vm1414_vm15 = vweird.f32 %v4600_v60  ;;  %v6741_v16 = vrot.slane %v3633_v34, 1  ;;  %v6742_v42 = vrot.slane %v3432_v24, 1  ;;  %v6743_v46 = vrot.slane %v3633_v34, 7  ;;  %vm4710_vm4 = vmor %vm1344_vm14, %vm1345_vm12 }
 0x185   :  { %v892_v12 = vsel %vm6497_vm0, %v6738_v28, %v6737_v39  ;;  %v1185_v56 = vmul.f32 1000.0, %v1173_v44  ;;  %v1266_v22 = vsel %vm4689_vm13, %v4577_v40, %v1262_v1  ;;  %v1412_v8 = vmul.f32 %v4600_v60, %v1411_v20  ;;  %v4737_v44 = vld [vmem:[%s6371_s1] sm:$0xff] }
 0x186   :  { %v973_v17 = vsel %vm6496_vm1, %v6742_v42, %v6741_v16  ;;  %v1054_v3 = vsel %vm6495_vm2, %v1051_v57, %v6743_v46  ;;  %v1581_v39 = vmul.f32 %v4631_v58, %v1580_v21  ;;  %v1107_v28 = vsub.f32 500.0, %v1104_v63 }
 0x187   :  { %v1502_v16 = vsub.f32 1.5, %v1501_v26  ;;  %v1063_v42 = vmul.f32 %v4672_v41, %v4672_v41  ;;  %v1066_v57 = vmul.f32 %v4678_v48, %v4678_v48  ;;  %v1347_v40 = vsel %vm4710_vm4, %v4591_v43, %v1343_v49 }
 0x188   :  { %vm1413_vm5 = vweird.f32 %v4512_v14  ;;  %v4723_v1 = vsub.f32 %v4482_v35, %v892_v12  ;;  %v4726_v20 = vsub.f32 %v4482_v35, %v973_v17  ;;  %v1278_v21 = vmul.f32 1000.0, %v1266_v22 }
 0x189   :  { %vm4730_vm6 = vmor %vm1413_vm5, %vm1414_vm15  ;;  %v4740_v14 = vsub.f32 %v4737_v44, %v1054_v3  ;;  %v1126_v43 = vrot.slane %v4304_v53, 6  ;;  %v1132_v26 = vrot.slane %v4482_v35, 6  ;;  %v1188_v49 = vsub.f32 500.0, %v1185_v56 }
 0x18a   :  { %v1416_v12 = vsel %vm4730_vm6, %v4600_v60, %v1412_v8  ;;  %vm1505_vm7 = vweird.f32 %v4611_v13  ;;  %v4748_v55 = vmul.f32 0.5, %v1581_v39  ;;  %v1110_v17 = vmin.f32 %v1107_v28, 0.0 }
 0x18b   :  { %v1359_v46 = vmul.f32 1000.0, %v1347_v40  ;;  %v1503_v22 = vmul.f32 %v4611_v13, %v1502_v16  ;;  %v1069_v24 = vadd.f32 %v1066_v57, %v1063_v42  ;;  %v4752_v3 = vadd.f32 %v1037_v33, %v4570_v2 }
 0x18c   :  { %vm1504_vm8 = vweird.f32 %v4542_v0  ;;  %v904_v56 = vmul.f32 %v4723_v1, %v4723_v1  ;;  %v985_v60 = vmul.f32 %v4726_v20, %v4726_v20  ;;  %v1281_v8 = vsub.f32 500.0, %v1278_v21 }
 0x18d   :  { %6748 = vst [vmem:[#allocation23_spill] sm:$0xff] %v4752_v3  ;;  %v4759_v63 = vmul.f32 1000.0, %v1416_v12  ;;  %v4761_v39 = vmax.f32 %v1069_v24, 1e-08  ;;  %v6749_v28 = vrot.slane %v4404_v30, 6  ;;  %v1191_v2 = vmin.f32 %v1188_v49, 0.0  ;;  %vm4769_vm9 = vmor %vm1504_vm8, %vm1505_vm7 }
 0x18e   :  { %v1064_v42 = vmul.f32 %v4740_v14, %v4740_v14  ;;  %v6752_v57 = vrot.slane %v4378_v23, 6  ;;  %v1113_v40 = vmul.f32 %v1110_v17, %v4422_v27  ;;  %v1362_v21 = vsub.f32 500.0, %v1359_v46 }
 0x18f   :  { %v1127_v16 = vsel %vm6494_vm3, %v6749_v28, %v1126_v43  ;;  %v1507_v49 = vsel %vm4769_vm9, %v4611_v13, %v1503_v22  ;;  %2309 = vrsqrt.f32 %v4761_v39  ;;  %v1119_v12 = vmul.f32 %v1110_v17, %v4409_v7 }
 0x190   :  { %v1133_v30 = vsel %vm6494_vm3, %v6752_v57, %v1132_v26  ;;  %v6753_v24 = vrot.slane %v3633_v34, 6  ;;  %v4791_v33 = vsub.f32 %v4304_v53, %v1127_v16  ;;  %v1284_v27 = vmin.f32 %v1281_v8, 0.0  ;;  %v4811_v16 = vpop.permute.xlu0 %1211 }
 0x191   :  { %v4794_v57 = vsub.f32 %v4482_v35, %v1133_v30  ;;  %v1431_v46 = vsub.f32 500.0, %v4759_v63  ;;  %v6755_v22 = vrot.slane %v6659_v4, 2  ;;  %v6756_v7 = vrot.slane %v6690_v54, 2 }
 0x192   :  { %v1135_v28 = vsel %vm6494_vm3, %v1132_v26, %v6753_v24  ;;  %v1194_v26 = vmul.f32 %v1191_v2, %v4445_v31  ;;  %v1144_v17 = vmul.f32 %v4791_v33, %v4791_v33  ;;  %v1200_v0 = vmul.f32 %v1191_v2, %v4412_v61 }
 0x193   :  { %v4798_v13 = vsub.f32 %v4737_v44, %v1135_v28  ;;  %v886_v34 = vsel %vm6497_vm0, %v6756_v7, %v6755_v22  ;;  %v1147_v8 = vmul.f32 %v4794_v57, %v4794_v57  ;;  %v6757_v30 = vrot.slane %v6659_v4, 1 }
 0x194   :  { %v4814_v63 = vsub.f32 %v4304_v53, %v886_v34  ;;  %v6758_v24 = vrot.slane %v6690_v54, 1  ;;  %v6759_v28 = vrot.slane %v4355_v50, 7  ;;  %v6760_v22 = vrot.slane %v4304_v53, 7 }
 0x195   :  { %6754 = vst [vmem:[#allocation30_spill] sm:$0xff] %v4798_v13  ;;  %v6761_v51 = vrot.slane %v4355_v50, 6  ;;  %v1365_v61 = vmin.f32 %v1362_v21, 0.0  ;;  %v1145_v4 = vmul.f32 %v4798_v13, %v4798_v13  ;;  %v1150_v54 = vadd.f32 %v1147_v8, %v1144_v17 }
 0x196   :  { %v967_v31 = vsel %vm6496_vm1, %v6758_v24, %v6757_v30  ;;  %v1048_v7 = vsel %vm6495_vm2, %v6760_v22, %v6759_v28  ;;  %v901_v2 = vmul.f32 %v4814_v63, %v4814_v63  ;;  %v4837_v30 = vpop.eup %2309  ;;  %v6763_v45 = vrot.slane %v6703_v19, 2 }
 0x197   :  { %v1129_v34 = vsel %vm6494_vm3, %v1126_v43, %v6761_v51  ;;  %v4840_v24 = vsub.f32 %v4304_v53, %v967_v31  ;;  %v4843_v28 = vsub.f32 %v4355_v50, %v1048_v7  ;;  %v1223_v51 = vrot.slane %v4811_v16, 2 }
 0x198   :  { %v4846_v22 = vsub.f32 %v4355_v50, %v1129_v34  ;;  %v1116_v43 = vadd.f32 %v1113_v40, %v4332_v37  ;;  %v1094_v21 = vmul.f32 %v4837_v30, %v4761_v39  ;;  %v4852_v17 = vmax.f32 %v1150_v54, 1e-08 }
 0x199   :  { %v907_v8 = vadd.f32 %v904_v56, %v901_v2  ;;  %v982_v53 = vmul.f32 %v4840_v24, %v4840_v24  ;;  %v1061_v31 = vmul.f32 %v4843_v28, %v4843_v28  ;;  %v6762_v7 = vrot.slane %v4373_v9, 2 }
 0x19a   :  { %v1142_v50 = vmul.f32 %v4846_v22, %v4846_v22  ;;  %v1122_v40 = vadd.f32 %v1119_v12, %v4335_v5  ;;  %v1095_v34 = vmul.f32 %v4837_v30, %v1094_v21  ;;  %2311 = vrsqrt.f32 %v4852_v17 }
 0x19b   :  { %v1227_v37 = vsel %vm6497_vm0, %v1223_v51, %v6762_v7  ;;  %v4867_v56 = vmax.f32 %v907_v8, 1e-08  ;;  %v988_v54 = vadd.f32 %v985_v60, %v982_v53  ;;  %v1067_v2 = vadd.f32 %v1064_v42, %v1061_v31 }
 0x19c   :  { %v1148_v15 = vadd.f32 %v1145_v4, %v1142_v50  ;;  %v1228_v13 = vsel %vm6497_vm0, %v6763_v45, %v1223_v51  ;;  %v1287_v3 = vmul.f32 %v1284_v27, %v4242_v52  ;;  %v4874_v29 = vmul.f32 1000.0, %v1507_v49 }
 0x19d   :  { %vm1586_vm10 = vweird.f32 %v4631_v58  ;;  %2313 = vrsqrt.f32 %v4867_v56  ;;  %v4879_v5 = vsub.f32 %v4737_v44, %v1227_v37  ;;  %v4881_v12 = vmax.f32 %v988_v54, 1e-08 }
 0x19e   :  { %v4883_v60 = vmax.f32 %v1067_v2, 1e-08  ;;  %v4885_v42 = vmax.f32 %v1148_v15, 1e-08  ;;  %v4888_v4 = vsub.f32 %v4482_v35, %v1228_v13  ;;  %v1197_v45 = vadd.f32 %v1194_v26, %v1116_v43 }
 0x19f   :  { %v1293_v52 = vmul.f32 %v1284_v27, %v4448_v18  ;;  %vm1585_vm11 = vweird.f32 %v4564_v25  ;;  %v1096_v49 = vmul.f32 0.5, %v1095_v34  ;;  %v1238_v51 = vmul.f32 %v4879_v5, %v4879_v5 }
 0x1a0   :  { %v1203_v21 = vadd.f32 %v1200_v0, %v1122_v40  ;;  %v4895_v8 = vmul.f32 %v1365_v61, %v4267_v38  ;;  %v4898_v53 = vmul.f32 %v1365_v61, %v4466_v62  ;;  %2315 = vrsqrt.f32 %v4881_v12  ;;  %v4901_v15 = vpop.eup %2311  ;;  %vm4950_vm5 = vmor %vm1585_vm11, %vm1586_vm10 }
 0x1a1   :  { %v4903_v13 = vmin.f32 %v1431_v46, 0.0  ;;  %2317 = vrsqrt.f32 %v4883_v60  ;;  %v1240_v18 = vmul.f32 %v4888_v4, %v4888_v4  ;;  %v1241_v27 = vadd.f32 %v1238_v51, %v4350_v47 }
 0x1a2   :  { %v6764_v38 = vsub.f32 1.5, %v4748_v55  ;;  %v1175_v0 = vmul.f32 %v4901_v15, %v4852_v17  ;;  %2319 = vrsqrt.f32 %v4885_v42  ;;  %v4918_v61 = vadd.f32 %v1287_v3, %v1197_v45 }
 0x1a3   :  { %v2314_v46 = vpop.eup %2313  ;;  %v1097_v43 = vsub.f32 1.5, %v1096_v49  ;;  %v1243_v31 = vadd.f32 %v1240_v18, %v4368_v32  ;;  %v4921_v50 = vmax.f32 %v1241_v27, 1e-08  ;;  %v4923_v47 = vadd.f32 %v1293_v52, %v1203_v21 }
 0x1a4   :  { %v4913_v62 = vmul.f32 %v4631_v58, %v6764_v38  ;;  %vm1099_vm12 = vweird.f32 %v4761_v39  ;;  %v1176_v55 = vmul.f32 %v4901_v15, %v1175_v0  ;;  %v932_v7 = vmul.f32 %v2314_v46, %v4867_v56 }
 0x1a5   :  { %vm1100_vm13 = vweird.f32 %v4837_v30  ;;  %vm1180_vm14 = vweird.f32 %v4852_v17  ;;  %v4930_v37 = vmax.f32 %v1243_v31, 1e-08  ;;  %2321 = vrsqrt.f32 %v4921_v50 }
 0x1a6   :  { %v4933_v3 = vpop.eup %2315  ;;  %v1177_v32 = vmul.f32 0.5, %v1176_v55  ;;  %v933_v40 = vmul.f32 %v2314_v46, %v932_v7  ;;  %vm937_vm15 = vweird.f32 %v4867_v56  ;;  %v1304_v34 = vrot.slane %v4811_v16, 1  ;;  %vm4964_vm7 = vmor %vm1099_vm12, %vm1100_vm13 }
 0x1a7   :  { %v4937_v54 = vpop.eup %2317  ;;  %v1098_v2 = vmul.f32 %v4837_v30, %v1097_v43  ;;  %vm1181_vm4 = vweird.f32 %v4901_v15  ;;  %v1013_v45 = vmul.f32 %v4933_v3, %v4881_v12  ;;  %2323 = vrsqrt.f32 %v4930_v37 }
 0x1a8   :  { %v4944_v52 = vpop.eup %2319  ;;  %v1178_v51 = vsub.f32 1.5, %v1177_v32  ;;  %v934_v21 = vmul.f32 0.5, %v933_v40  ;;  %vm938_vm6 = vweird.f32 %v2314_v46  ;;  %v1074_v18 = vmul.f32 %v4937_v54, %v4883_v60  ;;  %vm4977_vm9 = vmor %vm1180_vm14, %vm1181_vm4 }
 0x1a9   :  { %v1588_v27 = vsel %vm4950_vm5, %v4631_v58, %v4913_v62  ;;  %v1014_v38 = vmul.f32 %v4933_v3, %v1013_v45  ;;  %vm1018_vm8 = vweird.f32 %v4881_v12  ;;  %v1155_v0 = vmul.f32 %v4944_v52, %v4885_v42  ;;  %vm4990_vm11 = vmor %vm937_vm15, %vm938_vm6 }
 0x1aa   :  { %v1179_v43 = vmul.f32 %v4901_v15, %v1178_v51  ;;  %v935_v39 = vsub.f32 1.5, %v934_v21  ;;  %vm1079_vm10 = vweird.f32 %v4883_v60  ;;  %v6771_v62 = vrot.slane %v4373_v9, 1 }
 0x1ab   :  { %v4986_v55 = vpop.eup %2321  ;;  %v1015_v17 = vmul.f32 0.5, %v1014_v38  ;;  %vm1019_vm12 = vweird.f32 %v4933_v3  ;;  %v1075_v32 = vmul.f32 %v4937_v54, %v1074_v18  ;;  %v1156_v40 = vmul.f32 %v4944_v52, %v1155_v0 }
 0x1ac   :  { %v1308_v31 = vsel %vm6496_vm1, %v1304_v34, %v6771_v62  ;;  %v1102_v45 = vsel %vm4964_vm7, %v4837_v30, %v1098_v2  ;;  %v936_v49 = vmul.f32 %v2314_v46, %v935_v39  ;;  %v1248_v51 = vmul.f32 %v4986_v55, %v4921_v50  ;;  %vm5018_vm13 = vmor %vm1018_vm8, %vm1019_vm12 }
 0x1ad   :  { %v6774_v56 = vrot.slane %v6703_v19, 1  ;;  %v5006_v38 = vpop.eup %2323  ;;  %v1016_v62 = vsub.f32 1.5, %v1015_v17  ;;  %v1076_v26 = vmul.f32 0.5, %v1075_v32  ;;  %v1157_v18 = vmul.f32 0.5, %v1156_v40 }
 0x1ae   :  { %v5009_v0 = vsub.f32 %v4737_v44, %v1308_v31  ;;  %v1183_v30 = vsel %vm4977_vm9, %v4901_v15, %v1179_v43  ;;  %v940_v2 = vsel %vm4990_vm11, %v2314_v46, %v936_v49  ;;  %vm1080_vm14 = vweird.f32 %v4937_v54 }
 0x1af   :  { %v1309_v21 = vsel %vm6496_vm1, %v6774_v56, %v1304_v34  ;;  %v1249_v34 = vmul.f32 %v4986_v55, %v1248_v51  ;;  %v943_v39 = vmul.f32 1000.0, %v940_v2  ;;  %v1017_v31 = vmul.f32 %v4933_v3, %v1016_v62  ;;  %vm5040_vm5 = vmor %vm1079_vm10, %vm1080_vm14 }
 0x1b0   :  { %v1077_v17 = vsub.f32 1.5, %v1076_v26  ;;  %v1268_v15 = vmul.f32 %v5006_v38, %v4930_v37  ;;  %v1105_v43 = vmul.f32 1000.0, %v1102_v45  ;;  %v1158_v58 = vsub.f32 1.5, %v1157_v18 }
 0x1b1   :  { %vm1160_vm15 = vweird.f32 %v4885_v42  ;;  %vm1161_vm4 = vweird.f32 %v4944_v52  ;;  %v1591_v12 = vmul.f32 1000.0, %v1588_v27  ;;  %v1186_v46 = vmul.f32 1000.0, %v1183_v30 }
 0x1b2   :  { %v1021_v7 = vsel %vm5018_vm13, %v4933_v3, %v1017_v31  ;;  %v5033_v32 = vsub.f32 %v4482_v35, %v1309_v21  ;;  %v1078_v26 = vmul.f32 %v4937_v54, %v1077_v17  ;;  %v1159_v42 = vmul.f32 %v4944_v52, %v1158_v58  ;;  %vm5049_vm6 = vmor %vm1160_vm15, %vm1161_vm4 }
 0x1b3   :  { %v1250_v27 = vmul.f32 0.5, %v1249_v34  ;;  %v1319_v45 = vmul.f32 %v5009_v0, %v5009_v0  ;;  %v6779_v3 = vsub.f32 500.0, %v4874_v29  ;;  %v946_v49 = vsub.f32 500.0, %v943_v39  ;;  %v6782_v29 = vld [vmem:[#allocation2_spill] sm:$0xff] }
 0x1b4   :  { %v1024_v51 = vmul.f32 1000.0, %v1021_v7  ;;  %v1269_v60 = vmul.f32 %v5006_v38, %v1268_v15  ;;  %v1371_v21 = vadd.f32 %v4895_v8, %v4918_v61  ;;  %v1377_v62 = vadd.f32 %v4898_v53, %v4923_v47  ;;  %v6783_v61 = vld [vmem:[#allocation13_spill] sm:$0xff]  ;;  %v6784_v47 = vld [vmem:[#allocation3_spill] sm:$0xff] }
 0x1b5   :  { %v1516_v35 = vmin.f32 %v6779_v3, 0.0  ;;  %v1437_v18 = vmul.f32 %v4903_v13, %v4230_v6  ;;  %v1108_v30 = vsub.f32 500.0, %v1105_v43  ;;  %v1443_v2 = vmul.f32 %v4903_v13, %v6782_v29 }
 0x1b6   :  { %v1594_v25 = vsub.f32 500.0, %v1591_v12  ;;  %v1189_v34 = vsub.f32 500.0, %v1186_v46  ;;  %v1321_v39 = vmul.f32 %v5033_v32, %v5033_v32  ;;  %v1082_v31 = vsel %vm5040_vm5, %v4937_v54, %v1078_v26  ;;  %v6785_v46 = vld [vmem:[#allocation16_spill] sm:$0xff] }
 0x1b7   :  { %v1163_v8 = vsel %vm5049_vm6, %v4944_v52, %v1159_v42  ;;  %v1251_v53 = vsub.f32 1.5, %v1250_v27  ;;  %v1322_v6 = vadd.f32 %v1319_v45, %v6783_v61  ;;  %v5072_v17 = vmul.f32 %v1516_v35, %v6784_v47  ;;  %v6786_v52 = vld [vmem:[#allocation21_spill] sm:$0xff] }
 0x1b8   :  { %v949_v13 = vmin.f32 %v946_v49, 0.0  ;;  %v1027_v15 = vsub.f32 500.0, %v1024_v51  ;;  %v1270_v43 = vmul.f32 0.5, %v1269_v60  ;;  %v5074_v58 = vadd.f32 %v1437_v18, %v1371_v21 }
 0x1b9   :  { %v5076_v12 = vadd.f32 %v1443_v2, %v1377_v62  ;;  %v5079_v7 = vmul.f32 %v1516_v35, %v6785_v46  ;;  %v1111_v54 = vmin.f32 %v1108_v30, 0.0  ;;  %v1103_v26 = vmul.f32 1000.0, %v1082_v31  ;;  %v6789_v2 = vld [vmem:[#allocation8_spill] sm:$0xff] }
 0x1ba   :  { %v1184_v40 = vmul.f32 1000.0, %v1163_v8  ;;  %v1324_v42 = vadd.f32 %v1321_v39, %v6786_v52  ;;  %v5082_v27 = vmax.f32 %v1322_v6, 1e-08  ;;  %v5084_v45 = vmin.f32 %v1594_v25, 0.0 }
 0x1bb   :  { %v1192_v3 = vmin.f32 %v1189_v34, 0.0  ;;  %v1252_v49 = vmul.f32 %v4986_v55, %v1251_v53  ;;  %vm1254_vm7 = vweird.f32 %v4986_v55  ;;  %v952_v51 = vmul.f32 %v949_v13, %v4814_v63  ;;  %v6790_v34 = vld [vmem:[#allocation5_spill] sm:$0xff] }
 0x1bc   :  { %v958_v56 = vmul.f32 %v949_v13, %v4723_v1  ;;  %v1030_v35 = vmin.f32 %v1027_v15, 0.0  ;;  %v1271_v60 = vsub.f32 1.5, %v1270_v43  ;;  %v5091_v21 = vmul.f32 %v1111_v54, %v4672_v41 }
 0x1bd   :  { %vm1253_vm8 = vweird.f32 %v4921_v50  ;;  %vm1273_vm9 = vweird.f32 %v4930_v37  ;;  %v5097_v62 = vsub.f32 %v4737_v44, %v4811_v16  ;;  %v1106_v18 = vsub.f32 500.0, %v1103_v26 }
 0x1be   :  { %v1187_v30 = vsub.f32 500.0, %v1184_v40  ;;  %vm5099_vm10 = vmor %vm1253_vm8, %vm1254_vm7  ;;  %v5103_v1 = vmax.f32 %v1324_v42, 1e-08  ;;  %2325 = vrsqrt.f32 %v5082_v27  ;;  %v5107_v41 = vmul.f32 %v1111_v54, %v4678_v48 }
 0x1bf   :  { %v5110_v63 = vmul.f32 %v1192_v3, %v4791_v33  ;;  %v1256_v50 = vsel %vm5099_vm10, %v4986_v55, %v1252_v49  ;;  %vm1274_vm11 = vweird.f32 %v5006_v38  ;;  %v955_v25 = vadd.f32 %v952_v51, %v6789_v2 }
 0x1c0   :  { %v961_v39 = vadd.f32 %v958_v56, %v6790_v34  ;;  %v1033_v31 = vmul.f32 %v1030_v35, %v4840_v24  ;;  %v1272_v8 = vmul.f32 %v5006_v38, %v1271_v60  ;;  %v1039_v48 = vmul.f32 %v1030_v35, %v4726_v20  ;;  %vm5130_vm12 = vmor %vm1273_vm9, %vm1274_vm11  ;;  %v6793_v20 = vld [vmem:[#allocation22_spill] sm:$0xff] }
 0x1c1   :  { %2327 = vrsqrt.f32 %v5103_v1  ;;  %v1388_v33 = vmul.f32 %v5097_v62, %v5097_v62  ;;  %v1454_v53 = vrot.slane %v4811_v16, 7  ;;  %v5126_v55 = vmul.f32 %v1192_v3, %v4794_v57  ;;  %v6798_v34 = vld [vmem:[#allocation10_spill] sm:$0xff] }
 0x1c2   :  { %v1109_v61 = vmin.f32 %v1106_v18, 0.0  ;;  %v1190_v6 = vmin.f32 %v1187_v30, 0.0  ;;  %v1277_v47 = vmul.f32 1000.0, %v1256_v50  ;;  %v6794_v15 = vrot.slane %v4373_v9, 7 }
 0x1c3   :  { %v1391_v13 = vadd.f32 %v1388_v33, %v6793_v20  ;;  %v6795_v46 = vrot.slane %v6703_v19, 7  ;;  %v1535_v54 = vrot.slane %v4811_v16, 6  ;;  %v1036_v37 = vadd.f32 %v1033_v31, %v955_v25 }
 0x1c4   :  { %v1458_v43 = vsel %vm6495_vm2, %v1454_v53, %v6794_v15  ;;  %v5144_v26 = vpop.eup %2325  ;;  %v1276_v40 = vsel %vm5130_vm12, %v5006_v38, %v1272_v8  ;;  %v1042_v3 = vadd.f32 %v1039_v48, %v961_v39  ;;  %v6796_v16 = vrot.slane %v4373_v9, 6 }
 0x1c5   :  { %v1459_v57 = vsel %vm6495_vm2, %v6795_v46, %v1454_v53  ;;  %v5153_v42 = vsub.f32 %v4378_v23, %v1458_v43  ;;  %v1329_v49 = vmul.f32 %v5144_v26, %v5082_v27  ;;  %v5157_v51 = vmax.f32 %v1391_v13, 1e-08  ;;  %v6799_v13 = vld [vmem:[#allocation29_spill] sm:$0xff] }
 0x1c6   :  { %v5150_v52 = vsub.f32 %v4737_v44, %v1459_v57  ;;  %v1539_v56 = vsel %vm6494_vm3, %v1535_v54, %v6796_v16  ;;  %v6797_v60 = vrot.slane %v6703_v19, 6  ;;  %v1112_v9 = vmul.f32 %v1109_v61, %v4843_v28  ;;  %v6801_v16 = vld [vmem:[#allocation30_spill] sm:$0xff] }
 0x1c7   :  { %v1470_v35 = vmul.f32 %v5153_v42, %v5153_v42  ;;  %v5172_v30 = vsub.f32 %v4378_v23, %v1539_v56  ;;  %v5174_v29 = vpop.eup %2327  ;;  %v1330_v50 = vmul.f32 %v5144_v26, %v1329_v49  ;;  %2329 = vrsqrt.f32 %v5157_v51  ;;  %v6800_v49 = vld [vmem:[#allocation23_spill] sm:$0xff] }
 0x1c8   :  { %v1469_v38 = vmul.f32 %v5150_v52, %v5150_v52  ;;  %v1540_v18 = vsel %vm6494_vm3, %v6797_v60, %v1535_v54  ;;  %v1118_v25 = vmul.f32 %v1109_v61, %v4740_v14  ;;  %v1349_v19 = vmul.f32 %v5174_v29, %v5103_v1 }
 0x1c9   :  { %v5180_v2 = vsub.f32 %v4737_v44, %v1540_v18  ;;  %v1473_v23 = vadd.f32 %v1470_v35, %v4635_v59  ;;  %v1279_v31 = vmul.f32 1000.0, %v1276_v40  ;;  %v1331_v8 = vmul.f32 0.5, %v1330_v50 }
 0x1ca   :  { %v1472_v39 = vadd.f32 %v1469_v38, %v6798_v34  ;;  %v1551_v48 = vmul.f32 %v5172_v30, %v5172_v30  ;;  %v1193_v44 = vmul.f32 %v1190_v6, %v4846_v22  ;;  %v1350_v33 = vmul.f32 %v5174_v29, %v1349_v19  ;;  %v6802_v38 = vld [vmem:[#allocation4_spill] sm:$0xff] }
 0x1cb   :  { %v1550_v28 = vmul.f32 %v5180_v2, %v5180_v2  ;;  %v5195_v53 = vmax.f32 %v1473_v23, 1e-08  ;;  %v1280_v61 = vsub.f32 500.0, %v1277_v47  ;;  %v1332_v24 = vsub.f32 1.5, %v1331_v8  ;;  %v6805_v8 = vld [vmem:[#allocation11_spill] sm:$0xff] }
 0x1cc   :  { %v5193_v14 = vmax.f32 %v1472_v39, 1e-08  ;;  %v1554_v20 = vadd.f32 %v1551_v48, %v4665_v36  ;;  %v1115_v15 = vadd.f32 %v1112_v9, %v6799_v13  ;;  %v1117_v43 = vadd.f32 %v5091_v21, %v1036_v37 }
 0x1cd   :  { %v1553_v59 = vadd.f32 %v1550_v28, %v4661_v10  ;;  %v1351_v46 = vmul.f32 0.5, %v1350_v33  ;;  %v2330_v22 = vpop.eup %2329  ;;  %v1282_v57 = vsub.f32 500.0, %v1279_v31  ;;  %v1333_v47 = vmul.f32 %v5144_v26, %v1332_v24  ;;  %v5252_v24 = vpop.permute.xlu1 %1612 }
 0x1ce   :  { %2331 = vrsqrt.f32 %v5193_v14  ;;  %v5205_v40 = vmax.f32 %v1554_v20, 1e-08  ;;  %vm1335_vm13 = vweird.f32 %v5144_v26  ;;  %v1398_v36 = vmul.f32 %v2330_v22, %v5157_v51 }
 0x1cf   :  { %2333 = vrsqrt.f32 %v5195_v53  ;;  %v5203_v54 = vmax.f32 %v1553_v59, 1e-08  ;;  %v1352_v10 = vsub.f32 1.5, %v1351_v46  ;;  %v1121_v21 = vadd.f32 %v1118_v25, %v6800_v49  ;;  %v6808_v59 = vld [vmem:[#allocation6_spill] sm:$0xff] }
 0x1d0   :  { %v1123_v37 = vadd.f32 %v5107_v41, %v1042_v3  ;;  %v1199_v56 = vmul.f32 %v1190_v6, %v6801_v16  ;;  %v5216_v35 = vmul.f32 %v5084_v45, %v6802_v38  ;;  %v1283_v60 = vmin.f32 %v1280_v61, 0.0 }
 0x1d1   :  { %2335 = vrsqrt.f32 %v5203_v54  ;;  %vm1334_vm14 = vweird.f32 %v5082_v27  ;;  %v1399_v18 = vmul.f32 %v2330_v22, %v1398_v36  ;;  %v1196_v9 = vadd.f32 %v1193_v44, %v1115_v15 }
 0x1d2   :  { %vm5219_vm15 = vmor %vm1334_vm14, %vm1335_vm13  ;;  %v1353_v25 = vmul.f32 %v5174_v29, %v1352_v10  ;;  %vm1355_vm4 = vweird.f32 %v5174_v29  ;;  %2337 = vrsqrt.f32 %v5205_v40  ;;  %v1198_v6 = vadd.f32 %v5110_v63, %v1117_v43 }
 0x1d3   :  { %v1285_v3 = vmin.f32 %v1282_v57, 0.0  ;;  %v1337_v27 = vsel %vm5219_vm15, %v5144_v26, %v1333_v47  ;;  %v1400_v19 = vmul.f32 0.5, %v1399_v18  ;;  %v1202_v39 = vadd.f32 %v1199_v56, %v1121_v21 }
 0x1d4   :  { %v5226_v41 = vpop.eup %2331  ;;  %v1204_v23 = vadd.f32 %v5126_v55, %v1123_v37  ;;  %vm1354_vm5 = vweird.f32 %v5103_v1  ;;  %v1286_v28 = vmul.f32 %v1283_v60, %v6805_v8  ;;  %vm1404_vm7 = vweird.f32 %v2330_v22 }
 0x1d5   :  { %v5232_v34 = vpop.eup %2333  ;;  %v1479_v31 = vmul.f32 %v5226_v41, %v5193_v14  ;;  %vm5239_vm6 = vmor %vm1354_vm5, %vm1355_vm4  ;;  %v1401_v48 = vsub.f32 1.5, %v1400_v19  ;;  %v1292_v55 = vmul.f32 %v1283_v60, %v4879_v5  ;;  %v1358_v33 = vmul.f32 1000.0, %v1337_v27  ;;  %v6811_v19 = vld [vmem:[#allocation19_spill] sm:$0xff] }
 0x1d6   :  { %v1489_v26 = vmul.f32 %v5232_v34, %v5195_v53  ;;  %v1357_v1 = vsel %vm5239_vm6, %v5174_v29, %v1353_v25  ;;  %v1288_v20 = vmul.f32 %v1285_v3, %v6808_v59  ;;  %vm1403_vm8 = vweird.f32 %v5157_v51 }
 0x1d7   :  { %v5245_v44 = vpop.eup %2335  ;;  %v1480_v61 = vmul.f32 %v5226_v41, %v1479_v31  ;;  %v1402_v13 = vmul.f32 %v2330_v22, %v1401_v48  ;;  %v1289_v46 = vadd.f32 %v1286_v28, %v1196_v9  ;;  %v1294_v5 = vmul.f32 %v1285_v3, %v4888_v4  ;;  %vm1405_vm9 = vmor %vm1403_vm8, %vm1404_vm7 }
 0x1d8   :  { %v1490_v15 = vmul.f32 %v5232_v34, %v1489_v26  ;;  %v5257_v43 = vpop.eup %2337  ;;  %v1560_v57 = vmul.f32 %v5245_v44, %v5203_v54  ;;  %v1360_v47 = vmul.f32 1000.0, %v1357_v1  ;;  %v1623_v49 = vrot.slane %v5252_v24, 2 }
 0x1d9   :  { %v1481_v29 = vmul.f32 0.5, %v1480_v61  ;;  %v1406_v10 = vsel %vm1405_vm9, %v2330_v22, %v1402_v13  ;;  %v1361_v21 = vsub.f32 500.0, %v1358_v33  ;;  %vm1485_vm10 = vweird.f32 %v5226_v41  ;;  %v5296_v61 = vld [vmem:[%s6372_s0 + $0x8] sm:$0xff]  ;;  %v6814_v13 = vld [vmem:[#allocation18_spill] sm:$0xff] }
 0x1da   :  { %v1491_v36 = vmul.f32 0.5, %v1490_v15  ;;  %vm1495_vm11 = vweird.f32 %v5232_v34  ;;  %v1427_v37 = vmul.f32 1000.0, %v1406_v10  ;;  %v1561_v4 = vmul.f32 %v5245_v44, %v1560_v57 }
 0x1db   :  { %v1482_v51 = vsub.f32 1.5, %v1481_v29  ;;  %v1570_v56 = vmul.f32 %v5257_v43, %v5205_v40  ;;  %v1295_v38 = vadd.f32 %v1292_v55, %v1202_v39  ;;  %vm1484_vm12 = vweird.f32 %v5193_v14  ;;  %v6826_v29 = vld [vmem:[#allocation28_spill] sm:$0xff] }
 0x1dc   :  { %v1492_v16 = vsub.f32 1.5, %v1491_v36  ;;  %vm1494_vm13 = vweird.f32 %v5195_v53  ;;  %v1363_v22 = vsub.f32 500.0, %v1360_v47  ;;  %vm1486_vm14 = vmor %vm1484_vm12, %vm1485_vm10  ;;  %v1562_v9 = vmul.f32 0.5, %v1561_v4 }
 0x1dd   :  { %v1483_v60 = vmul.f32 %v5226_v41, %v1482_v51  ;;  %v1571_v50 = vmul.f32 %v5257_v43, %v1570_v56  ;;  %v1364_v25 = vmin.f32 %v1361_v21, 0.0  ;;  %vm5277_vm15 = vmor %vm1494_vm13, %vm1495_vm11  ;;  %v6812_v14 = vrot.slane %v6811_v19, 2  ;;  %v6817_v21 = vld [vmem:[#allocation20_spill] sm:$0xff] }
 0x1de   :  { %v1493_v18 = vmul.f32 %v5232_v34, %v1492_v16  ;;  %v1704_v39 = vrot.slane %v5252_v24, 1  ;;  %v1430_v31 = vsub.f32 500.0, %v1427_v37  ;;  %v1563_v8 = vsub.f32 1.5, %v1562_v9 }
 0x1df   :  { %v1487_v3 = vsel %vm1486_vm14, %v5226_v41, %v1483_v60  ;;  %v1625_v53 = vsel %vm6497_vm0, %v1623_v49, %v6812_v14  ;;  %v1572_v28 = vmul.f32 0.5, %v1571_v50  ;;  %v1291_v63 = vadd.f32 %v1288_v20, %v1198_v6 }
 0x1e0   :  { %v1497_v41 = vsel %vm5277_vm15, %v5232_v34, %v1493_v18  ;;  %v1297_v48 = vadd.f32 %v1294_v5, %v1204_v23  ;;  %v1508_v26 = vmul.f32 1000.0, %v1487_v3  ;;  %vm1566_vm4 = vweird.f32 %v5245_v44  ;;  %v6821_v3 = vld [vmem:[#allocation27_spill] sm:$0xff] }
 0x1e1   :  { %v1366_v55 = vmin.f32 %v1363_v22, 0.0  ;;  %v1564_v1 = vmul.f32 %v5245_v44, %v1563_v8  ;;  %v1573_v33 = vsub.f32 1.5, %v1572_v28  ;;  %v5299_v59 = vsub.f32 %v5296_v61, %v1625_v53 }
 0x1e2   :  { %v1509_v34 = vmul.f32 1000.0, %v1497_v41  ;;  %vm1565_vm5 = vweird.f32 %v5203_v54  ;;  %v6813_v6 = vrot.slane %v6811_v19, 1  ;;  %v1854_v20 = vrot.slane %v5252_v24, 7  ;;  %v5316_v54 = vpop.permute.xlu0 %1610 }
 0x1e3   :  { %v1367_v15 = vmul.f32 %v1364_v25, %v6814_v13  ;;  %v1433_v5 = vmin.f32 %v1430_v31, 0.0  ;;  %vm5310_vm6 = vmor %vm1565_vm5, %vm1566_vm4  ;;  %vm1575_vm7 = vweird.f32 %v5205_v40  ;;  %vm1576_vm8 = vweird.f32 %v5257_v43  ;;  %v6823_v40 = vld [vmem:[#allocation14_spill] sm:$0xff] }
 0x1e4   :  { %v1706_v23 = vsel %vm6496_vm1, %v1704_v39, %v6813_v6  ;;  %v1511_v57 = vsub.f32 500.0, %v1508_v26  ;;  %v1568_v47 = vsel %vm5310_vm6, %v5245_v44, %v1564_v1  ;;  %v1574_v10 = vmul.f32 %v5257_v43, %v1573_v33  ;;  %vm5344_vm9 = vmor %vm1575_vm7, %vm1576_vm8 }
 0x1e5   :  { %v1935_v36 = vrot.slane %v5252_v24, 6  ;;  %v1369_v51 = vmul.f32 %v1366_v55, %v6817_v21  ;;  %v1373_v37 = vmul.f32 %v1364_v25, %v5009_v0  ;;  %v5326_v16 = vsub.f32 %v5296_v61, %v1706_v23  ;;  %v6825_v23 = vld [vmem:[#allocation17_spill] sm:$0xff]  ;;  %v5399_v21 = vld [vmem:[%s6372_s0] sm:$0xff] }
 0x1e6   :  { %v5330_v4 = vsub.f32 %v5296_v61, %v5252_v24  ;;  %v1370_v56 = vadd.f32 %v1367_v15, %v1289_v46  ;;  %v1512_v60 = vsub.f32 500.0, %v1509_v34  ;;  %v6818_v22 = vrot.slane %v6811_v19, 7  ;;  %v6824_v34 = vld [vmem:[#allocation12_spill] sm:$0xff]  ;;  %6828 = vst [vmem:[#allocation2_spill] sm:$0xff] %v5399_v21 }
 0x1e7   :  { %v1622_v18 = vrot.slane %v5316_v54, 2  ;;  %v1372_v9 = vadd.f32 %v1369_v51, %v1291_v63  ;;  %v1375_v0 = vmul.f32 %v1366_v55, %v5033_v32  ;;  %v1376_v50 = vadd.f32 %v1373_v37, %v1295_v38  ;;  %v5404_v37 = vpop.permute.xlu1 %1618 }
 0x1e8   :  { %v1856_v44 = vsel %vm6495_vm2, %v1854_v20, %v6818_v22  ;;  %v1589_v25 = vmul.f32 1000.0, %v1568_v47  ;;  %v1436_v27 = vmul.f32 %v1433_v5, %v6821_v3  ;;  %v1514_v14 = vmin.f32 %v1511_v57, 0.0 }
 0x1e9   :  { %v1578_v53 = vsel %vm5344_vm9, %v5257_v43, %v1574_v10  ;;  %v6822_v31 = vrot.slane %v6811_v19, 6  ;;  %v5360_v38 = vmul.f32 %v5084_v45, %v6823_v40  ;;  %v1378_v41 = vadd.f32 %v1375_v0, %v1297_v48  ;;  %v5368_v43 = vld [vmem:[%s6372_s0 + $0x10] sm:$0xff]  ;;  %v6833_v40 = vld [vmem:[#allocation9_spill] sm:$0xff] }
 0x1ea   :  { %v1442_v8 = vmul.f32 %v1433_v5, %v5097_v62  ;;  %v1641_v28 = vmul.f32 %v5299_v59, %v5299_v59  ;;  %v1439_v63 = vadd.f32 %v1436_v27, %v1370_v56  ;;  %v1515_v26 = vmin.f32 %v1512_v60, 0.0  ;;  %v6830_v56 = vld [vmem:[#allocation24_spill] sm:$0xff] }
 0x1eb   :  { %v1937_v32 = vsel %vm6494_vm3, %v1935_v36, %v6822_v31  ;;  %v5371_v55 = vsub.f32 %v5368_v43, %v1856_v44  ;;  %v1626_v45 = vsel %vm6497_vm0, %v1622_v18, %v1623_v49  ;;  %v1590_v62 = vmul.f32 1000.0, %v1578_v53  ;;  %v5436_v31 = vld [vmem:[%s6371_s1 + $0x8] sm:$0xff] }
 0x1ec   :  { %v1445_v48 = vadd.f32 %v1442_v8, %v1376_v50  ;;  %v1592_v1 = vsub.f32 500.0, %v1589_v25  ;;  %v5378_v33 = vsub.f32 %v5368_v43, %v1937_v32  ;;  %v5381_v6 = vadd.f32 %v6824_v34, %v1372_v9 }
 0x1ed   :  { %v1517_v13 = vmul.f32 %v1514_v14, %v6825_v23  ;;  %v1722_v15 = vmul.f32 %v5326_v16, %v5326_v16  ;;  %v1791_v5 = vmul.f32 %v5330_v4, %v5330_v4  ;;  %v5389_v57 = vadd.f32 %v6826_v29, %v1378_v41  ;;  %v6836_v29 = vld [vmem:[#allocation26_spill] sm:$0xff] }
 0x1ee   :  { %v1523_v49 = vmul.f32 %v1514_v14, %v5150_v52  ;;  %v6827_v47 = vrot.slane %v6811_v19, 2  ;;  %v5402_v51 = vsub.f32 %v5399_v21, %v1626_v45  ;;  %v1518_v60 = vmul.f32 %v1515_v26, %v6830_v56 }
 0x1ef   :  { %v5407_v22 = vadd.f32 %v1517_v13, %v1439_v63  ;;  %v5410_v52 = vmul.f32 %v1515_v26, %v5153_v42  ;;  %v1873_v44 = vmul.f32 %v5371_v55, %v5371_v55  ;;  %v1593_v9 = vsub.f32 500.0, %v1590_v62 }
 0x1f0   :  { %v1627_v10 = vsel %vm6497_vm0, %v6827_v47, %v1622_v18  ;;  %6829 = vst [vmem:[#allocation13_spill] sm:$0xff] %v5402_v51  ;;  %v5414_v18 = vadd.f32 %v1523_v49, %v1445_v48  ;;  %v1595_v0 = vmin.f32 %v1592_v1, 0.0  ;;  %v1954_v50 = vmul.f32 %v5378_v33, %v5378_v33 }
 0x1f1   :  { %v5419_v46 = vsub.f32 %v5368_v43, %v1627_v10  ;;  %v1703_v25 = vrot.slane %v5316_v54, 1  ;;  %v6482_v3 = vrot.slane %v5404_v37, 2  ;;  %v6481_v42 = vrot.slane %v5404_v37, 1 }
 0x1f2   :  { %v5426_v27 = vmul.f32 %v5402_v51, %v5402_v51  ;;  %v5430_v14 = vsub.f32 %v5399_v21, %v5316_v54  ;;  %v1853_v53 = vrot.slane %v5316_v54, 7  ;;  %v5440_v32 = vsub.f32 %v5436_v31, %v5404_v37 }
 0x1f3   :  { %6831 = vst [vmem:[#allocation3_spill] sm:$0xff] %v5419_v46  ;;  %v6834_v41 = vrot.slane %v6833_v40, 2  ;;  %v6835_v63 = vrot.slane %v6833_v40, 1  ;;  %v6480_v45 = vrot.slane %v5404_v37, 7  ;;  %v6479_v48 = vrot.slane %v5404_v37, 6 }
 0x1f4   :  { %6832 = vst [vmem:[#allocation16_spill] sm:$0xff] %v5430_v14  ;;  %v1934_v62 = vrot.slane %v5316_v54, 6  ;;  %v1794_v23 = vmul.f32 %v5440_v32, %v5440_v32  ;;  %v1596_v13 = vmin.f32 %v1593_v9, 0.0  ;;  %v1598_v49 = vmul.f32 %v1595_v0, %v6836_v29 }
 0x1f5   :  { %v1631_v8 = vsel %vm6497_vm0, %v6482_v3, %v6834_v41  ;;  %v1712_v26 = vsel %vm6496_vm1, %v6481_v42, %v6835_v63  ;;  %v6837_v47 = vrot.slane %v6833_v40, 7  ;;  %v6838_v54 = vrot.slane %v6833_v40, 6  ;;  %v5485_v63 = vld [vmem:[%s6371_s1 + $0x10] sm:$0xff] }
 0x1f6   :  { %v5458_v1 = vsub.f32 %v5436_v31, %v1631_v8  ;;  %v5461_v34 = vsub.f32 %v5436_v31, %v1712_v26  ;;  %v1797_v8 = vadd.f32 %v1794_v23, %v1791_v5  ;;  %6839 = vst [vmem:[#allocation21_spill] sm:$0xff] %v5485_v63  ;;  %v1707_v29 = vsel %vm6496_vm1, %v1703_v25, %v1704_v39 }
 0x1f7   :  { %v1862_v10 = vsel %vm6495_vm2, %v6480_v45, %v6837_v47  ;;  %v1943_v56 = vsel %vm6494_vm3, %v6479_v48, %v6838_v54  ;;  %v6840_v47 = vrot.slane %v6811_v19, 1  ;;  %v1857_v5 = vsel %vm6495_vm2, %v1853_v53, %v1854_v20 }
 0x1f8   :  { %v1644_v41 = vmul.f32 %v5458_v1, %v5458_v1  ;;  %v1725_v9 = vmul.f32 %v5461_v34, %v5461_v34  ;;  %v5488_v26 = vsub.f32 %v5485_v63, %v1862_v10  ;;  %v5503_v23 = vsub.f32 %v5485_v63, %v1943_v56 }
 0x1f9   :  { %v1708_v54 = vsel %vm6496_vm1, %v6840_v47, %v1703_v25  ;;  %v5505_v45 = vmax.f32 %v1797_v8, 1e-08  ;;  %v6841_v42 = vrot.slane %v6811_v19, 7  ;;  %v1938_v20 = vsel %vm6494_vm3, %v1934_v62, %v1935_v36 }
 0x1fa   :  { %v1647_v10 = vadd.f32 %v1644_v41, %v1641_v28  ;;  %v1728_v48 = vadd.f32 %v1725_v9, %v1722_v15  ;;  %v1876_v39 = vmul.f32 %v5488_v26, %v5488_v26  ;;  %v6842_v56 = vrot.slane %v6811_v19, 6 }
 0x1fb   :  { %v1858_v25 = vsel %vm6495_vm2, %v6841_v42, %v1853_v53  ;;  %v1957_v15 = vmul.f32 %v5503_v23, %v5503_v23  ;;  %v5524_v41 = vsub.f32 %v5399_v21, %v1707_v29  ;;  %2339 = vrsqrt.f32 %v5505_v45 }
 0x1fc   :  { %v1939_v28 = vsel %vm6494_vm3, %v6842_v56, %v1934_v62  ;;  %v5526_v9 = vmax.f32 %v1647_v10, 1e-08  ;;  %v5528_v8 = vmax.f32 %v1728_v48, 1e-08  ;;  %v5532_v24 = vsub.f32 %v5368_v43, %v1708_v54 }
 0x1fd   :  { %6843 = vst [vmem:[#allocation8_spill] sm:$0xff] %v5524_v41  ;;  %v5535_v19 = vsub.f32 %v5296_v61, %v1857_v5  ;;  %v1879_v36 = vadd.f32 %v1876_v39, %v1873_v44  ;;  %v1960_v42 = vadd.f32 %v1957_v15, %v1954_v50  ;;  %v5538_v53 = vsub.f32 %v5399_v21, %v1858_v25  ;;  %v5608_v15 = vld [vmem:[%s6373_s4 + $0x8] sm:$0xff] }
 0x1fe   :  { %6844 = vst [vmem:[#allocation5_spill] sm:$0xff] %v5532_v24  ;;  %v5541_v62 = vsub.f32 %v5399_v21, %v1939_v28  ;;  %v5544_v29 = vsub.f32 %v5296_v61, %v1938_v20  ;;  %2341 = vrsqrt.f32 %v5526_v9  ;;  %v1521_v48 = vadd.f32 %v1518_v60, %v5074_v58  ;;  %v6849_v60 = vld [vmem:[#allocation25_spill] sm:$0xff] }
 0x1ff   :  { %6845 = vst [vmem:[#allocation22_spill] sm:$0xff] %v5535_v19  ;;  %2343 = vrsqrt.f32 %v5528_v8  ;;  %v5549_v47 = vmax.f32 %v1879_v36, 1e-08  ;;  %v5551_v54 = vmax.f32 %v1960_v42, 1e-08  ;;  %v5554_v44 = vmul.f32 %v1595_v0, %v5180_v2 }
 0x200   :  { %6846 = vst [vmem:[#allocation10_spill] sm:$0xff] %v5538_v53  ;;  %v5558_v50 = vmul.f32 %v5419_v46, %v5419_v46  ;;  %v5562_v5 = vmul.f32 %v5430_v14, %v5430_v14  ;;  %v1527_v58 = vadd.f32 %v5410_v52, %v5076_v12  ;;  %v1599_v10 = vmul.f32 %v1596_v13, %v6849_v60 }
 0x201   :  { %6847 = vst [vmem:[#allocation29_spill] sm:$0xff] %v5541_v62  ;;  %v1605_v39 = vmul.f32 %v1596_v13, %v5172_v30  ;;  %v5570_v25 = vmul.f32 %v5524_v41, %v5524_v41  ;;  %2345 = vrsqrt.f32 %v5549_v47  ;;  %v5573_v2 = vpop.eup %2339  ;;  %v5577_v0 = vmul.f32 %v5532_v24, %v5532_v24  ;;  %v5591_v30 = vld [vmem:[%s6373_s4] sm:$0xff] }
 0x202   :  { %6848 = vst [vmem:[#allocation23_spill] sm:$0xff] %v5544_v29  ;;  %v5581_v20 = vmul.f32 %v5538_v53, %v5538_v53  ;;  %v5585_v12 = vmul.f32 %v5535_v19, %v5535_v19  ;;  %2347 = vrsqrt.f32 %v5551_v54  ;;  %v5595_v52 = vmul.f32 %v5541_v62, %v5541_v62 }
 0x203   :  { %6850 = vst [vmem:[#allocation30_spill] sm:$0xff] %v5591_v30  ;;  %v5599_v13 = vmul.f32 %v5544_v29, %v5544_v29  ;;  %v5601_v56 = vadd.f32 %v1599_v10, %v1521_v48  ;;  %v1813_v28 = vmul.f32 %v5573_v2, %v5505_v45  ;;  %v5612_v42 = vadd.f32 %v1605_v39, %v1527_v58 }
 0x204   :  { %6852 = vst [vmem:[#allocation11_spill] sm:$0xff] %v5608_v15  ;;  %v5610_v36 = vpop.eup %2341  ;;  %v5616_v60 = vadd.f32 %v5072_v17, %v5381_v6  ;;  %v5620_v48 = vadd.f32 %v5079_v7, %v5389_v57  ;;  %v5623_v10 = vadd.f32 %v1598_v49, %v5407_v22  ;;  %vm1818_vm10 = vweird.f32 %v5505_v45  ;;  %v5634_v17 = vld [vmem:[%s6373_s4 + $0x10] sm:$0xff]  ;;  %v5647_v22 = vld [vmem:[%s6371_s1] sm:$0xff] }
 0x205   :  { %6851 = vst [vmem:[#allocation4_spill] sm:$0xff] %v5599_v13  ;;  %v5625_v3 = vpop.eup %2343  ;;  %v1663_v29 = vmul.f32 %v5610_v36, %v5526_v9  ;;  %v1814_v62 = vmul.f32 %v5573_v2, %v1813_v28  ;;  %v5637_v7 = vmul.f32 500.0, %v5591_v30  ;;  %v5642_v57 = vmul.f32 500.0, %v5608_v15 }
 0x206   :  { %6853 = vst [vmem:[#allocation6_spill] sm:$0xff] %v5623_v10  ;;  %v1744_v6 = vmul.f32 %v5625_v3, %v5528_v8  ;;  %v2027_v49 = vsub.f32 1.0, %v5647_v22  ;;  %v2028_v58 = vsub.f32 1.0, %v5436_v31  ;;  %vm1668_vm11 = vweird.f32 %v5526_v9 }
 0x207   :  { %6854 = vst [vmem:[#allocation19_spill] sm:$0xff] %v5637_v7  ;;  %v5651_v39 = vpop.eup %2345  ;;  %v1664_v28 = vmul.f32 %v5610_v36, %v1663_v29  ;;  %vm1749_vm12 = vweird.f32 %v5528_v8  ;;  %v1815_v19 = vmul.f32 0.5, %v1814_v62  ;;  %vm1909_vm13 = vweird.f32 %v5549_v47 }
 0x208   :  { %v5656_v53 = vpop.eup %2347  ;;  %v1745_v21 = vmul.f32 %v5625_v3, %v1744_v6  ;;  %v1904_v14 = vmul.f32 %v5651_v39, %v5549_v47  ;;  %v5663_v24 = vmul.f32 500.0, %v5634_v17  ;;  %vm1819_vm14 = vweird.f32 %v5573_v2 }
 0x209   :  { %v1665_v29 = vmul.f32 0.5, %v1664_v28  ;;  %v1816_v10 = vsub.f32 1.5, %v1815_v19  ;;  %v1985_v62 = vmul.f32 %v5656_v53, %v5551_v54  ;;  %vm1990_vm15 = vweird.f32 %v5551_v54  ;;  %vm5691_vm1 = vmor %vm1818_vm10, %vm1819_vm14 }
 0x20a   :  { %vm2015_vm4 = vcmp.gt.f32.partialorder %v5647_v22, 0.01  ;;  %vm2018_vm5 = vcmp.lt.f32.partialorder %v5647_v22, 1.0  ;;  %v1746_v6 = vmul.f32 0.5, %v1745_v21  ;;  %v1905_v46 = vmul.f32 %v5651_v39, %v1904_v14 }
 0x20b   :  { %vm2019_vm7 = vcmp.lt.f32.partialorder %v5436_v31, 1.0  ;;  %v5676_v19 = vmul.f32 %v2027_v49, %v5637_v7  ;;  %v5679_v28 = vmul.f32 %v2028_v58, %v5642_v57  ;;  %v1666_v41 = vsub.f32 1.5, %v1665_v29 }
 0x20c   :  { %vm1669_vm8 = vweird.f32 %v5610_v36  ;;  %v1817_v51 = vmul.f32 %v5573_v2, %v1816_v10  ;;  %v1986_v13 = vmul.f32 %v5656_v53, %v1985_v62  ;;  %v1747_v21 = vsub.f32 1.5, %v1746_v6 }
 0x20d   :  { %vm1750_vm2 = vweird.f32 %v5625_v3  ;;  %v1906_v49 = vmul.f32 0.5, %v1905_v46  ;;  %vm2036_vm0 = vcmp.gt.f32.partialorder %v5647_v22, 19.0  ;;  %vm2039_vm6 = vcmp.lt.f32.partialorder %v5647_v22, 20.0  ;;  %vm1670_vm10 = vmor %vm1668_vm11, %vm1669_vm8 }
 0x20e   :  { %v1667_v10 = vmul.f32 %v5610_v36, %v1666_v41  ;;  %v1821_v58 = vsel %vm5691_vm1, %v5573_v2, %v1817_v51  ;;  %vm1910_vm9 = vweird.f32 %v5651_v39  ;;  %v1987_v29 = vmul.f32 0.5, %v1986_v13  ;;  %vm1751_vm1 = vmor %vm1749_vm12, %vm1750_vm2 }
 0x20f   :  { %vm2037_vm3 = vcmp.gt.f32.partialorder %v5436_v31, 19.0  ;;  %v1748_v46 = vmul.f32 %v5625_v3, %v1747_v21  ;;  %v1907_v45 = vsub.f32 1.5, %v1906_v49  ;;  %vm1991_vm14 = vweird.f32 %v5656_v53  ;;  %vm1911_vm11 = vmor %vm1909_vm13, %vm1910_vm9 }
 0x210   :  { %v2048_v41 = vadd.f32 1.0, %v5647_v22  ;;  %v1671_v62 = vsel %vm1670_vm10, %v5610_v36, %v1667_v10  ;;  %v1988_v51 = vsub.f32 1.5, %v1987_v29  ;;  %v2049_v2 = vadd.f32 1.0, %v5436_v31  ;;  %vm1992_vm2 = vmor %vm1990_vm15, %vm1991_vm14 }
 0x211   :  { %v2050_v9 = vadd.f32 1.0, %v5485_v63  ;;  %v1683_v13 = vmul.f32 1000.0, %v1671_v62  ;;  %v1752_v6 = vsel %vm1751_vm1, %v5625_v3, %v1748_v46  ;;  %v1833_v21 = vmul.f32 1000.0, %v1821_v58  ;;  %vm5743_vm12 = vmand %vm2015_vm4, %vm2018_vm5 }
 0x212   :  { %v1908_v14 = vmul.f32 %v5651_v39, %v1907_v45  ;;  %v1764_v49 = vmul.f32 1000.0, %v1752_v6  ;;  %v1989_v8 = vmul.f32 %v5656_v53, %v1988_v51  ;;  %v5725_v36 = vmul.f32 -500.0, %v5591_v30  ;;  %vm5779_vm14 = vmand %vm2036_vm0, %vm2039_vm6 }
 0x213   :  { %v5728_v10 = vmul.f32 -500.0, %v5608_v15  ;;  %v1686_v29 = vsub.f32 500.0, %v1683_v13  ;;  %v5736_v58 = vmul.f32 -500.0, %v5634_v17  ;;  %v2183_v47 = vadd.f32 -20.0, %v2048_v41 }
 0x214   :  { %6857 = vst [vmem:[#allocation18_spill] sm:$0xff] %v5725_v36  ;;  %v1912_v3 = vsel %vm1911_vm11, %v5651_v39, %v1908_v14  ;;  %v1767_v46 = vsub.f32 500.0, %v1764_v49  ;;  %v1993_v62 = vsel %vm1992_vm2, %v5656_v53, %v1989_v8  ;;  %v2184_v51 = vadd.f32 -20.0, %v2049_v2  ;;  %v5773_v8 = vpop.permute.xlu0 %1616 }
 0x215   :  { %v1915_v45 = vmul.f32 1000.0, %v1912_v3  ;;  %v1689_v6 = vmin.f32 %v1686_v29, 0.0  ;;  %v1836_v15 = vsub.f32 500.0, %v1833_v21  ;;  %v1996_v30 = vmul.f32 1000.0, %v1993_v62 }
 0x216   :  { %v2185_v54 = vadd.f32 -20.0, %v2050_v9  ;;  %vm6860_vm13 = vcmp.gt.f32.partialorder %v5436_v31, 0.01  ;;  %v6863_v41 = vsub.f32 1.0, %v5485_v63  ;;  %vm2038_vm4 = vcmp.gt.f32.partialorder %v5485_v63, 19.0 }
 0x217   :  { %v1918_v13 = vsub.f32 500.0, %v1915_v45  ;;  %vm5751_vm15 = vmand %vm6860_vm13, %vm2019_vm7  ;;  %vm2040_vm5 = vcmp.lt.f32.partialorder %v5436_v31, 20.0  ;;  %v1692_v9 = vmul.f32 %v1689_v6, %v5299_v59  ;;  %v1698_v21 = vmul.f32 %v1689_v6, %v5458_v1 }
 0x218   :  { %v5758_v2 = vmul.f32 %v6863_v41, %v5663_v24  ;;  %v1999_v14 = vsub.f32 500.0, %v1996_v30  ;;  %vm6864_vm8 = vcmp.lt.f32.partialorder %v5485_v63, 1.0  ;;  %vm6865_vm7 = vcmp.gt.f32.partialorder %v5485_v63, 0.01  ;;  %vm5796_vm1 = vmand %vm2037_vm3, %vm2040_vm5 }
 0x219   :  { %vm5768_vm9 = vmand %vm6865_vm7, %vm6864_vm8  ;;  %vm2041_vm10 = vcmp.lt.f32.partialorder %v5485_v63, 20.0  ;;  %v1770_v29 = vmin.f32 %v1767_v46, 0.0  ;;  %v5784_v1 = vmul.f32 %v2183_v47, %v5725_v36  ;;  %v5788_v30 = vadd.f32 %v5216_v35, %v5616_v60 }
 0x21a   :  { %v5792_v3 = vadd.f32 %v5554_v44, %v5414_v18  ;;  %v1839_v46 = vmin.f32 %v1836_v15, 0.0  ;;  %v5801_v62 = vmul.f32 %v2184_v51, %v5728_v10  ;;  %v5804_v47 = vmul.f32 %v2185_v54, %v5736_v58  ;;  %vm5816_vm0 = vmand %vm2038_vm4, %vm2041_vm10 }
 0x21b   :  { %v5808_v35 = vadd.f32 %v5360_v38, %v5620_v48  ;;  %v1695_v18 = vadd.f32 %v1692_v9, %v5601_v56  ;;  %v1701_v44 = vadd.f32 %v1698_v21, %v5612_v42  ;;  %v1921_v15 = vmin.f32 %v1918_v13, 0.0 }
 0x21c   :  { %v1628_v51 = vrot.slane %v5773_v8, 2  ;;  %v2002_v6 = vmin.f32 %v1999_v14, 0.0  ;;  %v1773_v48 = vmul.f32 %v1770_v29, %v5326_v16  ;;  %v1779_v54 = vmul.f32 %v1770_v29, %v5461_v34 }
 0x21d   :  { %v2070_v41 = vsub.f32 1.0, %v5296_v61  ;;  %v1842_v9 = vmul.f32 %v1839_v46, %v5330_v4  ;;  %v1848_v21 = vmul.f32 %v1839_v46, %v5440_v32  ;;  %v5845_v29 = vmul.f32 %v1921_v15, %v5371_v55 }
 0x21e   :  { %v1776_v42 = vadd.f32 %v1773_v48, %v1695_v18  ;;  %v1782_v34 = vadd.f32 %v1779_v54, %v1701_v44  ;;  %v5848_v56 = vmul.f32 %v1921_v15, %v5488_v26  ;;  %vm2061_vm3 = vcmp.gt.f32.partialorder %v5296_v61, 0.01 }
 0x21f   :  { %vm2064_vm6 = vcmp.lt.f32.partialorder %v5296_v61, 1.0  ;;  %v5853_v4 = vmul.f32 %v2002_v6, %v5378_v33  ;;  %v5856_v32 = vmul.f32 %v2002_v6, %v5503_v23  ;;  %v2071_v46 = vsub.f32 1.0, %v5368_v43 }
 0x220   :  { %v6874_v18 = vrot.slane %v5404_v37, 2  ;;  %vm6875_vm11 = vcmp.lt.s32.totalorder %v2511_v11, 6  ;;  %v5864_v26 = vmul.f32 %v2070_v41, %v5642_v57  ;;  %vm2079_vm2 = vcmp.gt.f32.partialorder %v5296_v61, 19.0 }
 0x221   :  { %v2088_v44 = vadd.f32 1.0, %v5296_v61  ;;  %v6876_v33 = vrot.slane %v6833_v40, 2  ;;  %vm6877_vm13 = vmmov %vm6875_vm11  ;;  %v2089_v15 = vadd.f32 1.0, %v5368_v43  ;;  %v1709_v57 = vrot.slane %v5773_v8, 1 }
 0x222   :  { %v1632_v55 = vsel %vm6875_vm11, %v1628_v51, %v6874_v18  ;;  %v5880_v54 = vadd.f32 %v1842_v9, %v1776_v42  ;;  %v5882_v41 = vadd.f32 %v1848_v21, %v1782_v34  ;;  %vm2062_vm4 = vcmp.gt.f32.partialorder %v5368_v43, 0.01 }
 0x223   :  { %v1633_v23 = vsel %vm6877_vm13, %v6876_v33, %v1628_v51  ;;  %v5874_v6 = vsub.f32 %v5647_v22, %v1632_v55  ;;  %vm2065_vm5 = vcmp.lt.f32.partialorder %v5368_v43, 1.0  ;;  %v5888_v51 = vsub.f32 %v5647_v22, %v5773_v8 }
 0x224   :  { %v5877_v48 = vsub.f32 %v5485_v63, %v1633_v23  ;;  %v1859_v18 = vrot.slane %v5773_v8, 7  ;;  %vm2080_vm8 = vcmp.gt.f32.partialorder %v5368_v43, 19.0  ;;  %v6878_v9 = vrot.slane %v5404_v37, 1 }
 0x225   :  { %v1643_v55 = vmul.f32 %v5874_v6, %v5874_v6  ;;  %vm6879_vm7 = vcmp.lt.s32.totalorder %v2511_v11, 7  ;;  %v6880_v34 = vrot.slane %v6833_v40, 1  ;;  %vm2082_vm11 = vcmp.lt.f32.partialorder %v5296_v61, 20.0 }
 0x226   :  { %v1645_v42 = vmul.f32 %v5877_v48, %v5877_v48  ;;  %v1713_v21 = vsel %vm6879_vm7, %v1709_v57, %v6878_v9  ;;  %vm6881_vm10 = vmmov %vm6879_vm7  ;;  %v2187_v23 = vadd.f32 -20.0, %v2088_v44  ;;  %v2188_v13 = vadd.f32 -20.0, %v2089_v15 }
 0x227   :  { %v1714_v33 = vsel %vm6881_vm10, %v6880_v34, %v1709_v57  ;;  %v5906_v16 = vsub.f32 %v5647_v22, %v1713_v21  ;;  %v1646_v38 = vadd.f32 %v1643_v55, %v5426_v27  ;;  %v1940_v9 = vrot.slane %v5773_v8, 6  ;;  %vm5945_vm10 = vmand %vm2061_vm3, %vm2064_vm6 }
 0x228   :  { %v5909_v14 = vsub.f32 %v5485_v63, %v1714_v33  ;;  %v1648_v36 = vadd.f32 %v1645_v42, %v5558_v50  ;;  %v1793_v44 = vmul.f32 %v5888_v51, %v5888_v51  ;;  %v6882_v21 = vrot.slane %v5404_v37, 7  ;;  %vm5965_vm3 = vmand %vm2079_vm2, %vm2082_vm11 }
 0x229   :  { %v1724_v7 = vmul.f32 %v5906_v16, %v5906_v16  ;;  %vm6883_vm13 = vcmp.lt.s32.totalorder %v2511_v11, 1  ;;  %v5924_v34 = vmax.f32 %v1646_v38, 1e-08  ;;  %v6884_v50 = vrot.slane %v6833_v40, 7  ;;  %vm5994_vm2 = vmand %vm2062_vm4, %vm2065_vm5 }
 0x22a   :  { %v1726_v57 = vmul.f32 %v5909_v14, %v5909_v14  ;;  %v1863_v15 = vsel %vm6883_vm13, %v1859_v18, %v6882_v21  ;;  %v5926_v27 = vmax.f32 %v1648_v36, 1e-08  ;;  %vm6885_vm7 = vmmov %vm6883_vm13  ;;  %v1796_v63 = vadd.f32 %v1793_v44, %v5562_v5 }
 0x22b   :  { %v1864_v8 = vsel %vm6885_vm7, %v6884_v50, %v1859_v18  ;;  %v5933_v55 = vsub.f32 %v5436_v31, %v1863_v15  ;;  %v1727_v42 = vadd.f32 %v1724_v7, %v5570_v25  ;;  %vm2083_vm13 = vcmp.lt.f32.partialorder %v5368_v43, 20.0 }
 0x22c   :  { %v1729_v33 = vadd.f32 %v1726_v57, %v5577_v0  ;;  %v5939_v21 = vsub.f32 %v5647_v22, %v1864_v8  ;;  %v2094_v38 = vmul.f32 %v2187_v23, %v5728_v10  ;;  %2349 = vrsqrt.f32 %v5924_v34  ;;  %vm6009_vm11 = vmand %vm2080_vm8, %vm2083_vm13 }
 0x22d   :  { %v1875_v5 = vmul.f32 %v5933_v55, %v5933_v55  ;;  %2351 = vrsqrt.f32 %v5926_v27  ;;  %v5955_v25 = vmax.f32 %v1727_v42, 1e-08  ;;  %v5959_v7 = vmax.f32 %v1796_v63, 1e-08 }
 0x22e   :  { %v5957_v0 = vmax.f32 %v1729_v33, 1e-08  ;;  %v1874_v10 = vmul.f32 %v5939_v21, %v5939_v21  ;;  %v6890_v57 = vrot.slane %v5404_v37, 6  ;;  %vm6891_vm6 = vcmp.lt.s32.totalorder %v2511_v11, 2 }
 0x22f   :  { %v1878_v23 = vadd.f32 %v1875_v5, %v5585_v12  ;;  %v6892_v63 = vrot.slane %v6833_v40, 6  ;;  %vm6893_vm7 = vmmov %vm6891_vm6  ;;  %v5981_v61 = vmul.f32 %v2071_v46, %v5663_v24  ;;  %v2076_v50 = vsel %vm5945_vm10, %v5864_v26, 0.0 }
 0x230   :  { %v1944_v44 = vsel %vm6891_vm6, %v1940_v9, %v6890_v57  ;;  %v5987_v8 = vmul.f32 %v2188_v13, %v5736_v58  ;;  %2353 = vrsqrt.f32 %v5955_v25  ;;  %v1877_v11 = vadd.f32 %v1874_v10, %v5581_v20 }
 0x231   :  { %v1945_v15 = vsel %vm6893_vm7, %v6892_v63, %v1940_v9  ;;  %2355 = vrsqrt.f32 %v5957_v0  ;;  %v6000_v40 = vmax.f32 %v1878_v23, 1e-08  ;;  %v2097_v58 = vsel %vm5965_vm3, %v2094_v38, 0.0 }
 0x232   :  { %v6003_v24 = vsub.f32 %v5647_v22, %v1945_v15  ;;  %v6898_v20 = vsel %vm5743_vm12, %v5676_v19, 0.0  ;;  %v6899_v13 = vsel %vm5779_vm14, %v5784_v1, 0.0  ;;  %2357 = vrsqrt.f32 %v5959_v7  ;;  %v6029_v9 = vpop.eup %2349 }
 0x233   :  { %v6023_v46 = vadd.f32 %v6899_v13, %v6898_v20  ;;  %v6027_v26 = vsub.f32 %v5436_v31, %v1944_v44  ;;  %v6900_v42 = vsel %vm5751_vm15, %v5679_v28, 0.0  ;;  %v6901_v19 = vsel %vm5796_vm1, %v5801_v62, 0.0  ;;  %v2352_v33 = vpop.eup %2351 }
 0x234   :  { %v6039_v39 = vadd.f32 %v6901_v19, %v6900_v42  ;;  %v6041_v59 = vmax.f32 %v1877_v11, 1e-08  ;;  %2359 = vrsqrt.f32 %v6000_v40  ;;  %v1955_v1 = vmul.f32 %v6003_v24, %v6003_v24 }
 0x235   :  { %v2077_v53 = vsel %vm5994_vm2, %v5981_v61, 0.0  ;;  %v6902_v28 = vsel %vm5768_vm9, %v5758_v2, 0.0  ;;  %v6903_v45 = vsel %vm5816_vm0, %v5804_v47, 0.0  ;;  %v1653_v36 = vmul.f32 %v6029_v9, %v5924_v34 }
 0x236   :  { %v6057_v62 = vadd.f32 %v6903_v45, %v6902_v28  ;;  %v1956_v38 = vmul.f32 %v6027_v26, %v6027_v26  ;;  %v2098_v5 = vsel %vm6009_vm11, %v5987_v8, 0.0  ;;  %v6066_v18 = vadd.f32 %v2097_v58, %v2076_v50  ;;  %v6070_v49 = vpop.eup %2353 }
 0x237   :  { %v1673_v2 = vmul.f32 %v2352_v33, %v5926_v27  ;;  %2361 = vrsqrt.f32 %v6041_v59  ;;  %v1654_v47 = vmul.f32 %v6029_v9, %v1653_v36  ;;  %vm1658_vm12 = vweird.f32 %v5924_v34  ;;  %v6076_v10 = vpop.eup %2355 }
 0x238   :  { %vm1678_vm15 = vweird.f32 %v5926_v27  ;;  %v1958_v60 = vadd.f32 %v1955_v1, %v5595_v52  ;;  %vm1659_vm9 = vweird.f32 %v6029_v9  ;;  %vm1679_vm14 = vweird.f32 %v2352_v33  ;;  %v6082_v44 = vpop.eup %2357  ;;  %v6904_v52 = vld [vmem:[#allocation4_spill] sm:$0xff] }
 0x239   :  { %v1674_v23 = vmul.f32 %v2352_v33, %v1673_v2  ;;  %v1734_v57 = vmul.f32 %v6070_v49, %v5955_v25  ;;  %vm1739_vm1 = vweird.f32 %v5955_v25  ;;  %v1655_v63 = vmul.f32 0.5, %v1654_v47  ;;  %vm1660_vm13 = vmor %vm1658_vm12, %vm1659_vm9 }
 0x23a   :  { %vm1740_vm0 = vweird.f32 %v6070_v49  ;;  %v1754_v15 = vmul.f32 %v6076_v10, %v5957_v0  ;;  %vm1759_vm4 = vweird.f32 %v5957_v0  ;;  %v1959_v50 = vadd.f32 %v1956_v38, %v6904_v52  ;;  %v6089_v11 = vpop.eup %2359  ;;  %vm1680_vm7 = vmor %vm1678_vm15, %vm1679_vm14 }
 0x23b   :  { %v1675_v58 = vmul.f32 0.5, %v1674_v23  ;;  %v1735_v20 = vmul.f32 %v6070_v49, %v1734_v57  ;;  %vm1760_vm5 = vweird.f32 %v6076_v10  ;;  %v1803_v13 = vmul.f32 %v6082_v44, %v5959_v7 }
 0x23c   :  { %vm1808_vm8 = vweird.f32 %v5959_v7  ;;  %v1656_v42 = vsub.f32 1.5, %v1655_v63  ;;  %v1755_v19 = vmul.f32 %v6076_v10, %v1754_v15  ;;  %v1894_v1 = vmul.f32 %v6089_v11, %v6000_v40  ;;  %vm1761_vm15 = vmor %vm1759_vm4, %vm1760_vm5  ;;  %v6906_v7 = vld [vmem:[#allocation3_spill] sm:$0xff] }
 0x23d   :  { %v6099_v28 = vmax.f32 %v1958_v60, 1e-08  ;;  %v6101_v45 = vpop.eup %2361  ;;  %v1676_v36 = vsub.f32 1.5, %v1675_v58  ;;  %v1736_v38 = vmul.f32 0.5, %v1735_v20  ;;  %v1804_v2 = vmul.f32 %v6082_v44, %v1803_v13 }
 0x23e   :  { %vm1809_vm10 = vweird.f32 %v6082_v44  ;;  %v1657_v47 = vmul.f32 %v6029_v9, %v1656_v42  ;;  %v1756_v23 = vmul.f32 0.5, %v1755_v19  ;;  %v1884_v57 = vmul.f32 %v6101_v45, %v6041_v59 }
 0x23f   :  { %v6108_v63 = vmax.f32 %v1959_v50, 1e-08  ;;  %v1677_v60 = vmul.f32 %v2352_v33, %v1676_v36  ;;  %v1737_v15 = vsub.f32 1.5, %v1736_v38  ;;  %v1805_v52 = vmul.f32 0.5, %v1804_v2  ;;  %vm1810_vm14 = vmor %vm1808_vm8, %vm1809_vm10 }
 0x240   :  { %vm1889_vm3 = vweird.f32 %v6041_v59  ;;  %v1895_v58 = vmul.f32 %v6089_v11, %v1894_v1  ;;  %vm1900_vm6 = vweird.f32 %v6089_v11  ;;  %v1661_v20 = vsel %vm1660_vm13, %v6029_v9, %v1657_v47  ;;  %vm1741_vm13 = vmor %vm1739_vm1, %vm1740_vm0  ;;  %v6910_v59 = vld [vmem:[#allocation8_spill] sm:$0xff] }
 0x241   :  { %v1757_v50 = vsub.f32 1.5, %v1756_v23  ;;  %v1885_v13 = vmul.f32 %v6101_v45, %v1884_v57  ;;  %vm1890_vm12 = vweird.f32 %v6101_v45  ;;  %v1681_v34 = vsel %vm1680_vm7, %v2352_v33, %v1677_v60 }
 0x242   :  { %v1682_v42 = vmul.f32 1000.0, %v1661_v20  ;;  %v1738_v19 = vmul.f32 %v6070_v49, %v1737_v15  ;;  %v1806_v36 = vsub.f32 1.5, %v1805_v52  ;;  %vm1899_vm9 = vweird.f32 %v6000_v40  ;;  %vm6153_vm1 = vmor %vm1889_vm3, %vm1890_vm12 }
 0x243   :  { %v1684_v1 = vmul.f32 1000.0, %v1681_v34  ;;  %v1758_v27 = vmul.f32 %v6076_v10, %v1757_v50  ;;  %v1886_v9 = vmul.f32 0.5, %v1885_v13  ;;  %v1896_v38 = vmul.f32 0.5, %v1895_v58  ;;  %v6905_v34 = vld [vmem:[#allocation13_spill] sm:$0xff]  ;;  %vm1901_vm0 = vmor %vm1899_vm9, %vm1900_vm6 }
 0x244   :  { %v1685_v2 = vsub.f32 500.0, %v1682_v42  ;;  %v1742_v47 = vsel %vm1741_vm13, %v6070_v49, %v1738_v19  ;;  %v1807_v33 = vmul.f32 %v6082_v44, %v1806_v36  ;;  %2363 = vrsqrt.f32 %v6099_v28 }
 0x245   :  { %v1687_v23 = vsub.f32 500.0, %v1684_v1  ;;  %v1762_v25 = vsel %vm1761_vm15, %v6076_v10, %v1758_v27  ;;  %v1763_v57 = vmul.f32 1000.0, %v1742_v47  ;;  %v1887_v60 = vsub.f32 1.5, %v1886_v9 }
 0x246   :  { %v1688_v49 = vmin.f32 %v1685_v2, 0.0  ;;  %v1765_v15 = vmul.f32 1000.0, %v1762_v25  ;;  %v1811_v52 = vsel %vm1810_vm14, %v6082_v44, %v1807_v33  ;;  %v1897_v0 = vsub.f32 1.5, %v1896_v38  ;;  %v6917_v44 = vld [vmem:[#allocation22_spill] sm:$0xff] }
 0x247   :  { %v1690_v58 = vmin.f32 %v1687_v23, 0.0  ;;  %v1766_v20 = vsub.f32 500.0, %v1763_v57  ;;  %v1832_v50 = vmul.f32 1000.0, %v1811_v52  ;;  %v1888_v13 = vmul.f32 %v6101_v45, %v1887_v60 }
 0x248   :  { %v1691_v42 = vmul.f32 %v1688_v49, %v6905_v34  ;;  %v1697_v10 = vmul.f32 %v1688_v49, %v5874_v6  ;;  %v1768_v19 = vsub.f32 500.0, %v1765_v15  ;;  %v1898_v36 = vmul.f32 %v6089_v11, %v1897_v0  ;;  %v6909_v6 = vld [vmem:[#allocation6_spill] sm:$0xff]  ;;  %v6911_v15 = vld [vmem:[#allocation5_spill] sm:$0xff]  ;;  %v6912_v34 = vld [vmem:[#allocation16_spill] sm:$0xff] }
 0x249   :  { %v1693_v1 = vmul.f32 %v1690_v58, %v6906_v7  ;;  %v1699_v27 = vmul.f32 %v1690_v58, %v5877_v48  ;;  %v1769_v9 = vmin.f32 %v1766_v20, 0.0  ;;  %v1835_v2 = vsub.f32 500.0, %v1832_v50 }
 0x24a   :  { %v6157_v38 = vpop.eup %2363  ;;  %v1694_v47 = vadd.f32 %v1691_v42, %v6909_v6  ;;  %v1700_v33 = vadd.f32 %v1697_v10, %v5792_v3  ;;  %v1771_v23 = vmin.f32 %v1768_v19, 0.0  ;;  %v1892_v48 = vsel %vm6153_vm1, %v6101_v45, %v1888_v13 }
 0x24b   :  { %v1696_v25 = vadd.f32 %v1693_v1, %v5788_v30  ;;  %v1702_v57 = vadd.f32 %v1699_v27, %v5808_v35  ;;  %v1772_v60 = vmul.f32 %v1769_v9, %v6910_v59  ;;  %v1778_v49 = vmul.f32 %v1769_v9, %v5906_v16  ;;  %v6914_v27 = vld [vmem:[#allocation15_spill] sm:$0xff] }
 0x24c   :  { %v1774_v3 = vmul.f32 %v1771_v23, %v6911_v15  ;;  %v1780_v52 = vmul.f32 %v1771_v23, %v5909_v14  ;;  %v1838_v0 = vmin.f32 %v1835_v2, 0.0  ;;  %v1902_v45 = vsel %vm1901_vm0, %v6089_v11, %v1898_v36  ;;  %v6913_v36 = vld [vmem:[#allocation7_spill] sm:$0xff] }
 0x24d   :  { %v1775_v58 = vadd.f32 %v1772_v60, %v1694_v47  ;;  %v1781_v30 = vadd.f32 %v1778_v49, %v1700_v33  ;;  %v1913_v20 = vmul.f32 1000.0, %v1892_v48  ;;  %v1914_v35 = vmul.f32 1000.0, %v1902_v45 }
 0x24e   :  { %v1777_v50 = vadd.f32 %v1774_v3, %v1696_v25  ;;  %v1783_v13 = vadd.f32 %v1780_v52, %v1702_v57  ;;  %v1841_v16 = vmul.f32 %v1838_v0, %v6912_v34  ;;  %v1847_v42 = vmul.f32 %v1838_v0, %v5888_v51  ;;  %v6920_v3 = vld [vmem:[#allocation19_spill] sm:$0xff] }
 0x24f   :  { %v2101_v14 = vadd.f32 %v2098_v5, %v2077_v53  ;;  %v1916_v40 = vsub.f32 500.0, %v1913_v20  ;;  %v1917_v11 = vsub.f32 500.0, %v1914_v35  ;;  %v1965_v10 = vmul.f32 %v6157_v38, %v6099_v28  ;;  %v6915_v53 = vld [vmem:[#allocation2_spill] sm:$0xff]  ;;  %v37_v20 = vld [vmem:[%s6375_s3 + $0x10] sm:$0xff] }
 0x250   :  { %v1844_v19 = vadd.f32 %v1841_v16, %v1775_v58  ;;  %v1846_v7 = vadd.f32 %v6913_v36, %v1777_v50  ;;  %v1850_v1 = vadd.f32 %v1847_v42, %v1781_v30  ;;  %v1852_v51 = vadd.f32 %v6914_v27, %v1783_v13  ;;  %v6916_v5 = vld [vmem:[#allocation10_spill] sm:$0xff]  ;;  %v34_v30 = vld [vmem:[%s6374_s2 + $0x10] sm:$0xff]  ;;  %v6260_v13 = vld [vmem:[%s6372_s0 + $0x8] sm:$0xff] }
 0x251   :  { %v1919_v9 = vmin.f32 %v1916_v40, 0.0  ;;  %v1920_v37 = vmin.f32 %v1917_v11, 0.0  ;;  %v1966_v61 = vmul.f32 %v6157_v38, %v1965_v10  ;;  %2365 = vrsqrt.f32 %v6108_v63  ;;  %v6923_v16 = vld [vmem:[#allocation18_spill] sm:$0xff] }
 0x252   :  { %v1927_v8 = vadd.f32 %v5845_v29, %v1846_v7  ;;  %v1933_v12 = vadd.f32 %v5848_v56, %v1852_v51  ;;  %vm1970_vm2 = vweird.f32 %v6099_v28  ;;  %vm2060_vm11 = vcmp.gt.f32.partialorder %v6915_v53, 0.01 }
 0x253   :  { %v1922_v2 = vmul.f32 %v1919_v9, %v6916_v5  ;;  %v1923_v6 = vmul.f32 %v1920_v37, %v6917_v44  ;;  %v1928_v47 = vmul.f32 %v1919_v9, %v5939_v21  ;;  %v1929_v33 = vmul.f32 %v1920_v37, %v5933_v55 }
 0x254   :  { %v1967_v23 = vmul.f32 0.5, %v1966_v61  ;;  %v2008_v48 = vadd.f32 %v5853_v4, %v1927_v8  ;;  %v2014_v25 = vadd.f32 %v5856_v32, %v1933_v12  ;;  %vm2063_vm4 = vcmp.lt.f32.partialorder %v6915_v53, 1.0 }
 0x255   :  { %v6202_v56 = vadd.f32 %v1922_v2, %v1844_v19  ;;  %v6205_v29 = vadd.f32 %v1923_v6, %v5880_v54  ;;  %v6207_v57 = vadd.f32 %v1928_v47, %v1850_v1  ;;  %vm1971_vm5 = vweird.f32 %v6157_v38  ;;  %vm6219_vm10 = vmand %vm2060_vm11, %vm2063_vm4  ;;  %v6924_v47 = vld [vmem:[#allocation29_spill] sm:$0xff] }
 0x256   :  { %v6211_v21 = vadd.f32 %v1929_v33, %v5882_v41  ;;  %v1968_v55 = vsub.f32 1.5, %v1967_v23  ;;  %v2069_v59 = vsub.f32 1.0, %v6915_v53  ;;  %vm2078_vm8 = vcmp.gt.f32.partialorder %v6915_v53, 19.0  ;;  %vm1972_vm12 = vmor %vm1970_vm2, %vm1971_vm5 }
 0x257   :  { %v6215_v4 = vpop.eup %2365  ;;  %vm2081_vm3 = vcmp.lt.f32.partialorder %v6915_v53, 20.0  ;;  %v2087_v54 = vadd.f32 1.0, %v6915_v53  ;;  %v2104_v41 = vmul.f32 %v2008_v48, %v5634_v17  ;;  %v2119_v60 = vmul.f32 %v2014_v25, %v5634_v17  ;;  %v6925_v25 = vld [vmem:[#allocation21_spill] sm:$0xff] }
 0x258   :  { %v1969_v49 = vmul.f32 %v6157_v38, %v1968_v55  ;;  %v1975_v15 = vmul.f32 %v6215_v4, %v6108_v63  ;;  %vm1980_vm6 = vweird.f32 %v6108_v63  ;;  %vm1981_vm7 = vweird.f32 %v6215_v4  ;;  %vm6253_vm9 = vmand %vm2078_vm8, %vm2081_vm3 }
 0x259   :  { %v2072_v52 = vmul.f32 %v2069_v59, %v6920_v3  ;;  %v2186_v0 = vadd.f32 -20.0, %v2087_v54  ;;  %v2107_v45 = vadd.f32 %v2104_v41, %v2101_v14  ;;  %v2122_v17 = vsub.f32 %v6057_v62, %v2119_v60  ;;  %vm1982_vm14 = vmor %vm1980_vm6, %vm1981_vm7 }
 0x25a   :  { %v41_v58 = vadd.f32 12582912.0, %v6915_v53  ;;  %v1973_v35 = vsel %vm1972_vm12, %v6157_v38, %v1969_v49  ;;  %v1976_v50 = vmul.f32 %v6215_v4, %v1975_v15  ;;  %v42_v38 = vadd.f32 12582912.0, %v6260_v13 }
 0x25b   :  { %v2075_v28 = vsel %vm6219_vm10, %v2072_v52, 0.0  ;;  %v1994_v34 = vmul.f32 1000.0, %v1973_v35  ;;  %v2093_v42 = vmul.f32 %v2186_v0, %v6923_v16  ;;  %v2110_v14 = vmul.f32 0.001, %v2107_v45  ;;  %v6926_v52 = vld [vmem:[#allocation30_spill] sm:$0xff] }
 0x25c   :  { %v2125_v40 = vmul.f32 0.001, %v2122_v17  ;;  %v1977_v11 = vmul.f32 0.5, %v1976_v50  ;;  %v43_v10 = vadd.f32 12582912.0, %v5368_v43  ;;  %v2177_v19 = vadd.f32 -12582912.0, %v41_v58 }
 0x25d   :  { %v2178_v36 = vadd.f32 -12582912.0, %v42_v38  ;;  %v1997_v7 = vsub.f32 500.0, %v1994_v34  ;;  %v2096_v1 = vsel %vm6253_vm9, %v2093_v42, 0.0  ;;  %v2113_v27 = vsub.f32 %v34_v30, %v2110_v14  ;;  %v6927_v42 = vld [vmem:[#allocation23_spill] sm:$0xff] }
 0x25e   :  { %v2128_v51 = vadd.f32 %v2125_v40, %v37_v20  ;;  %v1978_v9 = vsub.f32 1.5, %v1977_v11  ;;  %v2099_v37 = vadd.f32 %v2096_v1, %v2075_v28  ;;  %v2179_v61 = vadd.f32 -12582912.0, %v43_v10 }
 0x25f   :  { %vm2189_vm13 = vcmp.lt.s32.totalorder %v2177_v19, 0  ;;  %v2000_v8 = vmin.f32 %v1997_v7, 0.0  ;;  %v2131_v12 = vmul.f32 0.001, %v2113_v27  ;;  %2149 = vst [vmem:[%s6376_s7 + $0x10] sm:$0xff] %v2113_v27  ;;  %v2190_v5 = vceil.f32 %v2177_v19 }
 0x260   :  { %v2140_v53 = vmul.f32 0.001, %v2128_v51  ;;  %v1979_v2 = vmul.f32 %v6215_v4, %v1978_v9  ;;  %2152 = vst [vmem:[%s6377_s8 + $0x10] sm:$0xff] %v2128_v51  ;;  %v2191_v44 = vfloor.f32 %v2177_v19  ;;  %vm2194_vm15 = vcmp.lt.s32.totalorder %v2178_v36, 0 }
 0x261   :  { %v2195_v6 = vceil.f32 %v2178_v36  ;;  %v2003_v33 = vmul.f32 %v2000_v8, %v6924_v47  ;;  %v2009_v23 = vmul.f32 %v2000_v8, %v6003_v24  ;;  %v2134_v48 = vadd.f32 %v5368_v43, %v2131_v12 }
 0x262   :  { %v2143_v55 = vadd.f32 %v6925_v25, %v2140_v53  ;;  %v1983_v59 = vsel %vm1982_vm14, %v6215_v4, %v1979_v2  ;;  %v2192_v32 = vsel %vm2189_vm13, %v2190_v5, %v2191_v44  ;;  %v2196_v54 = vfloor.f32 %v2178_v36 }
 0x263   :  { %vm2199_vm1 = vcmp.lt.s32.totalorder %v2179_v61, 0  ;;  %v1995_v41 = vmul.f32 1000.0, %v1983_v59  ;;  %v2006_v60 = vadd.f32 %v2003_v33, %v6202_v56  ;;  %v2012_v63 = vadd.f32 %v2009_v23, %v6207_v57  ;;  %2137 = vst [vmem:[%s6378_s5 + $0x10] sm:$0xff] %v2134_v48 }
 0x264   :  { %v2193_v24 = vcvt.f32.s32 %v2192_v32  ;;  %2146 = vst [vmem:[%s6379_s6 + $0x10] sm:$0xff] %v2143_v55  ;;  %v2197_v43 = vsel %vm2194_vm15, %v2195_v6, %v2196_v54  ;;  %v2200_v4 = vceil.f32 %v2179_v61  ;;  %v2201_v49 = vfloor.f32 %v2179_v61  ;;  %v6928_v61 = vld [vmem:[#allocation11_spill] sm:$0xff] }
 0x265   :  { %v53_v15 = vadd.f32 12582912.0, %v5647_v22  ;;  %v1998_v3 = vsub.f32 500.0, %v1995_v41  ;;  %v2102_v56 = vmul.f32 %v2006_v60, %v6926_v52  ;;  %v2117_v57 = vmul.f32 %v2012_v63, %v6926_v52 }
 0x266   :  { %v2198_v0 = vcvt.f32.s32 %v2197_v43  ;;  %50 = vst [vmem:[%s6380_s9] sm:$0xff] %v2193_v24  ;;  %v2202_v45 = vsel %vm2199_vm1, %v2200_v4, %v2201_v49  ;;  %v54_v17 = vadd.f32 12582912.0, %v5436_v31  ;;  %v55_v58 = vadd.f32 12582912.0, %v6925_v25  ;;  %v32_v62 = vld [vmem:[%s6374_s2] sm:$0xff] }
 0x267   :  { %v2180_v30 = vadd.f32 -12582912.0, %v53_v15  ;;  %v2001_v20 = vmin.f32 %v1998_v3, 0.0  ;;  %v2105_v35 = vadd.f32 %v2102_v56, %v2099_v37  ;;  %v2120_v50 = vsub.f32 %v6023_v46, %v2117_v57  ;;  %v35_v31 = vld [vmem:[%s6375_s3] sm:$0xff] }
 0x268   :  { %v2203_v28 = vcvt.f32.s32 %v2202_v45  ;;  %51 = vst [vmem:[%s6380_s9 + $0x8] sm:$0xff] %v2198_v0  ;;  %v2181_v38 = vadd.f32 -12582912.0, %v54_v17  ;;  %v2182_v34 = vadd.f32 -12582912.0, %v55_v58 }
 0x269   :  { %vm2204_vm0 = vcmp.lt.s32.totalorder %v2180_v30, 0  ;;  %v2205_v16 = vceil.f32 %v2180_v30  ;;  %v2004_v14 = vmul.f32 %v2001_v20, %v6927_v42  ;;  %v2010_v46 = vmul.f32 %v2001_v20, %v6027_v26 }
 0x26a   :  { %v2108_v40 = vmul.f32 0.001, %v2105_v35  ;;  %v2123_v11 = vmul.f32 0.001, %v2120_v50  ;;  %52 = vst [vmem:[%s6380_s9 + $0x10] sm:$0xff] %v2203_v28  ;;  %v2206_v10 = vfloor.f32 %v2180_v30  ;;  %vm2209_vm2 = vcmp.lt.s32.totalorder %v2181_v38, 0 }
 0x26b   :  { %v2210_v19 = vceil.f32 %v2181_v38  ;;  %v2211_v36 = vfloor.f32 %v2181_v38  ;;  %v2007_v7 = vadd.f32 %v2004_v14, %v6205_v29  ;;  %v2013_v1 = vadd.f32 %v2010_v46, %v6211_v21  ;;  %v2386_v47 = vld [vmem:[%s6372_s0] sm:$0xff] }
 0x26c   :  { %v2111_v27 = vsub.f32 %v32_v62, %v2108_v40  ;;  %v2126_v51 = vadd.f32 %v2123_v11, %v35_v31  ;;  %v2207_v9 = vsel %vm2204_vm0, %v2205_v16, %v2206_v10  ;;  %vm2214_vm11 = vcmp.lt.s32.totalorder %v2182_v34, 0 }
 0x26d   :  { %v2212_v37 = vsel %vm2209_vm2, %v2210_v19, %v2211_v36  ;;  %v2215_v26 = vceil.f32 %v2182_v34  ;;  %v2103_v8 = vmul.f32 %v2007_v7, %v6928_v61  ;;  %v2118_v12 = vmul.f32 %v2013_v1, %v6928_v61 }
 0x26e   :  { %v2129_v53 = vmul.f32 0.001, %v2111_v27  ;;  %v2138_v5 = vmul.f32 0.001, %v2126_v51  ;;  %2147 = vst [vmem:[%s6376_s7] sm:$0xff] %v2111_v27  ;;  %v2208_v29 = vcvt.f32.s32 %v2207_v9  ;;  %v2213_v21 = vcvt.f32.s32 %v2212_v37 }
 0x26f   :  { %2150 = vst [vmem:[%s6377_s8] sm:$0xff] %v2126_v51  ;;  %v2216_v2 = vfloor.f32 %v2182_v34  ;;  %v2106_v44 = vadd.f32 %v2103_v8, %v6066_v18  ;;  %v2121_v6 = vsub.f32 %v6039_v39, %v2118_v12 }
 0x270   :  { %v2132_v33 = vadd.f32 %v2386_v47, %v2129_v53  ;;  %v2141_v23 = vadd.f32 %v5647_v22, %v2138_v5  ;;  %62 = vst [vmem:[%s6381_s10] sm:$0xff] %v2208_v29 }
 0x271   :  { %v2217_v55 = vsel %vm2214_vm11, %v2215_v26, %v2216_v2  ;;  %v2109_v39 = vmul.f32 0.001, %v2106_v44  ;;  %v2124_v18 = vmul.f32 0.001, %v2121_v6  ;;  %63 = vst [vmem:[%s6381_s10 + $0x8] sm:$0xff] %v2213_v21 }
 0x272   :  { %2135 = vst [vmem:[%s6378_s5] sm:$0xff] %v2132_v33  ;;  %v2218_v22 = vcvt.f32.s32 %v2217_v55 }
 0x273   :  { %2144 = vst [vmem:[%s6379_s6] sm:$0xff] %v2141_v23 }
 0x274   :  { %64 = vst [vmem:[%s6381_s10 + $0x10] sm:$0xff] %v2218_v22 }
 0x275   :  { %v33_v48 = vld [vmem:[%s6374_s2 + $0x8] sm:$0xff] }
 0x276   :  { %v36_v25 = vld [vmem:[%s6375_s3 + $0x8] sm:$0xff]  ;;  %v2112_v59 = vsub.f32 %v33_v48, %v2109_v39 }
 0x277   :  { %v2127_v32 = vadd.f32 %v2124_v18, %v36_v25 }
 0x278   :  { %v2130_v54 = vmul.f32 0.001, %v2112_v59  ;;  %2148 = vst [vmem:[%s6376_s7 + $0x8] sm:$0xff] %v2112_v59 }
 0x279   :  { %v2139_v41 = vmul.f32 0.001, %v2127_v32  ;;  %2151 = vst [vmem:[%s6377_s8 + $0x8] sm:$0xff] %v2127_v32 }
 0x27a   :  { %v2133_v60 = vadd.f32 %v6260_v13, %v2130_v54  ;;  %v2387_v63 = vld [vmem:[%s6371_s1 + $0x8] sm:$0xff] }
 0x27b   :  { %v2142_v24 = vadd.f32 %v2387_v63, %v2139_v41 }
 0x27c   :  { %2136 = vst [vmem:[%s6378_s5 + $0x8] sm:$0xff] %v2133_v60 }
 0x27d   :  { %2145 = vst [vmem:[%s6379_s6 + $0x8] sm:$0xff] %v2142_v24 }

</bundles_post_ra>
